<compile_context>
chip_gen: v6e
topology: v6e:2x2x1
jax: 0.10.0
libtpu: 0.0.40
codegen_flags: <defaults>
</compile_context>

<pallas_src>
import functools

import numpy as np

import jax
import jax.numpy as jnp
from jax.experimental import pallas as pl
from jax.experimental.pallas import tpu as pltpu


def _round_up(x, m):
    return ((x + m - 1) // m) * m


# ----------------------------------------------------------------------------
# Pallas GEMM kernels:  C = act(A @ B + bias)
# ----------------------------------------------------------------------------
def _make_gemm_kernel_single_k(act):
    # Single K step: no accumulator scratch, no pl.when — epilogue applied
    # directly to the MXU result and stored once.
    def kernel(a_ref, b_ref, bias_ref, o_ref):
        y = jnp.dot(a_ref[...], b_ref[...], preferred_element_type=jnp.float32)
        y = y + bias_ref[...]
        if act == "relu":
            y = jnp.maximum(y, 0.0)
        o_ref[...] = y.astype(o_ref.dtype)
    return kernel


def _make_gemm_kernel_multi_k(act):
    # General path (K > one tile).  Direct-assign on the first K step (saves a
    # full-tile zero store + reload — v5e vector-store slot relief).
    def kernel(a_ref, b_ref, bias_ref, o_ref, acc_ref):
        k = pl.program_id(2)
        part = jnp.dot(a_ref[...], b_ref[...], preferred_element_type=jnp.float32)

        @pl.when(k == 0)
        def _():
            acc_ref[...] = part

        @pl.when(k != 0)
        def _():
            acc_ref[...] += part

        @pl.when(k == pl.num_programs(2) - 1)
        def _():
            y = acc_ref[...] + bias_ref[...]
            if act == "relu":
                y = jnp.maximum(y, 0.0)
            o_ref[...] = y.astype(o_ref.dtype)
    return kernel


def fused_matmul(a, b, bias2d, act="none", bias_axis="col",
                 out_dtype=jnp.bfloat16, tm=256, tn=512, tk=512):
    """act(A @ B + bias).  bias2d: (1, N) f32 ("col") or (M, 1) f32 ("row").

    Dims that fit a single tile use full-extent blocks (no host-side zero
    padding).  Callers orient the problem so the output last dim (N) is the
    large, lane-dense axis; at real sizes N splits into multiple "parallel"
    tiles (both v7x TensorCores), at toy sizes the grid is (1, 1).
    """
    M, K = a.shape
    K2, N = b.shape
    assert K == K2

    a = a.astype(jnp.bfloat16)
    b = b.astype(jnp.bfloat16)

    # M: round to 16 (bf16 sublane packing).  Only activation-side M dims ever
    # need this pad at runtime; weight operands are pre-shaped in prepare_params.
    Mp = _round_up(M, 16)
    if Mp > tm:
        Mp = _round_up(M, tm)
    bm = min(tm, Mp)

    # N: full extent when it fits one tile.
    if N <= tn:
        Np, bn = N, N
    else:
        Np, bn = _round_up(N, tn), tn

    # K: single-step fast path whenever K fits one tile (true for all layers
    # of this decoder).
    single_k = K <= tk
    if single_k:
        Kp, bk = K, K
    else:
        # TODO(synk): at scale, pre-pad the weight operand's K in prepare_params.
        Kp, bk = _round_up(K, tk), tk

    if Mp != M or Kp != K:
        a = jnp.pad(a, ((0, Mp - M), (0, Kp - K)))
    if Kp != K or Np != N:
        b = jnp.pad(b, ((0, Kp - K), (0, Np - N)))

    if bias_axis == "col":
        if Np != N:
            bias2d = jnp.pad(bias2d, ((0, 0), (0, Np - N)))
        bias_spec_2d = pl.BlockSpec((1, bn), lambda i, j: (0, j))
        bias_spec_3d = pl.BlockSpec((1, bn), lambda i, j, k: (0, j))
    else:
        if Mp != M:
            bias2d = jnp.pad(bias2d, ((0, Mp - M), (0, 0)))
        bias_spec_2d = pl.BlockSpec((bm, 1), lambda i, j: (i, 0))
        bias_spec_3d = pl.BlockSpec((bm, 1), lambda i, j, k: (i, 0))

    if single_k:
        out = pl.pallas_call(
            _make_gemm_kernel_single_k(act),
            out_shape=jax.ShapeDtypeStruct((Mp, Np), out_dtype),
            grid_spec=pltpu.PrefetchScalarGridSpec(
                num_scalar_prefetch=0,
                grid=(Mp // bm, Np // bn),
                in_specs=[pl.BlockSpec((bm, K), lambda i, j: (i, 0)),
                          pl.BlockSpec((K, bn), lambda i, j: (0, j)),
                          bias_spec_2d],
                out_specs=pl.BlockSpec((bm, bn), lambda i, j: (i, j)),
            ),
            compiler_params=pltpu.CompilerParams(
                dimension_semantics=("parallel", "parallel")),
        )(a, b, bias2d)
    else:
        out = pl.pallas_call(
            _make_gemm_kernel_multi_k(act),
            out_shape=jax.ShapeDtypeStruct((Mp, Np), out_dtype),
            grid_spec=pltpu.PrefetchScalarGridSpec(
                num_scalar_prefetch=0,
                grid=(Mp // bm, Np // bn, Kp // bk),
                in_specs=[pl.BlockSpec((bm, bk), lambda i, j, k: (i, k)),
                          pl.BlockSpec((bk, bn), lambda i, j, k: (k, j)),
                          bias_spec_3d],
                out_specs=pl.BlockSpec((bm, bn), lambda i, j, k: (i, j)),
                scratch_shapes=[pltpu.VMEM((bm, bn), jnp.float32)],
            ),
            compiler_params=pltpu.CompilerParams(
                dimension_semantics=("parallel", "parallel", "arbitrary")),
        )(a, b, bias2d)

    if (Mp, Np) != (M, N):
        out = out[:M, :N]
    return out


# ----------------------------------------------------------------------------
# Fused ResNet block kernel.
#
# The activation enters the kernel in a flattened, spatially zero-padded layout
# xg = (C, G + L + G) where L = B*Hp*Wp (Hp=H+2, Wp=W+2) and G = Wp+1 is a
# zeroed guard so every shifted tap slice is in bounds.  A 3x3 conv is then
# 9 dots  W_tap(C,C) @ xg[:, G+o : G+o+L]  with o = (di-1)*Wp + (dj-1); values
# at "border" positions of the flat layout are garbage and are masked to zero
# (they double as the zero padding seen by the second conv).  No im2col is
# materialized anywhere; the intermediate activation lives only in VMEM scratch.
# TODO(synk): at real resolutions tile L over the grid (emit_pipeline) instead
#             of holding the whole flat activation in VMEM.
# ----------------------------------------------------------------------------
def _make_resnet_kernel(offsets, L, G, C):
    def conv(w_ref, src_ref):
        acc = None
        for t, o in enumerate(offsets):
            w_t = w_ref[t * C:(t + 1) * C, :]                    # (C, C) bf16
            part = jnp.dot(w_t, src_ref[:, G + o:G + o + L],
                           preferred_element_type=jnp.float32)   # (C, L) f32
            acc = part if acc is None else acc + part
        return acc

    def kernel(x_ref, w1_ref, b1_ref, w2_ref, b2_ref, mask_ref, o_ref, h_ref):
        mask = mask_ref[...]                                     # (1, L) f32
        # conv1 + bias + ReLU, border positions zeroed.
        h = jnp.maximum(conv(w1_ref, x_ref) + b1_ref[...], 0.0) * mask
        # Stage the intermediate (with zero guards) in VMEM scratch only.
        h_ref[...] = jnp.zeros_like(h_ref)
        h_ref[:, G:G + L] = h.astype(h_ref.dtype)
        # conv2 + bias + residual + ReLU.
        y = conv(w2_ref, h_ref) + b2_ref[...] + x_ref[:, G:G + L].astype(jnp.float32)
        o_ref[...] = (jnp.maximum(y, 0.0) * mask).astype(o_ref.dtype)

    return kernel


def resnet_block(x, p):
    """block.ResNet assumed: relu(x + conv3x3(relu(conv3x3(x)))), zero pad 1.
    x: (C, B, H, W) bf16 -> (C, B, H, W) bf16.  One fused pallas_call."""
    C, B, H, W = x.shape
    Hp, Wp = H + 2, W + 2
    L = B * Hp * Wp
    G = Wp + 1
    offsets = [(di - 1) * Wp + (dj - 1) for di in range(3) for dj in range(3)]

    # Layout prep (zero-pad + flatten + guards): one small XLA copy per block.
    xg = jnp.pad(x.astype(jnp.bfloat16), ((0, 0), (0, 0), (1, 1), (1, 1)))
    xg = jnp.pad(xg.reshape(C, L), ((0, 0), (G, G)))

    # Trace-time constant: 1 at valid (center) positions of the flat layout.
    m = np.zeros((B, Hp, Wp), np.float32)
    m[:, 1:-1, 1:-1] = 1.0
    mask = jnp.asarray(m.reshape(1, L))

    y = pl.pallas_call(
        _make_resnet_kernel(offsets, L, G, C),
        out_shape=jax.ShapeDtypeStruct((C, L), jnp.bfloat16),
        grid_spec=pltpu.PrefetchScalarGridSpec(
            num_scalar_prefetch=0,
            grid=(1,),
            in_specs=[pl.BlockSpec((C, L + 2 * G), lambda i: (0, 0)),
                      pl.BlockSpec((9 * C, C), lambda i: (0, 0)),
                      pl.BlockSpec((C, 1), lambda i: (0, 0)),
                      pl.BlockSpec((9 * C, C), lambda i: (0, 0)),
                      pl.BlockSpec((C, 1), lambda i: (0, 0)),
                      pl.BlockSpec((1, L), lambda i: (0, 0))],
            out_specs=pl.BlockSpec((C, L), lambda i: (0, 0)),
            scratch_shapes=[pltpu.VMEM((C, L + 2 * G), jnp.bfloat16)],
        ),
        compiler_params=pltpu.CompilerParams(
            dimension_semantics=("arbitrary",)),
    )(xg, p["w1"], p["b1"], p["w2"], p["b2"], mask)

    # Extract the valid centers (cheap XLA slice, fuses with consumer layout prep).
    return y.reshape(C, B, Hp, Wp)[:, :, 1:-1, 1:-1]


# ----------------------------------------------------------------------------
# Single conv (k x k, valid) from the flattened padded layout — used for the
# final 4x4 'same'/reflect conv.  Same shifted-slice scheme, no im2col.
# ----------------------------------------------------------------------------
def _make_conv_kernel(offsets, L, G, cout):
    def kernel(x_ref, w_ref, b_ref, o_ref):
        acc = None
        for t, o in enumerate(offsets):
            w_t = w_ref[t * cout:(t + 1) * cout, :]              # (cout, Cin)
            part = jnp.dot(w_t, x_ref[:, G + o:G + o + L],
                           preferred_element_type=jnp.float32)
            acc = part if acc is None else acc + part
        o_ref[...] = (acc + b_ref[...]).astype(o_ref.dtype)
    return kernel


def conv4x4_valid_flat(xp, a16, bias, cout_real):
    """xp: (Cin, B, Hp, Wp) already fully reflect-padded.  Returns the valid
    4x4 conv output (cout_real, B, Hp-3, Wp-3) in f32."""
    Cin, B, Hp, Wp = xp.shape
    oh, ow = Hp - 3, Wp - 3
    L = B * Hp * Wp
    G = 2 * Wp + 2
    offsets = [(di - 1) * Wp + (dj - 1) for di in range(4) for dj in range(4)]
    cpad = a16.shape[0] // 16       # Cout padded to 8 once in prepare_params

    xg = jnp.pad(xp.astype(jnp.bfloat16).reshape(Cin, L), ((0, 0), (G, G)))

    y = pl.pallas_call(
        _make_conv_kernel(offsets, L, G, cpad),
        out_shape=jax.ShapeDtypeStruct((cpad, L), jnp.float32),
        grid_spec=pltpu.PrefetchScalarGridSpec(
            num_scalar_prefetch=0,
            grid=(1,),
            in_specs=[pl.BlockSpec((Cin, L + 2 * G), lambda i: (0, 0)),
                      pl.BlockSpec((16 * cpad, Cin), lambda i: (0, 0)),
                      pl.BlockSpec((cpad, 1), lambda i: (0, 0))],
            out_specs=pl.BlockSpec((cpad, L), lambda i: (0, 0)),
        ),
        compiler_params=pltpu.CompilerParams(
            dimension_semantics=("arbitrary",)),
    )(xg, a16, bias)

    return y[:cout_real].reshape(cout_real, B, Hp, Wp)[:, :, 1:1 + oh, 1:1 + ow]


# ----------------------------------------------------------------------------
# ConvTranspose2d(k=2, s=2) + ReLU as a pure GEMM (no im2col needed).
# ----------------------------------------------------------------------------
def conv_transpose_2x(x, p):
    # TODO(synk): block.ConvTrans2D assumed = ConvTranspose2d(k=2, s=2) + ReLU.
    Cin, B, H, W = x.shape
    a = p["a"]                                   # (4*Cout, Cin) bf16, rows (kh,kw,cout)
    cout = a.shape[0] // 4
    y = fused_matmul(a, x.reshape(Cin, B * H * W), p["b"], act="relu",
                     bias_axis="row", out_dtype=jnp.bfloat16)    # (4*Cout, B*H*W)
    # TODO(synk): at real resolutions fold this pixel-shuffle into the kernel's
    # output write pattern (strided out index_map) to avoid one HBM round trip.
    y = y.reshape(2, 2, cout, B, H, W)
    return jnp.transpose(y, (2, 3, 4, 0, 5, 1)).reshape(cout, B, 2 * H, 2 * W)


# ----------------------------------------------------------------------------
# Decoder forward
# ----------------------------------------------------------------------------
def decoder_forward(z, params, channels, input_dim, output_dim):
    # NOTE: activations are bf16 between layers (MXU operands); expect ~bf16
    # rounding differences vs an f32 PyTorch reference.
    B = z.shape[0]
    C0 = channels[0]
    D = input_dim

    # self.latent: Linear(latent_dim, C0*D*D) — output last dim is lane-dense.
    h = fused_matmul(z, params["latent"]["w"], params["latent"]["b"],
                     act="none", bias_axis="col", out_dtype=jnp.bfloat16)
    # torch.reshape(x, (B, C0, D, D)) -> channels-leading internal layout.
    x = jnp.transpose(h.reshape(B, C0, D, D), (1, 0, 2, 3))     # (C0, B, D, D)

    dim = D
    for i in range(1, len(channels) - 1):
        x = resnet_block(x, params["res"][i - 1])
        x = conv_transpose_2x(x, params["up"][i - 1])
        dim *= 2

    # self.output: ResNet -> ReflectionPad2d(conv_dim -> output_dim)
    #              -> Conv2d(k=4, s=1, padding='same', padding_mode='reflect')
    x = resnet_block(x, params["out_res"])
    dif = output_dim - dim
    lt = dif // 2
    rb = dif - lt          # PyTorch pads the extra element on right/bottom when odd
    x = jnp.pad(x, ((0, 0), (0, 0), (lt, rb), (lt, rb)), mode="reflect")
    # torch 'same' padding for k=4, s=1: (left, right) = (1, 2) per spatial dim.
    x = jnp.pad(x, ((0, 0), (0, 0), (1, 2), (1, 2)), mode="reflect")
    y = conv4x4_valid_flat(x, params["out_conv"]["a"], params["out_conv"]["b"],
                           channels[-1])                        # (Cout, B, H, W) f32
    return jnp.transpose(y, (1, 0, 2, 3))                       # NCHW f32


# ----------------------------------------------------------------------------
# Parameter init (PyTorch layouts) + one-time conversion to kernel-ready arrays
# ----------------------------------------------------------------------------
def init_params(key, channels, input_dim, latent_dim):
    keys = iter(jax.random.split(key, 64))

    def dense(shape, scale=0.05):
        return scale * jax.random.normal(next(keys), shape, dtype=jnp.float32)

    C0 = channels[0]
    params = {
        "latent": {"w": dense((latent_dim, C0 * input_dim * input_dim)),
                   "b": dense((C0 * input_dim * input_dim,))},
        "res": [], "up": [],
    }
    for i in range(1, len(channels) - 1):
        cin, cout = channels[i - 1], channels[i]
        params["res"].append({
            "w1": dense((cin, cin, 3, 3)), "b1": dense((cin,)),
            "w2": dense((cin, cin, 3, 3)), "b2": dense((cin,)),
        })
        params["up"].append({"w": dense((cin, cout, 2, 2)), "b": dense((cout,))})
    cpen = channels[-2]
    params["out_res"] = {
        "w1": dense((cpen, cpen, 3, 3)), "b1": dense((cpen,)),
        "w2": dense((cpen, cpen, 3, 3)), "b2": dense((cpen,)),
    }
    params["out_conv"] = {"w": dense((channels[-1], cpen, 4, 4)),
                          "b": dense((channels[-1],))}
    return params


def prepare_params(raw):
    """One-time conversion: bf16 kernel-ready weights, f32 2-D biases.
    All transposes / flattening / channel padding happen HERE, never per call."""
    def conv_taps(w):   # (Cout, Cin, KH, KW) -> (KH*KW*Cout, Cin), tap-major rows
        cout, cin, kh, kw = w.shape
        return (jnp.transpose(w, (2, 3, 0, 1))
                .reshape(kh * kw * cout, cin).astype(jnp.bfloat16))

    def convT_mat(w):   # (Cin, Cout, 2, 2) -> (4*Cout, Cin), rows = (kh, kw, cout)
        cin, cout, kh, kw = w.shape
        return (jnp.transpose(w, (2, 3, 1, 0))
                .reshape(kh * kw * cout, cin).astype(jnp.bfloat16))

    def col_bias(b):
        return b.astype(jnp.float32).reshape(1, -1)

    def row_bias(b):
        return b.astype(jnp.float32).reshape(-1, 1)

    p = {"latent": {"w": raw["latent"]["w"].astype(jnp.bfloat16),
                    "b": col_bias(raw["latent"]["b"])},
         "res": [], "up": []}
    for r in raw["res"]:
        p["res"].append({"w1": conv_taps(r["w1"]), "b1": row_bias(r["b1"]),
                         "w2": conv_taps(r["w2"]), "b2": row_bias(r["b2"])})
    for u in raw["up"]:
        kh, kw = u["w"].shape[2], u["w"].shape[3]
        p["up"].append({"a": convT_mat(u["w"]),
                        "b": row_bias(jnp.tile(u["b"], kh * kw))})
    p["out_res"] = {"w1": conv_taps(raw["out_res"]["w1"]),
                    "b1": row_bias(raw["out_res"]["b1"]),
                    "w2": conv_taps(raw["out_res"]["w2"]),
                    "b2": row_bias(raw["out_res"]["b2"])}
    # Final 4x4 conv: pad Cout (3) up to 8 sublanes once (free); sliced back
    # to the real channel count after the kernel.
    w = raw["out_conv"]["w"]
    cout, cin, kh, kw = w.shape
    cpad = _round_up(cout, 8)
    w16 = jnp.transpose(w, (2, 3, 0, 1)).reshape(kh * kw, cout, cin)
    w16 = jnp.pad(w16, ((0, 0), (0, cpad - cout), (0, 0)))
    p["out_conv"] = {"a": w16.reshape(kh * kw * cpad, cin).astype(jnp.bfloat16),
                     "b": row_bias(jnp.pad(raw["out_conv"]["b"], (0, cpad - cout)))}
    return p


if __name__ == "__main__":
    # Small, module-consistent config.
    channels = (8, 8, 3)          # one (ResNet, ConvTrans2D) pair
    input_dimension = 4
    output_dimension = 10         # conv_dimension after upsampling = 8 -> reflect-pad to 10
    latent_dimension = 16
    batch = 2

    key = jax.random.PRNGKey(0)
    pkey, xkey = jax.random.split(key)
    raw_params = init_params(pkey, channels, input_dimension, latent_dimension)
    params = prepare_params(raw_params)
    z = jax.random.normal(xkey, (batch, latent_dimension), dtype=jnp.float32)

    fwd = jax.jit(functools.partial(
        decoder_forward,
        channels=channels,
        input_dim=input_dimension,
        output_dim=output_dimension,
    ))
    out = jax.block_until_ready(fwd(z, params))

    expected = (batch, channels[-1], output_dimension, output_dimension)
    assert out.shape == expected, (out.shape, expected)
    assert out.dtype == jnp.float32
    assert bool(jnp.all(jnp.isfinite(out)))
    print("KERNEL_OK")
</pallas_src>

<mosaic_0001>
module attributes {stable_mosaic.version = 11 : i64} {
  func.func @kernel(%arg0: i32, %arg1: i32, %arg2: memref<16x16xbf16, #tpu.memory_space<vmem>>, %arg3: memref<16x128xbf16, #tpu.memory_space<vmem>>, %arg4: memref<1x128xf32, #tpu.memory_space<vmem>>, %arg5: memref<16x128xbf16, #tpu.memory_space<vmem>>) attributes {dimension_semantics = [#tpu.dimension_semantics<parallel>, #tpu.dimension_semantics<parallel>], iteration_bounds = array<i64: 1, 1>, scalar_prefetch = 0 : i64, scratch_operands = 0 : i64, tpu.core_type = #tpu.core_type<tc>, window_params = [{transform_indices = @transform_0, window_bounds = array<i64: 16, 16>}, {transform_indices = @transform_1, window_bounds = array<i64: 16, 128>}, {transform_indices = @transform_2, window_bounds = array<i64: 1, 128>}, {transform_indices = @transform_3, window_bounds = array<i64: 16, 128>}]} {
    %c0 = arith.constant 0 : index
    %c0_0 = arith.constant 0 : index
    %0 = vector.load %arg2[%c0, %c0_0] : memref<16x16xbf16, #tpu.memory_space<vmem>>, vector<16x16xbf16>
    %c0_1 = arith.constant 0 : index
    %c0_2 = arith.constant 0 : index
    %1 = vector.load %arg3[%c0_1, %c0_2] : memref<16x128xbf16, #tpu.memory_space<vmem>>, vector<16x128xbf16>
    %cst = arith.constant dense<0.000000e+00> : vector<16x128xf32>
    %2 = tpu.matmul %0, %1, %cst {dimension_numbers = #tpu.dot_dimension_numbers<[1], [0], [0], [1], [0, 0, 1, 1], [], []>} : vector<16x16xbf16>, vector<16x128xbf16>, vector<16x128xf32> -> vector<16x128xf32>
    %c0_3 = arith.constant 0 : index
    %c0_4 = arith.constant 0 : index
    %3 = vector.load %arg4[%c0_3, %c0_4] : memref<1x128xf32, #tpu.memory_space<vmem>>, vector<1x128xf32>
    %4 = vector.broadcast %3 : vector<1x128xf32> to vector<16x128xf32>
    %5 = arith.addf %2, %4 : vector<16x128xf32>
    %6 = arith.truncf %5 : vector<16x128xf32> to vector<16x128xbf16>
    %c0_5 = arith.constant 0 : index
    %c0_6 = arith.constant 0 : index
    %7 = vector.load %arg5[%c0_5, %c0_6] : memref<16x128xbf16, #tpu.memory_space<vmem>>, vector<16x128xbf16>
    tpu.vector_store %arg5[%c0_5, %c0_6], %6 {strides = array<i32>} : memref<16x128xbf16, #tpu.memory_space<vmem>>, vector<16x128xbf16>,
    return
  }
  func.func @transform_0(%arg0: i32, %arg1: i32) -> (i32, i32) {
    %c0_i32 = arith.constant 0 : i32
    %c0_i32_0 = arith.constant 0 : i32
    return %arg0, %c0_i32 : i32, i32
  }
  func.func @transform_1(%arg0: i32, %arg1: i32) -> (i32, i32) {
    %c0_i32 = arith.constant 0 : i32
    %c0_i32_0 = arith.constant 0 : i32
    return %c0_i32, %arg1 : i32, i32
  }
  func.func @transform_2(%arg0: i32, %arg1: i32) -> (i32, i32) {
    %c0_i32 = arith.constant 0 : i32
    %c0_i32_0 = arith.constant 0 : i32
    return %c0_i32, %arg1 : i32, i32
  }
  func.func @transform_3(%arg0: i32, %arg1: i32) -> (i32, i32) {
    %c0_i32 = arith.constant 0 : i32
    return %arg0, %arg1 : i32, i32
  }
}

module attributes {stable_mosaic.version = 11 : i64} {
  func.func @kernel(%arg0: i32, %arg1: memref<8x86xbf16, #tpu.memory_space<vmem>>, %arg2: memref<72x8xbf16, #tpu.memory_space<vmem>>, %arg3: memref<8x1xf32, #tpu.memory_space<vmem>>, %arg4: memref<72x8xbf16, #tpu.memory_space<vmem>>, %arg5: memref<8x1xf32, #tpu.memory_space<vmem>>, %arg6: memref<1x72xf32, #tpu.memory_space<vmem>>, %arg7: memref<8x72xbf16, #tpu.memory_space<vmem>>, %arg8: memref<8x86xbf16, #tpu.memory_space<vmem>>) attributes {dimension_semantics = [#tpu.dimension_semantics<arbitrary>], iteration_bounds = array<i64: 1>, scalar_prefetch = 0 : i64, scratch_operands = 1 : i64, tpu.core_type = #tpu.core_type<tc>, window_params = [{pipeline_mode = #tpu.pipeline_mode<synchronous>, transform_indices = @transform_0, window_bounds = array<i64: 8, 86>}, {pipeline_mode = #tpu.pipeline_mode<synchronous>, transform_indices = @transform_1, window_bounds = array<i64: 72, 8>}, {pipeline_mode = #tpu.pipeline_mode<synchronous>, transform_indices = @transform_2, window_bounds = array<i64: 8, 1>}, {pipeline_mode = #tpu.pipeline_mode<synchronous>, transform_indices = @transform_3, window_bounds = array<i64: 72, 8>}, {pipeline_mode = #tpu.pipeline_mode<synchronous>, transform_indices = @transform_4, window_bounds = array<i64: 8, 1>}, {pipeline_mode = #tpu.pipeline_mode<synchronous>, transform_indices = @transform_5, window_bounds = array<i64: 1, 72>}, {pipeline_mode = #tpu.pipeline_mode<synchronous>, transform_indices = @transform_6, window_bounds = array<i64: 8, 72>}]} {
    %c0 = arith.constant 0 : index
    %c0_0 = arith.constant 0 : index
    %0 = vector.load %arg6[%c0, %c0_0] : memref<1x72xf32, #tpu.memory_space<vmem>>, vector<1x72xf32>
    %c0_1 = arith.constant 0 : index
    %c0_2 = arith.constant 0 : index
    %1 = vector.load %arg2[%c0_1, %c0_2] : memref<72x8xbf16, #tpu.memory_space<vmem>>, vector<8x8xbf16>
    %c0_3 = arith.constant 0 : index
    %c0_4 = arith.constant 0 : index
    %2 = vector.load %arg1[%c0_3, %c0_4] : memref<8x86xbf16, #tpu.memory_space<vmem>>, vector<8x72xbf16>
    %cst = arith.constant dense<0.000000e+00> : vector<8x72xf32>
    %3 = tpu.matmul %1, %2, %cst {dimension_numbers = #tpu.dot_dimension_numbers<[1], [0], [0], [1], [0, 0, 1, 1], [], []>} : vector<8x8xbf16>, vector<8x72xbf16>, vector<8x72xf32> -> vector<8x72xf32>
    %c8 = arith.constant 8 : index
    %c0_5 = arith.constant 0 : index
    %4 = vector.load %arg2[%c8, %c0_5] : memref<72x8xbf16, #tpu.memory_space<vmem>>, vector<8x8xbf16>
    %c0_6 = arith.constant 0 : index
    %c1 = arith.constant 1 : index
    %5 = vector.load %arg1[%c0_6, %c1] : memref<8x86xbf16, #tpu.memory_space<vmem>>, vector<8x72xbf16>
    %cst_7 = arith.constant dense<0.000000e+00> : vector<8x72xf32>
    %6 = tpu.matmul %4, %5, %cst_7 {dimension_numbers = #tpu.dot_dimension_numbers<[1], [0], [0], [1], [0, 0, 1, 1], [], []>} : vector<8x8xbf16>, vector<8x72xbf16>, vector<8x72xf32> -> vector<8x72xf32>
    %7 = arith.addf %3, %6 : vector<8x72xf32>
    %c16 = arith.constant 16 : index
    %c0_8 = arith.constant 0 : index
    %8 = vector.load %arg2[%c16, %c0_8] : memref<72x8xbf16, #tpu.memory_space<vmem>>, vector<8x8xbf16>
    %c0_9 = arith.constant 0 : index
    %c2 = arith.constant 2 : index
    %9 = vector.load %arg1[%c0_9, %c2] : memref<8x86xbf16, #tpu.memory_space<vmem>>, vector<8x72xbf16>
    %cst_10 = arith.constant dense<0.000000e+00> : vector<8x72xf32>
    %10 = tpu.matmul %8, %9, %cst_10 {dimension_numbers = #tpu.dot_dimension_numbers<[1], [0], [0], [1], [0, 0, 1, 1], [], []>} : vector<8x8xbf16>, vector<8x72xbf16>, vector<8x72xf32> -> vector<8x72xf32>
    %11 = arith.addf %7, %10 : vector<8x72xf32>
    %c24 = arith.constant 24 : index
    %c0_11 = arith.constant 0 : index
    %12 = vector.load %arg2[%c24, %c0_11] : memref<72x8xbf16, #tpu.memory_space<vmem>>, vector<8x8xbf16>
    %c0_12 = arith.constant 0 : index
    %c6 = arith.constant 6 : index
    %13 = vector.load %arg1[%c0_12, %c6] : memref<8x86xbf16, #tpu.memory_space<vmem>>, vector<8x72xbf16>
    %cst_13 = arith.constant dense<0.000000e+00> : vector<8x72xf32>
    %14 = tpu.matmul %12, %13, %cst_13 {dimension_numbers = #tpu.dot_dimension_numbers<[1], [0], [0], [1], [0, 0, 1, 1], [], []>} : vector<8x8xbf16>, vector<8x72xbf16>, vector<8x72xf32> -> vector<8x72xf32>
    %15 = arith.addf %11, %14 : vector<8x72xf32>
    %c32 = arith.constant 32 : index
    %c0_14 = arith.constant 0 : index
    %16 = vector.load %arg2[%c32, %c0_14] : memref<72x8xbf16, #tpu.memory_space<vmem>>, vector<8x8xbf16>
    %c0_15 = arith.constant 0 : index
    %c7 = arith.constant 7 : index
    %17 = vector.load %arg1[%c0_15, %c7] : memref<8x86xbf16, #tpu.memory_space<vmem>>, vector<8x72xbf16>
    %cst_16 = arith.constant dense<0.000000e+00> : vector<8x72xf32>
    %18 = tpu.matmul %16, %17, %cst_16 {dimension_numbers = #tpu.dot_dimension_numbers<[1], [0], [0], [1], [0, 0, 1, 1], [], []>} : vector<8x8xbf16>, vector<8x72xbf16>, vector<8x72xf32> -> vector<8x72xf32>
    %19 = arith.addf %15, %18 : vector<8x72xf32>
    %c40 = arith.constant 40 : index
    %c0_17 = arith.constant 0 : index
    %20 = vector.load %arg2[%c40, %c0_17] : memref<72x8xbf16, #tpu.memory_space<vmem>>, vector<8x8xbf16>
    %c0_18 = arith.constant 0 : index
    %c8_19 = arith.constant 8 : index
    %21 = vector.load %arg1[%c0_18, %c8_19] : memref<8x86xbf16, #tpu.memory_space<vmem>>, vector<8x72xbf16>
    %cst_20 = arith.constant dense<0.000000e+00> : vector<8x72xf32>
    %22 = tpu.matmul %20, %21, %cst_20 {dimension_numbers = #tpu.dot_dimension_numbers<[1], [0], [0], [1], [0, 0, 1, 1], [], []>} : vector<8x8xbf16>, vector<8x72xbf16>, vector<8x72xf32> -> vector<8x72xf32>
    %23 = arith.addf %19, %22 : vector<8x72xf32>
    %c48 = arith.constant 48 : index
    %c0_21 = arith.constant 0 : index
    %24 = vector.load %arg2[%c48, %c0_21] : memref<72x8xbf16, #tpu.memory_space<vmem>>, vector<8x8xbf16>
    %c0_22 = arith.constant 0 : index
    %c12 = arith.constant 12 : index
    %25 = vector.load %arg1[%c0_22, %c12] : memref<8x86xbf16, #tpu.memory_space<vmem>>, vector<8x72xbf16>
    %cst_23 = arith.constant dense<0.000000e+00> : vector<8x72xf32>
    %26 = tpu.matmul %24, %25, %cst_23 {dimension_numbers = #tpu.dot_dimension_numbers<[1], [0], [0], [1], [0, 0, 1, 1], [], []>} : vector<8x8xbf16>, vector<8x72xbf16>, vector<8x72xf32> -> vector<8x72xf32>
    %27 = arith.addf %23, %26 : vector<8x72xf32>
    %c56 = arith.constant 56 : index
    %c0_24 = arith.constant 0 : index
    %28 = vector.load %arg2[%c56, %c0_24] : memref<72x8xbf16, #tpu.memory_space<vmem>>, vector<8x8xbf16>
    %c0_25 = arith.constant 0 : index
    %c13 = arith.constant 13 : index
    %29 = vector.load %arg1[%c0_25, %c13] : memref<8x86xbf16, #tpu.memory_space<vmem>>, vector<8x72xbf16>
    %cst_26 = arith.constant dense<0.000000e+00> : vector<8x72xf32>
    %30 = tpu.matmul %28, %29, %cst_26 {dimension_numbers = #tpu.dot_dimension_numbers<[1], [0], [0], [1], [0, 0, 1, 1], [], []>} : vector<8x8xbf16>, vector<8x72xbf16>, vector<8x72xf32> -> vector<8x72xf32>
    %31 = arith.addf %27, %30 : vector<8x72xf32>
    %c64 = arith.constant 64 : index
    %c0_27 = arith.constant 0 : index
    %32 = vector.load %arg2[%c64, %c0_27] : memref<72x8xbf16, #tpu.memory_space<vmem>>, vector<8x8xbf16>
    %c0_28 = arith.constant 0 : index
    %c14 = arith.constant 14 : index
    %33 = vector.load %arg1[%c0_28, %c14] : memref<8x86xbf16, #tpu.memory_space<vmem>>, vector<8x72xbf16>
    %cst_29 = arith.constant dense<0.000000e+00> : vector<8x72xf32>
    %34 = tpu.matmul %32, %33, %cst_29 {dimension_numbers = #tpu.dot_dimension_numbers<[1], [0], [0], [1], [0, 0, 1, 1], [], []>} : vector<8x8xbf16>, vector<8x72xbf16>, vector<8x72xf32> -> vector<8x72xf32>
    %35 = arith.addf %31, %34 : vector<8x72xf32>
    %c0_30 = arith.constant 0 : index
    %c0_31 = arith.constant 0 : index
    %36 = vector.load %arg3[%c0_30, %c0_31] : memref<8x1xf32, #tpu.memory_space<vmem>>, vector<8x1xf32>
    %37 = vector.broadcast %36 : vector<8x1xf32> to vector<8x72xf32>
    %38 = arith.addf %35, %37 : vector<8x72xf32>
    %cst_32 = arith.constant 0.000000e+00 : f32
    %39 = vector.broadcast %cst_32 : f32 to vector<8x72xf32>
    %40 = arith.maximumf %38, %39 : vector<8x72xf32>
    %41 = vector.broadcast %0 : vector<1x72xf32> to vector<8x72xf32>
    %42 = arith.mulf %40, %41 : vector<8x72xf32>
    %cst_33 = arith.constant 0.000000e+00 : bf16
    %43 = vector.broadcast %cst_33 : bf16 to vector<8x86xbf16>
    %c0_34 = arith.constant 0 : index
    %c0_35 = arith.constant 0 : index
    %44 = vector.load %arg8[%c0_34, %c0_35] : memref<8x86xbf16, #tpu.memory_space<vmem>>, vector<8x86xbf16>
    tpu.vector_store %arg8[%c0_34, %c0_35], %43 {strides = array<i32>} : memref<8x86xbf16, #tpu.memory_space<vmem>>, vector<8x86xbf16>,
    %45 = arith.truncf %42 : vector<8x72xf32> to vector<8x72xbf16>
    %c0_36 = arith.constant 0 : index
    %c7_37 = arith.constant 7 : index
    %46 = vector.load %arg8[%c0_36, %c7_37] : memref<8x86xbf16, #tpu.memory_space<vmem>>, vector<8x72xbf16>
    tpu.vector_store %arg8[%c0_36, %c7_37], %45 {strides = array<i32>} : memref<8x86xbf16, #tpu.memory_space<vmem>>, vector<8x72xbf16>,
    %c0_38 = arith.constant 0 : index
    %c0_39 = arith.constant 0 : index
    %47 = vector.load %arg4[%c0_38, %c0_39] : memref<72x8xbf16, #tpu.memory_space<vmem>>, vector<8x8xbf16>
    %c0_40 = arith.constant 0 : index
    %c0_41 = arith.constant 0 : index
    %48 = vector.load %arg8[%c0_40, %c0_41] : memref<8x86xbf16, #tpu.memory_space<vmem>>, vector<8x72xbf16>
    %cst_42 = arith.constant dense<0.000000e+00> : vector<8x72xf32>
    %49 = tpu.matmul %47, %48, %cst_42 {dimension_numbers = #tpu.dot_dimension_numbers<[1], [0], [0], [1], [0, 0, 1, 1], [], []>} : vector<8x8xbf16>, vector<8x72xbf16>, vector<8x72xf32> -> vector<8x72xf32>
    %c8_43 = arith.constant 8 : index
    %c0_44 = arith.constant 0 : index
    %50 = vector.load %arg4[%c8_43, %c0_44] : memref<72x8xbf16, #tpu.memory_space<vmem>>, vector<8x8xbf16>
    %c0_45 = arith.constant 0 : index
    %c1_46 = arith.constant 1 : index
    %51 = vector.load %arg8[%c0_45, %c1_46] : memref<8x86xbf16, #tpu.memory_space<vmem>>, vector<8x72xbf16>
    %cst_47 = arith.constant dense<0.000000e+00> : vector<8x72xf32>
    %52 = tpu.matmul %50, %51, %cst_47 {dimension_numbers = #tpu.dot_dimension_numbers<[1], [0], [0], [1], [0, 0, 1, 1], [], []>} : vector<8x8xbf16>, vector<8x72xbf16>, vector<8x72xf32> -> vector<8x72xf32>
    %53 = arith.addf %49, %52 : vector<8x72xf32>
    %c16_48 = arith.constant 16 : index
    %c0_49 = arith.constant 0 : index
    %54 = vector.load %arg4[%c16_48, %c0_49] : memref<72x8xbf16, #tpu.memory_space<vmem>>, vector<8x8xbf16>
    %c0_50 = arith.constant 0 : index
    %c2_51 = arith.constant 2 : index
    %55 = vector.load %arg8[%c0_50, %c2_51] : memref<8x86xbf16, #tpu.memory_space<vmem>>, vector<8x72xbf16>
    %cst_52 = arith.constant dense<0.000000e+00> : vector<8x72xf32>
    %56 = tpu.matmul %54, %55, %cst_52 {dimension_numbers = #tpu.dot_dimension_numbers<[1], [0], [0], [1], [0, 0, 1, 1], [], []>} : vector<8x8xbf16>, vector<8x72xbf16>, vector<8x72xf32> -> vector<8x72xf32>
    %57 = arith.addf %53, %56 : vector<8x72xf32>
    %c24_53 = arith.constant 24 : index
    %c0_54 = arith.constant 0 : index
    %58 = vector.load %arg4[%c24_53, %c0_54] : memref<72x8xbf16, #tpu.memory_space<vmem>>, vector<8x8xbf16>
    %c0_55 = arith.constant 0 : index
    %c6_56 = arith.constant 6 : index
    %59 = vector.load %arg8[%c0_55, %c6_56] : memref<8x86xbf16, #tpu.memory_space<vmem>>, vector<8x72xbf16>
    %cst_57 = arith.constant dense<0.000000e+00> : vector<8x72xf32>
    %60 = tpu.matmul %58, %59, %cst_57 {dimension_numbers = #tpu.dot_dimension_numbers<[1], [0], [0], [1], [0, 0, 1, 1], [], []>} : vector<8x8xbf16>, vector<8x72xbf16>, vector<8x72xf32> -> vector<8x72xf32>
    %61 = arith.addf %57, %60 : vector<8x72xf32>
    %c32_58 = arith.constant 32 : index
    %c0_59 = arith.constant 0 : index
    %62 = vector.load %arg4[%c32_58, %c0_59] : memref<72x8xbf16, #tpu.memory_space<vmem>>, vector<8x8xbf16>
    %c0_60 = arith.constant 0 : index
    %c7_61 = arith.constant 7 : index
    %63 = vector.load %arg8[%c0_60, %c7_61] : memref<8x86xbf16, #tpu.memory_space<vmem>>, vector<8x72xbf16>
    %cst_62 = arith.constant dense<0.000000e+00> : vector<8x72xf32>
    %64 = tpu.matmul %62, %63, %cst_62 {dimension_numbers = #tpu.dot_dimension_numbers<[1], [0], [0], [1], [0, 0, 1, 1], [], []>} : vector<8x8xbf16>, vector<8x72xbf16>, vector<8x72xf32> -> vector<8x72xf32>
    %65 = arith.addf %61, %64 : vector<8x72xf32>
    %c40_63 = arith.constant 40 : index
    %c0_64 = arith.constant 0 : index
    %66 = vector.load %arg4[%c40_63, %c0_64] : memref<72x8xbf16, #tpu.memory_space<vmem>>, vector<8x8xbf16>
    %c0_65 = arith.constant 0 : index
    %c8_66 = arith.constant 8 : index
    %67 = vector.load %arg8[%c0_65, %c8_66] : memref<8x86xbf16, #tpu.memory_space<vmem>>, vector<8x72xbf16>
    %cst_67 = arith.constant dense<0.000000e+00> : vector<8x72xf32>
    %68 = tpu.matmul %66, %67, %cst_67 {dimension_numbers = #tpu.dot_dimension_numbers<[1], [0], [0], [1], [0, 0, 1, 1], [], []>} : vector<8x8xbf16>, vector<8x72xbf16>, vector<8x72xf32> -> vector<8x72xf32>
    %69 = arith.addf %65, %68 : vector<8x72xf32>
    %c48_68 = arith.constant 48 : index
    %c0_69 = arith.constant 0 : index
    %70 = vector.load %arg4[%c48_68, %c0_69] : memref<72x8xbf16, #tpu.memory_space<vmem>>, vector<8x8xbf16>
    %c0_70 = arith.constant 0 : index
    %c12_71 = arith.constant 12 : index
    %71 = vector.load %arg8[%c0_70, %c12_71] : memref<8x86xbf16, #tpu.memory_space<vmem>>, vector<8x72xbf16>
    %cst_72 = arith.constant dense<0.000000e+00> : vector<8x72xf32>
    %72 = tpu.matmul %70, %71, %cst_72 {dimension_numbers = #tpu.dot_dimension_numbers<[1], [0], [0], [1], [0, 0, 1, 1], [], []>} : vector<8x8xbf16>, vector<8x72xbf16>, vector<8x72xf32> -> vector<8x72xf32>
    %73 = arith.addf %69, %72 : vector<8x72xf32>
    %c56_73 = arith.constant 56 : index
    %c0_74 = arith.constant 0 : index
    %74 = vector.load %arg4[%c56_73, %c0_74] : memref<72x8xbf16, #tpu.memory_space<vmem>>, vector<8x8xbf16>
    %c0_75 = arith.constant 0 : index
    %c13_76 = arith.constant 13 : index
    %75 = vector.load %arg8[%c0_75, %c13_76] : memref<8x86xbf16, #tpu.memory_space<vmem>>, vector<8x72xbf16>
    %cst_77 = arith.constant dense<0.000000e+00> : vector<8x72xf32>
    %76 = tpu.matmul %74, %75, %cst_77 {dimension_numbers = #tpu.dot_dimension_numbers<[1], [0], [0], [1], [0, 0, 1, 1], [], []>} : vector<8x8xbf16>, vector<8x72xbf16>, vector<8x72xf32> -> vector<8x72xf32>
    %77 = arith.addf %73, %76 : vector<8x72xf32>
    %c64_78 = arith.constant 64 : index
    %c0_79 = arith.constant 0 : index
    %78 = vector.load %arg4[%c64_78, %c0_79] : memref<72x8xbf16, #tpu.memory_space<vmem>>, vector<8x8xbf16>
    %c0_80 = arith.constant 0 : index
    %c14_81 = arith.constant 14 : index
    %79 = vector.load %arg8[%c0_80, %c14_81] : memref<8x86xbf16, #tpu.memory_space<vmem>>, vector<8x72xbf16>
    %cst_82 = arith.constant dense<0.000000e+00> : vector<8x72xf32>
    %80 = tpu.matmul %78, %79, %cst_82 {dimension_numbers = #tpu.dot_dimension_numbers<[1], [0], [0], [1], [0, 0, 1, 1], [], []>} : vector<8x8xbf16>, vector<8x72xbf16>, vector<8x72xf32> -> vector<8x72xf32>
    %81 = arith.addf %77, %80 : vector<8x72xf32>
    %c0_83 = arith.constant 0 : index
    %c0_84 = arith.constant 0 : index
    %82 = vector.load %arg5[%c0_83, %c0_84] : memref<8x1xf32, #tpu.memory_space<vmem>>, vector<8x1xf32>
    %83 = vector.broadcast %82 : vector<8x1xf32> to vector<8x72xf32>
    %84 = arith.addf %81, %83 : vector<8x72xf32>
    %c0_85 = arith.constant 0 : index
    %c7_86 = arith.constant 7 : index
    %85 = vector.load %arg1[%c0_85, %c7_86] : memref<8x86xbf16, #tpu.memory_space<vmem>>, vector<8x72xbf16>
    %86 = arith.extf %85 : vector<8x72xbf16> to vector<8x72xf32>
    %87 = arith.addf %84, %86 : vector<8x72xf32>
    %cst_87 = arith.constant 0.000000e+00 : f32
    %88 = vector.broadcast %cst_87 : f32 to vector<8x72xf32>
    %89 = arith.maximumf %87, %88 : vector<8x72xf32>
    %90 = vector.broadcast %0 : vector<1x72xf32> to vector<8x72xf32>
    %91 = arith.mulf %89, %90 : vector<8x72xf32>
    %92 = arith.truncf %91 : vector<8x72xf32> to vector<8x72xbf16>
    %c0_88 = arith.constant 0 : index
    %c0_89 = arith.constant 0 : index
    %93 = vector.load %arg7[%c0_88, %c0_89] : memref<8x72xbf16, #tpu.memory_space<vmem>>, vector<8x72xbf16>
    tpu.vector_store %arg7[%c0_88, %c0_89], %92 {strides = array<i32>} : memref<8x72xbf16, #tpu.memory_space<vmem>>, vector<8x72xbf16>,
    return
  }
  func.func @transform_0(%arg0: i32) -> (i32, i32) {
    %c0_i32 = arith.constant 0 : i32
    %c0_i32_0 = arith.constant 0 : i32
    %c0_i32_1 = arith.constant 0 : i32
    return %c0_i32, %c0_i32_0 : i32, i32
  }
  func.func @transform_1(%arg0: i32) -> (i32, i32) {
    %c0_i32 = arith.constant 0 : i32
    %c0_i32_0 = arith.constant 0 : i32
    %c0_i32_1 = arith.constant 0 : i32
    return %c0_i32, %c0_i32_0 : i32, i32
  }
  func.func @transform_2(%arg0: i32) -> (i32, i32) {
    %c0_i32 = arith.constant 0 : i32
    %c0_i32_0 = arith.constant 0 : i32
    %c0_i32_1 = arith.constant 0 : i32
    return %c0_i32, %c0_i32_0 : i32, i32
  }
  func.func @transform_3(%arg0: i32) -> (i32, i32) {
    %c0_i32 = arith.constant 0 : i32
    %c0_i32_0 = arith.constant 0 : i32
    %c0_i32_1 = arith.constant 0 : i32
    return %c0_i32, %c0_i32_0 : i32, i32
  }
  func.func @transform_4(%arg0: i32) -> (i32, i32) {
    %c0_i32 = arith.constant 0 : i32
    %c0_i32_0 = arith.constant 0 : i32
    %c0_i32_1 = arith.constant 0 : i32
    return %c0_i32, %c0_i32_0 : i32, i32
  }
  func.func @transform_5(%arg0: i32) -> (i32, i32) {
    %c0_i32 = arith.constant 0 : i32
    %c0_i32_0 = arith.constant 0 : i32
    %c0_i32_1 = arith.constant 0 : i32
    return %c0_i32, %c0_i32_0 : i32, i32
  }
  func.func @transform_6(%arg0: i32) -> (i32, i32) {
    %c0_i32 = arith.constant 0 : i32
    %c0_i32_0 = arith.constant 0 : i32
    %c0_i32_1 = arith.constant 0 : i32
    return %c0_i32, %c0_i32_0 : i32, i32
  }
}

module attributes {stable_mosaic.version = 11 : i64} {
  func.func @kernel(%arg0: i32, %arg1: i32, %arg2: memref<32x8xbf16, #tpu.memory_space<vmem>>, %arg3: memref<8x32xbf16, #tpu.memory_space<vmem>>, %arg4: memref<32x1xf32, #tpu.memory_space<vmem>>, %arg5: memref<32x32xbf16, #tpu.memory_space<vmem>>) attributes {dimension_semantics = [#tpu.dimension_semantics<parallel>, #tpu.dimension_semantics<parallel>], iteration_bounds = array<i64: 1, 1>, scalar_prefetch = 0 : i64, scratch_operands = 0 : i64, tpu.core_type = #tpu.core_type<tc>, window_params = [{transform_indices = @transform_0, window_bounds = array<i64: 32, 8>}, {transform_indices = @transform_1, window_bounds = array<i64: 8, 32>}, {transform_indices = @transform_2, window_bounds = array<i64: 32, 1>}, {transform_indices = @transform_3, window_bounds = array<i64: 32, 32>}]} {
    %c0 = arith.constant 0 : index
    %c0_0 = arith.constant 0 : index
    %0 = vector.load %arg2[%c0, %c0_0] : memref<32x8xbf16, #tpu.memory_space<vmem>>, vector<32x8xbf16>
    %c0_1 = arith.constant 0 : index
    %c0_2 = arith.constant 0 : index
    %1 = vector.load %arg3[%c0_1, %c0_2] : memref<8x32xbf16, #tpu.memory_space<vmem>>, vector<8x32xbf16>
    %cst = arith.constant dense<0.000000e+00> : vector<32x32xf32>
    %2 = tpu.matmul %0, %1, %cst {dimension_numbers = #tpu.dot_dimension_numbers<[1], [0], [0], [1], [0, 0, 1, 1], [], []>} : vector<32x8xbf16>, vector<8x32xbf16>, vector<32x32xf32> -> vector<32x32xf32>
    %c0_3 = arith.constant 0 : index
    %c0_4 = arith.constant 0 : index
    %3 = vector.load %arg4[%c0_3, %c0_4] : memref<32x1xf32, #tpu.memory_space<vmem>>, vector<32x1xf32>
    %4 = vector.broadcast %3 : vector<32x1xf32> to vector<32x32xf32>
    %5 = arith.addf %2, %4 : vector<32x32xf32>
    %cst_5 = arith.constant 0.000000e+00 : f32
    %6 = vector.broadcast %cst_5 : f32 to vector<32x32xf32>
    %7 = arith.maximumf %5, %6 : vector<32x32xf32>
    %8 = arith.truncf %7 : vector<32x32xf32> to vector<32x32xbf16>
    %c0_6 = arith.constant 0 : index
    %c0_7 = arith.constant 0 : index
    %9 = vector.load %arg5[%c0_6, %c0_7] : memref<32x32xbf16, #tpu.memory_space<vmem>>, vector<32x32xbf16>
    tpu.vector_store %arg5[%c0_6, %c0_7], %8 {strides = array<i32>} : memref<32x32xbf16, #tpu.memory_space<vmem>>, vector<32x32xbf16>,
    return
  }
  func.func @transform_0(%arg0: i32, %arg1: i32) -> (i32, i32) {
    %c0_i32 = arith.constant 0 : i32
    %c0_i32_0 = arith.constant 0 : i32
    return %arg0, %c0_i32 : i32, i32
  }
  func.func @transform_1(%arg0: i32, %arg1: i32) -> (i32, i32) {
    %c0_i32 = arith.constant 0 : i32
    %c0_i32_0 = arith.constant 0 : i32
    return %c0_i32, %arg1 : i32, i32
  }
  func.func @transform_2(%arg0: i32, %arg1: i32) -> (i32, i32) {
    %c0_i32 = arith.constant 0 : i32
    %c0_i32_0 = arith.constant 0 : i32
    return %arg0, %c0_i32 : i32, i32
  }
  func.func @transform_3(%arg0: i32, %arg1: i32) -> (i32, i32) {
    %c0_i32 = arith.constant 0 : i32
    return %arg0, %arg1 : i32, i32
  }
}

module attributes {stable_mosaic.version = 11 : i64} {
  func.func @kernel(%arg0: i32, %arg1: memref<8x222xbf16, #tpu.memory_space<vmem>>, %arg2: memref<72x8xbf16, #tpu.memory_space<vmem>>, %arg3: memref<8x1xf32, #tpu.memory_space<vmem>>, %arg4: memref<72x8xbf16, #tpu.memory_space<vmem>>, %arg5: memref<8x1xf32, #tpu.memory_space<vmem>>, %arg6: memref<1x200xf32, #tpu.memory_space<vmem>>, %arg7: memref<8x200xbf16, #tpu.memory_space<vmem>>, %arg8: memref<8x222xbf16, #tpu.memory_space<vmem>>) attributes {dimension_semantics = [#tpu.dimension_semantics<arbitrary>], iteration_bounds = array<i64: 1>, scalar_prefetch = 0 : i64, scratch_operands = 1 : i64, tpu.core_type = #tpu.core_type<tc>, window_params = [{pipeline_mode = #tpu.pipeline_mode<synchronous>, transform_indices = @transform_0, window_bounds = array<i64: 8, 222>}, {pipeline_mode = #tpu.pipeline_mode<synchronous>, transform_indices = @transform_1, window_bounds = array<i64: 72, 8>}, {pipeline_mode = #tpu.pipeline_mode<synchronous>, transform_indices = @transform_2, window_bounds = array<i64: 8, 1>}, {pipeline_mode = #tpu.pipeline_mode<synchronous>, transform_indices = @transform_3, window_bounds = array<i64: 72, 8>}, {pipeline_mode = #tpu.pipeline_mode<synchronous>, transform_indices = @transform_4, window_bounds = array<i64: 8, 1>}, {pipeline_mode = #tpu.pipeline_mode<synchronous>, transform_indices = @transform_5, window_bounds = array<i64: 1, 200>}, {pipeline_mode = #tpu.pipeline_mode<synchronous>, transform_indices = @transform_6, window_bounds = array<i64: 8, 200>}]} {
    %c0 = arith.constant 0 : index
    %c0_0 = arith.constant 0 : index
    %0 = vector.load %arg6[%c0, %c0_0] : memref<1x200xf32, #tpu.memory_space<vmem>>, vector<1x200xf32>
    %c0_1 = arith.constant 0 : index
    %c0_2 = arith.constant 0 : index
    %1 = vector.load %arg2[%c0_1, %c0_2] : memref<72x8xbf16, #tpu.memory_space<vmem>>, vector<8x8xbf16>
    %c0_3 = arith.constant 0 : index
    %c0_4 = arith.constant 0 : index
    %2 = vector.load %arg1[%c0_3, %c0_4] : memref<8x222xbf16, #tpu.memory_space<vmem>>, vector<8x200xbf16>
    %cst = arith.constant dense<0.000000e+00> : vector<8x200xf32>
    %3 = tpu.matmul %1, %2, %cst {dimension_numbers = #tpu.dot_dimension_numbers<[1], [0], [0], [1], [0, 0, 1, 1], [], []>} : vector<8x8xbf16>, vector<8x200xbf16>, vector<8x200xf32> -> vector<8x200xf32>
    %c8 = arith.constant 8 : index
    %c0_5 = arith.constant 0 : index
    %4 = vector.load %arg2[%c8, %c0_5] : memref<72x8xbf16, #tpu.memory_space<vmem>>, vector<8x8xbf16>
    %c0_6 = arith.constant 0 : index
    %c1 = arith.constant 1 : index
    %5 = vector.load %arg1[%c0_6, %c1] : memref<8x222xbf16, #tpu.memory_space<vmem>>, vector<8x200xbf16>
    %cst_7 = arith.constant dense<0.000000e+00> : vector<8x200xf32>
    %6 = tpu.matmul %4, %5, %cst_7 {dimension_numbers = #tpu.dot_dimension_numbers<[1], [0], [0], [1], [0, 0, 1, 1], [], []>} : vector<8x8xbf16>, vector<8x200xbf16>, vector<8x200xf32> -> vector<8x200xf32>
    %7 = arith.addf %3, %6 : vector<8x200xf32>
    %c16 = arith.constant 16 : index
    %c0_8 = arith.constant 0 : index
    %8 = vector.load %arg2[%c16, %c0_8] : memref<72x8xbf16, #tpu.memory_space<vmem>>, vector<8x8xbf16>
    %c0_9 = arith.constant 0 : index
    %c2 = arith.constant 2 : index
    %9 = vector.load %arg1[%c0_9, %c2] : memref<8x222xbf16, #tpu.memory_space<vmem>>, vector<8x200xbf16>
    %cst_10 = arith.constant dense<0.000000e+00> : vector<8x200xf32>
    %10 = tpu.matmul %8, %9, %cst_10 {dimension_numbers = #tpu.dot_dimension_numbers<[1], [0], [0], [1], [0, 0, 1, 1], [], []>} : vector<8x8xbf16>, vector<8x200xbf16>, vector<8x200xf32> -> vector<8x200xf32>
    %11 = arith.addf %7, %10 : vector<8x200xf32>
    %c24 = arith.constant 24 : index
    %c0_11 = arith.constant 0 : index
    %12 = vector.load %arg2[%c24, %c0_11] : memref<72x8xbf16, #tpu.memory_space<vmem>>, vector<8x8xbf16>
    %c0_12 = arith.constant 0 : index
    %c10 = arith.constant 10 : index
    %13 = vector.load %arg1[%c0_12, %c10] : memref<8x222xbf16, #tpu.memory_space<vmem>>, vector<8x200xbf16>
    %cst_13 = arith.constant dense<0.000000e+00> : vector<8x200xf32>
    %14 = tpu.matmul %12, %13, %cst_13 {dimension_numbers = #tpu.dot_dimension_numbers<[1], [0], [0], [1], [0, 0, 1, 1], [], []>} : vector<8x8xbf16>, vector<8x200xbf16>, vector<8x200xf32> -> vector<8x200xf32>
    %15 = arith.addf %11, %14 : vector<8x200xf32>
    %c32 = arith.constant 32 : index
    %c0_14 = arith.constant 0 : index
    %16 = vector.load %arg2[%c32, %c0_14] : memref<72x8xbf16, #tpu.memory_space<vmem>>, vector<8x8xbf16>
    %c0_15 = arith.constant 0 : index
    %c11 = arith.constant 11 : index
    %17 = vector.load %arg1[%c0_15, %c11] : memref<8x222xbf16, #tpu.memory_space<vmem>>, vector<8x200xbf16>
    %cst_16 = arith.constant dense<0.000000e+00> : vector<8x200xf32>
    %18 = tpu.matmul %16, %17, %cst_16 {dimension_numbers = #tpu.dot_dimension_numbers<[1], [0], [0], [1], [0, 0, 1, 1], [], []>} : vector<8x8xbf16>, vector<8x200xbf16>, vector<8x200xf32> -> vector<8x200xf32>
    %19 = arith.addf %15, %18 : vector<8x200xf32>
    %c40 = arith.constant 40 : index
    %c0_17 = arith.constant 0 : index
    %20 = vector.load %arg2[%c40, %c0_17] : memref<72x8xbf16, #tpu.memory_space<vmem>>, vector<8x8xbf16>
    %c0_18 = arith.constant 0 : index
    %c12 = arith.constant 12 : index
    %21 = vector.load %arg1[%c0_18, %c12] : memref<8x222xbf16, #tpu.memory_space<vmem>>, vector<8x200xbf16>
    %cst_19 = arith.constant dense<0.000000e+00> : vector<8x200xf32>
    %22 = tpu.matmul %20, %21, %cst_19 {dimension_numbers = #tpu.dot_dimension_numbers<[1], [0], [0], [1], [0, 0, 1, 1], [], []>} : vector<8x8xbf16>, vector<8x200xbf16>, vector<8x200xf32> -> vector<8x200xf32>
    %23 = arith.addf %19, %22 : vector<8x200xf32>
    %c48 = arith.constant 48 : index
    %c0_20 = arith.constant 0 : index
    %24 = vector.load %arg2[%c48, %c0_20] : memref<72x8xbf16, #tpu.memory_space<vmem>>, vector<8x8xbf16>
    %c0_21 = arith.constant 0 : index
    %c20 = arith.constant 20 : index
    %25 = vector.load %arg1[%c0_21, %c20] : memref<8x222xbf16, #tpu.memory_space<vmem>>, vector<8x200xbf16>
    %cst_22 = arith.constant dense<0.000000e+00> : vector<8x200xf32>
    %26 = tpu.matmul %24, %25, %cst_22 {dimension_numbers = #tpu.dot_dimension_numbers<[1], [0], [0], [1], [0, 0, 1, 1], [], []>} : vector<8x8xbf16>, vector<8x200xbf16>, vector<8x200xf32> -> vector<8x200xf32>
    %27 = arith.addf %23, %26 : vector<8x200xf32>
    %c56 = arith.constant 56 : index
    %c0_23 = arith.constant 0 : index
    %28 = vector.load %arg2[%c56, %c0_23] : memref<72x8xbf16, #tpu.memory_space<vmem>>, vector<8x8xbf16>
    %c0_24 = arith.constant 0 : index
    %c21 = arith.constant 21 : index
    %29 = vector.load %arg1[%c0_24, %c21] : memref<8x222xbf16, #tpu.memory_space<vmem>>, vector<8x200xbf16>
    %cst_25 = arith.constant dense<0.000000e+00> : vector<8x200xf32>
    %30 = tpu.matmul %28, %29, %cst_25 {dimension_numbers = #tpu.dot_dimension_numbers<[1], [0], [0], [1], [0, 0, 1, 1], [], []>} : vector<8x8xbf16>, vector<8x200xbf16>, vector<8x200xf32> -> vector<8x200xf32>
    %31 = arith.addf %27, %30 : vector<8x200xf32>
    %c64 = arith.constant 64 : index
    %c0_26 = arith.constant 0 : index
    %32 = vector.load %arg2[%c64, %c0_26] : memref<72x8xbf16, #tpu.memory_space<vmem>>, vector<8x8xbf16>
    %c0_27 = arith.constant 0 : index
    %c22 = arith.constant 22 : index
    %33 = vector.load %arg1[%c0_27, %c22] : memref<8x222xbf16, #tpu.memory_space<vmem>>, vector<8x200xbf16>
    %cst_28 = arith.constant dense<0.000000e+00> : vector<8x200xf32>
    %34 = tpu.matmul %32, %33, %cst_28 {dimension_numbers = #tpu.dot_dimension_numbers<[1], [0], [0], [1], [0, 0, 1, 1], [], []>} : vector<8x8xbf16>, vector<8x200xbf16>, vector<8x200xf32> -> vector<8x200xf32>
    %35 = arith.addf %31, %34 : vector<8x200xf32>
    %c0_29 = arith.constant 0 : index
    %c0_30 = arith.constant 0 : index
    %36 = vector.load %arg3[%c0_29, %c0_30] : memref<8x1xf32, #tpu.memory_space<vmem>>, vector<8x1xf32>
    %37 = vector.broadcast %36 : vector<8x1xf32> to vector<8x200xf32>
    %38 = arith.addf %35, %37 : vector<8x200xf32>
    %cst_31 = arith.constant 0.000000e+00 : f32
    %39 = vector.broadcast %cst_31 : f32 to vector<8x200xf32>
    %40 = arith.maximumf %38, %39 : vector<8x200xf32>
    %41 = vector.broadcast %0 : vector<1x200xf32> to vector<8x200xf32>
    %42 = arith.mulf %40, %41 : vector<8x200xf32>
    %cst_32 = arith.constant 0.000000e+00 : bf16
    %43 = vector.broadcast %cst_32 : bf16 to vector<8x222xbf16>
    %c0_33 = arith.constant 0 : index
    %c0_34 = arith.constant 0 : index
    %44 = vector.load %arg8[%c0_33, %c0_34] : memref<8x222xbf16, #tpu.memory_space<vmem>>, vector<8x222xbf16>
    tpu.vector_store %arg8[%c0_33, %c0_34], %43 {strides = array<i32>} : memref<8x222xbf16, #tpu.memory_space<vmem>>, vector<8x222xbf16>,
    %45 = arith.truncf %42 : vector<8x200xf32> to vector<8x200xbf16>
    %c0_35 = arith.constant 0 : index
    %c11_36 = arith.constant 11 : index
    %46 = vector.load %arg8[%c0_35, %c11_36] : memref<8x222xbf16, #tpu.memory_space<vmem>>, vector<8x200xbf16>
    tpu.vector_store %arg8[%c0_35, %c11_36], %45 {strides = array<i32>} : memref<8x222xbf16, #tpu.memory_space<vmem>>, vector<8x200xbf16>,
    %c0_37 = arith.constant 0 : index
    %c0_38 = arith.constant 0 : index
    %47 = vector.load %arg4[%c0_37, %c0_38] : memref<72x8xbf16, #tpu.memory_space<vmem>>, vector<8x8xbf16>
    %c0_39 = arith.constant 0 : index
    %c0_40 = arith.constant 0 : index
    %48 = vector.load %arg8[%c0_39, %c0_40] : memref<8x222xbf16, #tpu.memory_space<vmem>>, vector<8x200xbf16>
    %cst_41 = arith.constant dense<0.000000e+00> : vector<8x200xf32>
    %49 = tpu.matmul %47, %48, %cst_41 {dimension_numbers = #tpu.dot_dimension_numbers<[1], [0], [0], [1], [0, 0, 1, 1], [], []>} : vector<8x8xbf16>, vector<8x200xbf16>, vector<8x200xf32> -> vector<8x200xf32>
    %c8_42 = arith.constant 8 : index
    %c0_43 = arith.constant 0 : index
    %50 = vector.load %arg4[%c8_42, %c0_43] : memref<72x8xbf16, #tpu.memory_space<vmem>>, vector<8x8xbf16>
    %c0_44 = arith.constant 0 : index
    %c1_45 = arith.constant 1 : index
    %51 = vector.load %arg8[%c0_44, %c1_45] : memref<8x222xbf16, #tpu.memory_space<vmem>>, vector<8x200xbf16>
    %cst_46 = arith.constant dense<0.000000e+00> : vector<8x200xf32>
    %52 = tpu.matmul %50, %51, %cst_46 {dimension_numbers = #tpu.dot_dimension_numbers<[1], [0], [0], [1], [0, 0, 1, 1], [], []>} : vector<8x8xbf16>, vector<8x200xbf16>, vector<8x200xf32> -> vector<8x200xf32>
    %53 = arith.addf %49, %52 : vector<8x200xf32>
    %c16_47 = arith.constant 16 : index
    %c0_48 = arith.constant 0 : index
    %54 = vector.load %arg4[%c16_47, %c0_48] : memref<72x8xbf16, #tpu.memory_space<vmem>>, vector<8x8xbf16>
    %c0_49 = arith.constant 0 : index
    %c2_50 = arith.constant 2 : index
    %55 = vector.load %arg8[%c0_49, %c2_50] : memref<8x222xbf16, #tpu.memory_space<vmem>>, vector<8x200xbf16>
    %cst_51 = arith.constant dense<0.000000e+00> : vector<8x200xf32>
    %56 = tpu.matmul %54, %55, %cst_51 {dimension_numbers = #tpu.dot_dimension_numbers<[1], [0], [0], [1], [0, 0, 1, 1], [], []>} : vector<8x8xbf16>, vector<8x200xbf16>, vector<8x200xf32> -> vector<8x200xf32>
    %57 = arith.addf %53, %56 : vector<8x200xf32>
    %c24_52 = arith.constant 24 : index
    %c0_53 = arith.constant 0 : index
    %58 = vector.load %arg4[%c24_52, %c0_53] : memref<72x8xbf16, #tpu.memory_space<vmem>>, vector<8x8xbf16>
    %c0_54 = arith.constant 0 : index
    %c10_55 = arith.constant 10 : index
    %59 = vector.load %arg8[%c0_54, %c10_55] : memref<8x222xbf16, #tpu.memory_space<vmem>>, vector<8x200xbf16>
    %cst_56 = arith.constant dense<0.000000e+00> : vector<8x200xf32>
    %60 = tpu.matmul %58, %59, %cst_56 {dimension_numbers = #tpu.dot_dimension_numbers<[1], [0], [0], [1], [0, 0, 1, 1], [], []>} : vector<8x8xbf16>, vector<8x200xbf16>, vector<8x200xf32> -> vector<8x200xf32>
    %61 = arith.addf %57, %60 : vector<8x200xf32>
    %c32_57 = arith.constant 32 : index
    %c0_58 = arith.constant 0 : index
    %62 = vector.load %arg4[%c32_57, %c0_58] : memref<72x8xbf16, #tpu.memory_space<vmem>>, vector<8x8xbf16>
    %c0_59 = arith.constant 0 : index
    %c11_60 = arith.constant 11 : index
    %63 = vector.load %arg8[%c0_59, %c11_60] : memref<8x222xbf16, #tpu.memory_space<vmem>>, vector<8x200xbf16>
    %cst_61 = arith.constant dense<0.000000e+00> : vector<8x200xf32>
    %64 = tpu.matmul %62, %63, %cst_61 {dimension_numbers = #tpu.dot_dimension_numbers<[1], [0], [0], [1], [0, 0, 1, 1], [], []>} : vector<8x8xbf16>, vector<8x200xbf16>, vector<8x200xf32> -> vector<8x200xf32>
    %65 = arith.addf %61, %64 : vector<8x200xf32>
    %c40_62 = arith.constant 40 : index
    %c0_63 = arith.constant 0 : index
    %66 = vector.load %arg4[%c40_62, %c0_63] : memref<72x8xbf16, #tpu.memory_space<vmem>>, vector<8x8xbf16>
    %c0_64 = arith.constant 0 : index
    %c12_65 = arith.constant 12 : index
    %67 = vector.load %arg8[%c0_64, %c12_65] : memref<8x222xbf16, #tpu.memory_space<vmem>>, vector<8x200xbf16>
    %cst_66 = arith.constant dense<0.000000e+00> : vector<8x200xf32>
    %68 = tpu.matmul %66, %67, %cst_66 {dimension_numbers = #tpu.dot_dimension_numbers<[1], [0], [0], [1], [0, 0, 1, 1], [], []>} : vector<8x8xbf16>, vector<8x200xbf16>, vector<8x200xf32> -> vector<8x200xf32>
    %69 = arith.addf %65, %68 : vector<8x200xf32>
    %c48_67 = arith.constant 48 : index
    %c0_68 = arith.constant 0 : index
    %70 = vector.load %arg4[%c48_67, %c0_68] : memref<72x8xbf16, #tpu.memory_space<vmem>>, vector<8x8xbf16>
    %c0_69 = arith.constant 0 : index
    %c20_70 = arith.constant 20 : index
    %71 = vector.load %arg8[%c0_69, %c20_70] : memref<8x222xbf16, #tpu.memory_space<vmem>>, vector<8x200xbf16>
    %cst_71 = arith.constant dense<0.000000e+00> : vector<8x200xf32>
    %72 = tpu.matmul %70, %71, %cst_71 {dimension_numbers = #tpu.dot_dimension_numbers<[1], [0], [0], [1], [0, 0, 1, 1], [], []>} : vector<8x8xbf16>, vector<8x200xbf16>, vector<8x200xf32> -> vector<8x200xf32>
    %73 = arith.addf %69, %72 : vector<8x200xf32>
    %c56_72 = arith.constant 56 : index
    %c0_73 = arith.constant 0 : index
    %74 = vector.load %arg4[%c56_72, %c0_73] : memref<72x8xbf16, #tpu.memory_space<vmem>>, vector<8x8xbf16>
    %c0_74 = arith.constant 0 : index
    %c21_75 = arith.constant 21 : index
    %75 = vector.load %arg8[%c0_74, %c21_75] : memref<8x222xbf16, #tpu.memory_space<vmem>>, vector<8x200xbf16>
    %cst_76 = arith.constant dense<0.000000e+00> : vector<8x200xf32>
    %76 = tpu.matmul %74, %75, %cst_76 {dimension_numbers = #tpu.dot_dimension_numbers<[1], [0], [0], [1], [0, 0, 1, 1], [], []>} : vector<8x8xbf16>, vector<8x200xbf16>, vector<8x200xf32> -> vector<8x200xf32>
    %77 = arith.addf %73, %76 : vector<8x200xf32>
    %c64_77 = arith.constant 64 : index
    %c0_78 = arith.constant 0 : index
    %78 = vector.load %arg4[%c64_77, %c0_78] : memref<72x8xbf16, #tpu.memory_space<vmem>>, vector<8x8xbf16>
    %c0_79 = arith.constant 0 : index
    %c22_80 = arith.constant 22 : index
    %79 = vector.load %arg8[%c0_79, %c22_80] : memref<8x222xbf16, #tpu.memory_space<vmem>>, vector<8x200xbf16>
    %cst_81 = arith.constant dense<0.000000e+00> : vector<8x200xf32>
    %80 = tpu.matmul %78, %79, %cst_81 {dimension_numbers = #tpu.dot_dimension_numbers<[1], [0], [0], [1], [0, 0, 1, 1], [], []>} : vector<8x8xbf16>, vector<8x200xbf16>, vector<8x200xf32> -> vector<8x200xf32>
    %81 = arith.addf %77, %80 : vector<8x200xf32>
    %c0_82 = arith.constant 0 : index
    %c0_83 = arith.constant 0 : index
    %82 = vector.load %arg5[%c0_82, %c0_83] : memref<8x1xf32, #tpu.memory_space<vmem>>, vector<8x1xf32>
    %83 = vector.broadcast %82 : vector<8x1xf32> to vector<8x200xf32>
    %84 = arith.addf %81, %83 : vector<8x200xf32>
    %c0_84 = arith.constant 0 : index
    %c11_85 = arith.constant 11 : index
    %85 = vector.load %arg1[%c0_84, %c11_85] : memref<8x222xbf16, #tpu.memory_space<vmem>>, vector<8x200xbf16>
    %86 = arith.extf %85 : vector<8x200xbf16> to vector<8x200xf32>
    %87 = arith.addf %84, %86 : vector<8x200xf32>
    %cst_86 = arith.constant 0.000000e+00 : f32
    %88 = vector.broadcast %cst_86 : f32 to vector<8x200xf32>
    %89 = arith.maximumf %87, %88 : vector<8x200xf32>
    %90 = vector.broadcast %0 : vector<1x200xf32> to vector<8x200xf32>
    %91 = arith.mulf %89, %90 : vector<8x200xf32>
    %92 = arith.truncf %91 : vector<8x200xf32> to vector<8x200xbf16>
    %c0_87 = arith.constant 0 : index
    %c0_88 = arith.constant 0 : index
    %93 = vector.load %arg7[%c0_87, %c0_88] : memref<8x200xbf16, #tpu.memory_space<vmem>>, vector<8x200xbf16>
    tpu.vector_store %arg7[%c0_87, %c0_88], %92 {strides = array<i32>} : memref<8x200xbf16, #tpu.memory_space<vmem>>, vector<8x200xbf16>,
    return
  }
  func.func @transform_0(%arg0: i32) -> (i32, i32) {
    %c0_i32 = arith.constant 0 : i32
    %c0_i32_0 = arith.constant 0 : i32
    %c0_i32_1 = arith.constant 0 : i32
    return %c0_i32, %c0_i32_0 : i32, i32
  }
  func.func @transform_1(%arg0: i32) -> (i32, i32) {
    %c0_i32 = arith.constant 0 : i32
    %c0_i32_0 = arith.constant 0 : i32
    %c0_i32_1 = arith.constant 0 : i32
    return %c0_i32, %c0_i32_0 : i32, i32
  }
  func.func @transform_2(%arg0: i32) -> (i32, i32) {
    %c0_i32 = arith.constant 0 : i32
    %c0_i32_0 = arith.constant 0 : i32
    %c0_i32_1 = arith.constant 0 : i32
    return %c0_i32, %c0_i32_0 : i32, i32
  }
  func.func @transform_3(%arg0: i32) -> (i32, i32) {
    %c0_i32 = arith.constant 0 : i32
    %c0_i32_0 = arith.constant 0 : i32
    %c0_i32_1 = arith.constant 0 : i32
    return %c0_i32, %c0_i32_0 : i32, i32
  }
  func.func @transform_4(%arg0: i32) -> (i32, i32) {
    %c0_i32 = arith.constant 0 : i32
    %c0_i32_0 = arith.constant 0 : i32
    %c0_i32_1 = arith.constant 0 : i32
    return %c0_i32, %c0_i32_0 : i32, i32
  }
  func.func @transform_5(%arg0: i32) -> (i32, i32) {
    %c0_i32 = arith.constant 0 : i32
    %c0_i32_0 = arith.constant 0 : i32
    %c0_i32_1 = arith.constant 0 : i32
    return %c0_i32, %c0_i32_0 : i32, i32
  }
  func.func @transform_6(%arg0: i32) -> (i32, i32) {
    %c0_i32 = arith.constant 0 : i32
    %c0_i32_0 = arith.constant 0 : i32
    %c0_i32_1 = arith.constant 0 : i32
    return %c0_i32, %c0_i32_0 : i32, i32
  }
}

module attributes {stable_mosaic.version = 11 : i64} {
  func.func @kernel(%arg0: i32, %arg1: memref<8x394xbf16, #tpu.memory_space<vmem>>, %arg2: memref<128x8xbf16, #tpu.memory_space<vmem>>, %arg3: memref<8x1xf32, #tpu.memory_space<vmem>>, %arg4: memref<8x338xf32, #tpu.memory_space<vmem>>) attributes {dimension_semantics = [#tpu.dimension_semantics<arbitrary>], iteration_bounds = array<i64: 1>, scalar_prefetch = 0 : i64, scratch_operands = 0 : i64, tpu.core_type = #tpu.core_type<tc>, window_params = [{pipeline_mode = #tpu.pipeline_mode<synchronous>, transform_indices = @transform_0, window_bounds = array<i64: 8, 394>}, {pipeline_mode = #tpu.pipeline_mode<synchronous>, transform_indices = @transform_1, window_bounds = array<i64: 128, 8>}, {pipeline_mode = #tpu.pipeline_mode<synchronous>, transform_indices = @transform_2, window_bounds = array<i64: 8, 1>}, {pipeline_mode = #tpu.pipeline_mode<synchronous>, transform_indices = @transform_3, window_bounds = array<i64: 8, 338>}]} {
    %c0 = arith.constant 0 : index
    %c0_0 = arith.constant 0 : index
    %0 = vector.load %arg2[%c0, %c0_0] : memref<128x8xbf16, #tpu.memory_space<vmem>>, vector<8x8xbf16>
    %c0_1 = arith.constant 0 : index
    %c14 = arith.constant 14 : index
    %1 = vector.load %arg1[%c0_1, %c14] : memref<8x394xbf16, #tpu.memory_space<vmem>>, vector<8x338xbf16>
    %cst = arith.constant dense<0.000000e+00> : vector<8x338xf32>
    %2 = tpu.matmul %0, %1, %cst {dimension_numbers = #tpu.dot_dimension_numbers<[1], [0], [0], [1], [0, 0, 1, 1], [], []>} : vector<8x8xbf16>, vector<8x338xbf16>, vector<8x338xf32> -> vector<8x338xf32>
    %c8 = arith.constant 8 : index
    %c0_2 = arith.constant 0 : index
    %3 = vector.load %arg2[%c8, %c0_2] : memref<128x8xbf16, #tpu.memory_space<vmem>>, vector<8x8xbf16>
    %c0_3 = arith.constant 0 : index
    %c15 = arith.constant 15 : index
    %4 = vector.load %arg1[%c0_3, %c15] : memref<8x394xbf16, #tpu.memory_space<vmem>>, vector<8x338xbf16>
    %cst_4 = arith.constant dense<0.000000e+00> : vector<8x338xf32>
    %5 = tpu.matmul %3, %4, %cst_4 {dimension_numbers = #tpu.dot_dimension_numbers<[1], [0], [0], [1], [0, 0, 1, 1], [], []>} : vector<8x8xbf16>, vector<8x338xbf16>, vector<8x338xf32> -> vector<8x338xf32>
    %6 = arith.addf %2, %5 : vector<8x338xf32>
    %c16 = arith.constant 16 : index
    %c0_5 = arith.constant 0 : index
    %7 = vector.load %arg2[%c16, %c0_5] : memref<128x8xbf16, #tpu.memory_space<vmem>>, vector<8x8xbf16>
    %c0_6 = arith.constant 0 : index
    %c16_7 = arith.constant 16 : index
    %8 = vector.load %arg1[%c0_6, %c16_7] : memref<8x394xbf16, #tpu.memory_space<vmem>>, vector<8x338xbf16>
    %cst_8 = arith.constant dense<0.000000e+00> : vector<8x338xf32>
    %9 = tpu.matmul %7, %8, %cst_8 {dimension_numbers = #tpu.dot_dimension_numbers<[1], [0], [0], [1], [0, 0, 1, 1], [], []>} : vector<8x8xbf16>, vector<8x338xbf16>, vector<8x338xf32> -> vector<8x338xf32>
    %10 = arith.addf %6, %9 : vector<8x338xf32>
    %c24 = arith.constant 24 : index
    %c0_9 = arith.constant 0 : index
    %11 = vector.load %arg2[%c24, %c0_9] : memref<128x8xbf16, #tpu.memory_space<vmem>>, vector<8x8xbf16>
    %c0_10 = arith.constant 0 : index
    %c17 = arith.constant 17 : index
    %12 = vector.load %arg1[%c0_10, %c17] : memref<8x394xbf16, #tpu.memory_space<vmem>>, vector<8x338xbf16>
    %cst_11 = arith.constant dense<0.000000e+00> : vector<8x338xf32>
    %13 = tpu.matmul %11, %12, %cst_11 {dimension_numbers = #tpu.dot_dimension_numbers<[1], [0], [0], [1], [0, 0, 1, 1], [], []>} : vector<8x8xbf16>, vector<8x338xbf16>, vector<8x338xf32> -> vector<8x338xf32>
    %14 = arith.addf %10, %13 : vector<8x338xf32>
    %c32 = arith.constant 32 : index
    %c0_12 = arith.constant 0 : index
    %15 = vector.load %arg2[%c32, %c0_12] : memref<128x8xbf16, #tpu.memory_space<vmem>>, vector<8x8xbf16>
    %c0_13 = arith.constant 0 : index
    %c27 = arith.constant 27 : index
    %16 = vector.load %arg1[%c0_13, %c27] : memref<8x394xbf16, #tpu.memory_space<vmem>>, vector<8x338xbf16>
    %cst_14 = arith.constant dense<0.000000e+00> : vector<8x338xf32>
    %17 = tpu.matmul %15, %16, %cst_14 {dimension_numbers = #tpu.dot_dimension_numbers<[1], [0], [0], [1], [0, 0, 1, 1], [], []>} : vector<8x8xbf16>, vector<8x338xbf16>, vector<8x338xf32> -> vector<8x338xf32>
    %18 = arith.addf %14, %17 : vector<8x338xf32>
    %c40 = arith.constant 40 : index
    %c0_15 = arith.constant 0 : index
    %19 = vector.load %arg2[%c40, %c0_15] : memref<128x8xbf16, #tpu.memory_space<vmem>>, vector<8x8xbf16>
    %c0_16 = arith.constant 0 : index
    %c28 = arith.constant 28 : index
    %20 = vector.load %arg1[%c0_16, %c28] : memref<8x394xbf16, #tpu.memory_space<vmem>>, vector<8x338xbf16>
    %cst_17 = arith.constant dense<0.000000e+00> : vector<8x338xf32>
    %21 = tpu.matmul %19, %20, %cst_17 {dimension_numbers = #tpu.dot_dimension_numbers<[1], [0], [0], [1], [0, 0, 1, 1], [], []>} : vector<8x8xbf16>, vector<8x338xbf16>, vector<8x338xf32> -> vector<8x338xf32>
    %22 = arith.addf %18, %21 : vector<8x338xf32>
    %c48 = arith.constant 48 : index
    %c0_18 = arith.constant 0 : index
    %23 = vector.load %arg2[%c48, %c0_18] : memref<128x8xbf16, #tpu.memory_space<vmem>>, vector<8x8xbf16>
    %c0_19 = arith.constant 0 : index
    %c29 = arith.constant 29 : index
    %24 = vector.load %arg1[%c0_19, %c29] : memref<8x394xbf16, #tpu.memory_space<vmem>>, vector<8x338xbf16>
    %cst_20 = arith.constant dense<0.000000e+00> : vector<8x338xf32>
    %25 = tpu.matmul %23, %24, %cst_20 {dimension_numbers = #tpu.dot_dimension_numbers<[1], [0], [0], [1], [0, 0, 1, 1], [], []>} : vector<8x8xbf16>, vector<8x338xbf16>, vector<8x338xf32> -> vector<8x338xf32>
    %26 = arith.addf %22, %25 : vector<8x338xf32>
    %c56 = arith.constant 56 : index
    %c0_21 = arith.constant 0 : index
    %27 = vector.load %arg2[%c56, %c0_21] : memref<128x8xbf16, #tpu.memory_space<vmem>>, vector<8x8xbf16>
    %c0_22 = arith.constant 0 : index
    %c30 = arith.constant 30 : index
    %28 = vector.load %arg1[%c0_22, %c30] : memref<8x394xbf16, #tpu.memory_space<vmem>>, vector<8x338xbf16>
    %cst_23 = arith.constant dense<0.000000e+00> : vector<8x338xf32>
    %29 = tpu.matmul %27, %28, %cst_23 {dimension_numbers = #tpu.dot_dimension_numbers<[1], [0], [0], [1], [0, 0, 1, 1], [], []>} : vector<8x8xbf16>, vector<8x338xbf16>, vector<8x338xf32> -> vector<8x338xf32>
    %30 = arith.addf %26, %29 : vector<8x338xf32>
    %c64 = arith.constant 64 : index
    %c0_24 = arith.constant 0 : index
    %31 = vector.load %arg2[%c64, %c0_24] : memref<128x8xbf16, #tpu.memory_space<vmem>>, vector<8x8xbf16>
    %c0_25 = arith.constant 0 : index
    %c40_26 = arith.constant 40 : index
    %32 = vector.load %arg1[%c0_25, %c40_26] : memref<8x394xbf16, #tpu.memory_space<vmem>>, vector<8x338xbf16>
    %cst_27 = arith.constant dense<0.000000e+00> : vector<8x338xf32>
    %33 = tpu.matmul %31, %32, %cst_27 {dimension_numbers = #tpu.dot_dimension_numbers<[1], [0], [0], [1], [0, 0, 1, 1], [], []>} : vector<8x8xbf16>, vector<8x338xbf16>, vector<8x338xf32> -> vector<8x338xf32>
    %34 = arith.addf %30, %33 : vector<8x338xf32>
    %c72 = arith.constant 72 : index
    %c0_28 = arith.constant 0 : index
    %35 = vector.load %arg2[%c72, %c0_28] : memref<128x8xbf16, #tpu.memory_space<vmem>>, vector<8x8xbf16>
    %c0_29 = arith.constant 0 : index
    %c41 = arith.constant 41 : index
    %36 = vector.load %arg1[%c0_29, %c41] : memref<8x394xbf16, #tpu.memory_space<vmem>>, vector<8x338xbf16>
    %cst_30 = arith.constant dense<0.000000e+00> : vector<8x338xf32>
    %37 = tpu.matmul %35, %36, %cst_30 {dimension_numbers = #tpu.dot_dimension_numbers<[1], [0], [0], [1], [0, 0, 1, 1], [], []>} : vector<8x8xbf16>, vector<8x338xbf16>, vector<8x338xf32> -> vector<8x338xf32>
    %38 = arith.addf %34, %37 : vector<8x338xf32>
    %c80 = arith.constant 80 : index
    %c0_31 = arith.constant 0 : index
    %39 = vector.load %arg2[%c80, %c0_31] : memref<128x8xbf16, #tpu.memory_space<vmem>>, vector<8x8xbf16>
    %c0_32 = arith.constant 0 : index
    %c42 = arith.constant 42 : index
    %40 = vector.load %arg1[%c0_32, %c42] : memref<8x394xbf16, #tpu.memory_space<vmem>>, vector<8x338xbf16>
    %cst_33 = arith.constant dense<0.000000e+00> : vector<8x338xf32>
    %41 = tpu.matmul %39, %40, %cst_33 {dimension_numbers = #tpu.dot_dimension_numbers<[1], [0], [0], [1], [0, 0, 1, 1], [], []>} : vector<8x8xbf16>, vector<8x338xbf16>, vector<8x338xf32> -> vector<8x338xf32>
    %42 = arith.addf %38, %41 : vector<8x338xf32>
    %c88 = arith.constant 88 : index
    %c0_34 = arith.constant 0 : index
    %43 = vector.load %arg2[%c88, %c0_34] : memref<128x8xbf16, #tpu.memory_space<vmem>>, vector<8x8xbf16>
    %c0_35 = arith.constant 0 : index
    %c43 = arith.constant 43 : index
    %44 = vector.load %arg1[%c0_35, %c43] : memref<8x394xbf16, #tpu.memory_space<vmem>>, vector<8x338xbf16>
    %cst_36 = arith.constant dense<0.000000e+00> : vector<8x338xf32>
    %45 = tpu.matmul %43, %44, %cst_36 {dimension_numbers = #tpu.dot_dimension_numbers<[1], [0], [0], [1], [0, 0, 1, 1], [], []>} : vector<8x8xbf16>, vector<8x338xbf16>, vector<8x338xf32> -> vector<8x338xf32>
    %46 = arith.addf %42, %45 : vector<8x338xf32>
    %c96 = arith.constant 96 : index
    %c0_37 = arith.constant 0 : index
    %47 = vector.load %arg2[%c96, %c0_37] : memref<128x8xbf16, #tpu.memory_space<vmem>>, vector<8x8xbf16>
    %c0_38 = arith.constant 0 : index
    %c53 = arith.constant 53 : index
    %48 = vector.load %arg1[%c0_38, %c53] : memref<8x394xbf16, #tpu.memory_space<vmem>>, vector<8x338xbf16>
    %cst_39 = arith.constant dense<0.000000e+00> : vector<8x338xf32>
    %49 = tpu.matmul %47, %48, %cst_39 {dimension_numbers = #tpu.dot_dimension_numbers<[1], [0], [0], [1], [0, 0, 1, 1], [], []>} : vector<8x8xbf16>, vector<8x338xbf16>, vector<8x338xf32> -> vector<8x338xf32>
    %50 = arith.addf %46, %49 : vector<8x338xf32>
    %c104 = arith.constant 104 : index
    %c0_40 = arith.constant 0 : index
    %51 = vector.load %arg2[%c104, %c0_40] : memref<128x8xbf16, #tpu.memory_space<vmem>>, vector<8x8xbf16>
    %c0_41 = arith.constant 0 : index
    %c54 = arith.constant 54 : index
    %52 = vector.load %arg1[%c0_41, %c54] : memref<8x394xbf16, #tpu.memory_space<vmem>>, vector<8x338xbf16>
    %cst_42 = arith.constant dense<0.000000e+00> : vector<8x338xf32>
    %53 = tpu.matmul %51, %52, %cst_42 {dimension_numbers = #tpu.dot_dimension_numbers<[1], [0], [0], [1], [0, 0, 1, 1], [], []>} : vector<8x8xbf16>, vector<8x338xbf16>, vector<8x338xf32> -> vector<8x338xf32>
    %54 = arith.addf %50, %53 : vector<8x338xf32>
    %c112 = arith.constant 112 : index
    %c0_43 = arith.constant 0 : index
    %55 = vector.load %arg2[%c112, %c0_43] : memref<128x8xbf16, #tpu.memory_space<vmem>>, vector<8x8xbf16>
    %c0_44 = arith.constant 0 : index
    %c55 = arith.constant 55 : index
    %56 = vector.load %arg1[%c0_44, %c55] : memref<8x394xbf16, #tpu.memory_space<vmem>>, vector<8x338xbf16>
    %cst_45 = arith.constant dense<0.000000e+00> : vector<8x338xf32>
    %57 = tpu.matmul %55, %56, %cst_45 {dimension_numbers = #tpu.dot_dimension_numbers<[1], [0], [0], [1], [0, 0, 1, 1], [], []>} : vector<8x8xbf16>, vector<8x338xbf16>, vector<8x338xf32> -> vector<8x338xf32>
    %58 = arith.addf %54, %57 : vector<8x338xf32>
    %c120 = arith.constant 120 : index
    %c0_46 = arith.constant 0 : index
    %59 = vector.load %arg2[%c120, %c0_46] : memref<128x8xbf16, #tpu.memory_space<vmem>>, vector<8x8xbf16>
    %c0_47 = arith.constant 0 : index
    %c56_48 = arith.constant 56 : index
    %60 = vector.load %arg1[%c0_47, %c56_48] : memref<8x394xbf16, #tpu.memory_space<vmem>>, vector<8x338xbf16>
    %cst_49 = arith.constant dense<0.000000e+00> : vector<8x338xf32>
    %61 = tpu.matmul %59, %60, %cst_49 {dimension_numbers = #tpu.dot_dimension_numbers<[1], [0], [0], [1], [0, 0, 1, 1], [], []>} : vector<8x8xbf16>, vector<8x338xbf16>, vector<8x338xf32> -> vector<8x338xf32>
    %62 = arith.addf %58, %61 : vector<8x338xf32>
    %c0_50 = arith.constant 0 : index
    %c0_51 = arith.constant 0 : index
    %63 = vector.load %arg3[%c0_50, %c0_51] : memref<8x1xf32, #tpu.memory_space<vmem>>, vector<8x1xf32>
    %64 = vector.broadcast %63 : vector<8x1xf32> to vector<8x338xf32>
    %65 = arith.addf %62, %64 : vector<8x338xf32>
    %c0_52 = arith.constant 0 : index
    %c0_53 = arith.constant 0 : index
    %66 = vector.load %arg4[%c0_52, %c0_53] : memref<8x338xf32, #tpu.memory_space<vmem>>, vector<8x338xf32>
    tpu.vector_store %arg4[%c0_52, %c0_53], %65 {strides = array<i32>} : memref<8x338xf32, #tpu.memory_space<vmem>>, vector<8x338xf32>,
    return
  }
  func.func @transform_0(%arg0: i32) -> (i32, i32) {
    %c0_i32 = arith.constant 0 : i32
    %c0_i32_0 = arith.constant 0 : i32
    %c0_i32_1 = arith.constant 0 : i32
    return %c0_i32, %c0_i32_0 : i32, i32
  }
  func.func @transform_1(%arg0: i32) -> (i32, i32) {
    %c0_i32 = arith.constant 0 : i32
    %c0_i32_0 = arith.constant 0 : i32
    %c0_i32_1 = arith.constant 0 : i32
    return %c0_i32, %c0_i32_0 : i32, i32
  }
  func.func @transform_2(%arg0: i32) -> (i32, i32) {
    %c0_i32 = arith.constant 0 : i32
    %c0_i32_0 = arith.constant 0 : i32
    %c0_i32_1 = arith.constant 0 : i32
    return %c0_i32, %c0_i32_0 : i32, i32
  }
  func.func @transform_3(%arg0: i32) -> (i32, i32) {
    %c0_i32 = arith.constant 0 : i32
    %c0_i32_0 = arith.constant 0 : i32
    %c0_i32_1 = arith.constant 0 : i32
    return %c0_i32, %c0_i32_0 : i32, i32
  }
}

</mosaic_0001>

<bundles_post_ra>
// kernel: decoder_forward.5
= control target key start
LH: loop header
LB: loop body
LE: loop exit
PB: predicated region body
PF: predicated region fallthrough
CT: control target
= control target key end

     0   :  { %v121_v0 = vmov 0.0   ;;  %vm122_vm0 = vmmov 0   ;;  %vm37_vm1 = vcmask 130048   ;;  %s155_s1 = inlined_call_operand.vmem [shape: bf16[16,128], index: 1, kind: input, shape index: {}]   ;;  %s156_s0 = inlined_call_operand.vmem [shape: bf16[16,16], index: 0, kind: input, shape index: {}]   ;;  %s157_s2 = inlined_call_operand.vmem [shape: f32[1,128], index: 2, kind: input, shape index: {}]   ;;  %s158_s3 = inlined_call_operand.vmem [shape: bf16[16,128], index: 3, kind: output, shape index: {}]  }
   0x1   :  { %111 = vmatprep.subr.bf16.mxu0 %v121_v0  ;;  %v119_v1 = vld [vmem:[%s155_s1] sm:$0xff]   ;;  %113 = vmatprep.mubr.msk.bf16.mxu0 %vm122_vm0, %v121_v0 }
   0x2   :  { %v120_v2 = vld [vmem:[%s156_s0] sm:$0xff]   ;;  %112 = vmatpush3.bf16.msra.mxu0 %v119_v1 }
   0x3   :  { %v96_v4 = vld [vmem:[%s157_s2] ss:$0 sm:$0xff] }
   0x5   :  { %114 = vmatmul.mubr.msk.bf16.vlgmr.msra.gmra.mxu0 %vm37_vm1, %v120_v2 }
  0xc5   :  { %v75_v3 = vpop.f32.mrf.mxu0 }
  0xc6   :  { %v76_v7 = vadd.f32 %v96_v4, %v75_v3 }
  0xc7   :  { %v115_v5 = vpop.f32.mrf.mxu0 }
  0xc9   :  { %v78_v6 = vpop.f32.mrf.mxu0 }
  0xca   :  { %v79_v8 = vadd.f32 %v96_v4, %v78_v6 }
  0xcb   :  { %v116_v9 = vpop.f32.mrf.mxu0 }
  0xcc   :  { %v107_v10 = vpack.c.bf16 %v79_v8, %v76_v7 }
  0xce   :  { %108 = vst [vmem:[%s158_s3] sm:$0xff] %v107_v10  }

// kernel: decoder_forward.6
= control target key start
LH: loop header
LB: loop body
LE: loop exit
PB: predicated region body
PF: predicated region fallthrough
CT: control target
= control target key end

     0   :  { %vm37_vm0 = vcmask 1043456   ;;  %v1159_v1 = vmov 0.0   ;;  %vm1160_vm1 = vmmov 0   ;;  %vm33_vm2 = vcmask 64512   ;;  %s1161_s25 = smov 127   ;;  %s1162_s26 = smov 122   ;;  %s1392_s0 = inlined_call_operand.vmem [shape: bf16[8,86], index: 0, kind: input, shape index: {}]   ;;  %s1393_s1 = inlined_call_operand.vmem [shape: bf16[72,8], index: 1, kind: input, shape index: {}]   ;;  %s1394_s2 = inlined_call_operand.vmem [shape: f32[8,1], index: 2, kind: input, shape index: {}]   ;;  %s1395_s5 = inlined_call_operand.vmem [shape: f32[1,72], index: 5, kind: input, shape index: {}]   ;;  %s1396_s3 = inlined_call_operand.vmem [shape: bf16[72,8], index: 3, kind: input, shape index: {}]   ;;  %s1397_s4 = inlined_call_operand.vmem [shape: f32[8,1], index: 4, kind: input, shape index: {}]   ;;  %s1398_s6 = inlined_call_operand.vmem [shape: bf16[8,72], index: 6, kind: output, shape index: {}]  }
   0x1   :  { %v26_v0 = vld [vmem:[%s1392_s0] sm:$0xf]  ;;  %1035 = vmatprep.subr.bf16.mxu0 %v1159_v1  ;;  %1041 = vmatprep.subr.bf16.mxu1 %v1159_v1  ;;  %s1163_s27 = smov 126   ;;  %s1164_s28 = smov 121   ;;  %v1169_v5 = vmov 0   ;;  %vm492_vm3 = vcmask 699392  }
   0x2   :  { %v976_v2 = vcombine.low %v26_v0, %v26_v0  ;;  %v85_v3 = vsel %vm37_vm0, %v26_v0, 0  ;;  %1037 = vmatprep.mubr.msk.bf16.mxu0 %vm1160_vm1, %v1159_v1  ;;  %1043 = vmatprep.mubr.msk.bf16.mxu1 %vm1160_vm1, %v1159_v1  ;;  %v25_v4 = vld [vmem:[%s1393_s1] sm:$0xf]  ;;  %s1165_s29 = smov 120   ;;  %s1166_s30 = smov 116   ;;  %vm501_vm4 = vcmask 642104  }
   0x3   :  { %1042 = vmatpush3.bf16.msra.mxu1 %v85_v3  ;;  %s1167_s7 = smov 115   ;;  %s1168_s8 = smov 114   ;;  %1155 = vset.pattern.permute.xlu0 %v1169_v5  ;;  %v477_v6 = vld [vmem:[%s1394_s2] sm:$0xff]  ;;  %v177_v12 = vld [vmem:[%s1393_s1 + $0xc] sm:$0xf]  ;;  %vm970_vm5 = vcmask 584704  }
   0x4   :  { %31 = vrot.lane.b32.xlu0 %v976_v2, %s1161_s25  ;;  %178 = vrot.lane.b32.xlu1 %v976_v2, %s1162_s26  ;;  %v27_v11 = vld [vmem:[%s1393_s1 + $0x4] sm:$0xf]  ;;  %v127_v18 = vld [vmem:[%s1393_s1 + $0x8] sm:$0xf]  ;;  %493 = vst.msk [vmem:[#allocation2] sm:$0xf] %vm492_vm3, %v1169_v5 }
   0x5   :  { %1053 = vmatprep.subr.bf16.mxu1 %v1159_v1  ;;  %1156 = vset.pattern.permute.xlu1 %v1169_v5  ;;  %v277_v19 = vld [vmem:[%s1393_s1 + $0x14] sm:$0xf]  ;;  %v227_v24 = vld [vmem:[%s1393_s1 + $0x10] sm:$0xf]  ;;  %v377_v25 = vld [vmem:[%s1393_s1 + $0x1c] sm:$0xf] }
   0x6   :  { %1044 = vmatmul.mubr.msk.bf16.vlgmr.msra.gmra.mxu1 %vm33_vm2, %v25_v4  ;;  %v327_v28 = vld [vmem:[%s1393_s1 + $0x18] sm:$0xf]  ;;  %v427_v30 = vld [vmem:[%s1393_s1 + $0x20] sm:$0xf]  ;;  %s1170_s11 = smov 7  }
   0x7   :  { %1055 = vmatprep.mubr.msk.bf16.mxu1 %vm1160_vm1, %v1159_v1 }
   0x8   :  { %128 = vrot.lane.b32.xlu0 %v976_v2, %s1163_s27  ;;  %228 = vrot.lane.b32.xlu1 %v976_v2, %s1164_s28 }
   0xc   :  { %278 = vrot.lane.b32.xlu0 %v976_v2, %s1165_s29  ;;  %328 = vrot.lane.b32.xlu1 %v976_v2, %s1166_s30 }
  0x10   :  { %378 = vrot.lane.b32.xlu0 %v976_v2, %s1167_s7  ;;  %428 = vrot.lane.b32.xlu1 %v976_v2, %s1168_s8 }
  0x14   :  { %480 = vperm.xlu0 %1155, %v477_v6  }
  0x76   :  { %v32_v7 = vpop.permute.xlu0 %31  ;;  %v179_v8 = vpop.permute.xlu1 %178 }
  0x77   :  { %v39_v9 = vsel %vm37_vm0, %v32_v7, 0  ;;  %v184_v10 = vsel %vm37_vm0, %v179_v8, 0 }
  0x78   :  { %1036 = vmatpush3.bf16.msra.mxu0 %v39_v9  ;;  %1054 = vmatpush3.bf16.msra.mxu1 %v184_v10 }
  0x79   :  { %1047 = vmatprep.subr.bf16.mxu0 %v1159_v1  ;;  %1065 = vmatprep.subr.bf16.mxu1 %v1159_v1 }
  0x7a   :  { %v129_v13 = vpop.permute.xlu0 %128  ;;  %v229_v15 = vpop.permute.xlu1 %228 }
  0x7b   :  { %1038 = vmatmul.mubr.msk.bf16.vlgmr.msra.gmra.mxu0 %vm33_vm2, %v27_v11  ;;  %v134_v14 = vsel %vm37_vm0, %v129_v13, 0  ;;  %1056 = vmatmul.mubr.msk.bf16.vlgmr.msra.gmra.mxu1 %vm33_vm2, %v177_v12  ;;  %v234_v20 = vsel %vm37_vm0, %v229_v15, 0  ;;  %v1304_v12 = vld [vmem:[%s1395_s5] ss:$0 sm:$0xff] }
  0x7c   :  { %1048 = vmatpush3.bf16.msra.mxu0 %v134_v14  ;;  %1049 = vmatprep.mubr.msk.bf16.mxu0 %vm1160_vm1, %v1159_v1 }
  0x7d   :  { %1059 = vmatprep.subr.bf16.mxu0 %v1159_v1  ;;  %1067 = vmatprep.mubr.msk.bf16.mxu1 %vm1160_vm1, %v1159_v1 }
  0x7e   :  { %v279_v16 = vpop.permute.xlu0 %278  ;;  %v329_v23 = vpop.permute.xlu1 %328 }
  0x7f   :  { %v284_v17 = vsel %vm37_vm0, %v279_v16, 0  ;;  %v334_v26 = vsel %vm37_vm0, %v329_v23, 0  ;;  %v960_v23 = vld [vmem:[%s1392_s0] sm:$0xf] }
  0x80   :  { %1066 = vmatpush3.bf16.msra.mxu1 %v284_v17 }
  0x81   :  { %1077 = vmatprep.subr.bf16.mxu1 %v1159_v1 }
  0x82   :  { %v379_v21 = vpop.permute.xlu0 %378  ;;  %v429_v27 = vpop.permute.xlu1 %428 }
  0x83   :  { %1050 = vmatmul.mubr.msk.bf16.vlgmr.msra.gmra.mxu0 %vm33_vm2, %v127_v18  ;;  %1068 = vmatmul.mubr.msk.bf16.vlgmr.msra.gmra.mxu1 %vm33_vm2, %v277_v19  ;;  %v384_v22 = vsel %vm37_vm0, %v379_v21, 0  ;;  %v434_v29 = vsel %vm37_vm0, %v429_v27, 0 }
  0x84   :  { %1060 = vmatpush3.bf16.msra.mxu0 %v234_v20  ;;  %1061 = vmatprep.mubr.msk.bf16.mxu0 %vm1160_vm1, %v1159_v1 }
  0x85   :  { %1071 = vmatprep.subr.bf16.mxu0 %v1159_v1  ;;  %1078 = vmatpush3.bf16.msra.mxu1 %v384_v22  ;;  %v503_v22 = vld [vmem:[%s1396_s3] sm:$0xf] }
  0x86   :  { %1079 = vmatprep.mubr.msk.bf16.mxu1 %vm1160_vm1, %v1159_v1  ;;  %1089 = vmatprep.subr.bf16.mxu1 %v1159_v1 }
  0x8b   :  { %1062 = vmatmul.mubr.msk.bf16.vlgmr.msra.gmra.mxu0 %vm33_vm2, %v227_v24  ;;  %1080 = vmatmul.mubr.msk.bf16.vlgmr.msra.gmra.mxu1 %vm33_vm2, %v377_v25  ;;  %v953_v24 = vld [vmem:[%s1397_s4] sm:$0xff]  ;;  %v961_v25 = vunpack.c.l.bf16 %v960_v23 }
  0x8c   :  { %1072 = vmatpush3.bf16.msra.mxu0 %v334_v26  ;;  %1073 = vmatprep.mubr.msk.bf16.mxu0 %vm1160_vm1, %v1159_v1 }
  0x8d   :  { %1083 = vmatprep.subr.bf16.mxu0 %v1159_v1  ;;  %1091 = vmatprep.mubr.msk.bf16.mxu1 %vm1160_vm1, %v1159_v1 }
  0x8f   :  { %v481_v8 = vpop.permute.xlu0 %480 }
  0x93   :  { %1074 = vmatmul.mubr.msk.bf16.vlgmr.msra.gmra.mxu0 %vm33_vm2, %v327_v28 }
  0x94   :  { %1084 = vmatpush3.bf16.msra.mxu0 %v434_v29  ;;  %1085 = vmatprep.mubr.msk.bf16.mxu0 %vm1160_vm1, %v1159_v1  ;;  %v505_v29 = vld [vmem:[%s1396_s3 + $0x4] sm:$0xf] }
  0x95   :  { %1095 = vmatprep.subr.bf16.mxu0 %v1159_v1 }
  0x9b   :  { %1086 = vmatmul.mubr.msk.bf16.vlgmr.msra.gmra.mxu0 %vm33_vm2, %v427_v30 }
  0x9c   :  { %1097 = vmatprep.mubr.msk.bf16.mxu0 %vm1160_vm1, %v1159_v1 }
  0xc6   :  { %v121_v31 = vpop.f32.mrf.mxu1 }
  0xc8   :  { %v1045_v32 = vpop.f32.mrf.mxu1 }
  0xca   :  { %v124_v33 = vpop.f32.mrf.mxu1 }
  0xcb   :  { %v653_v33 = vld [vmem:[%s1396_s3 + $0xc] sm:$0xf] }
  0xcc   :  { %v1046_v34 = vpop.f32.mrf.mxu1 }
 0x13b   :  { %v75_v35 = vpop.f32.mrf.mxu0  ;;  %v220_v36 = vpop.f32.mrf.mxu1 }
 0x13c   :  { %v122_v49 = vadd.f32 %v121_v31, %v75_v35 }
 0x13d   :  { %v1039_v37 = vpop.f32.mrf.mxu0  ;;  %v1057_v38 = vpop.f32.mrf.mxu1 }
 0x13e   :  { %v603_v37 = vld [vmem:[%s1396_s3 + $0x8] sm:$0xf] }
 0x13f   :  { %v78_v39 = vpop.f32.mrf.mxu0  ;;  %v223_v40 = vpop.f32.mrf.mxu1 }
 0x140   :  { %v753_v40 = vld [vmem:[%s1396_s3 + $0x14] sm:$0xf] }
 0x141   :  { %v1040_v41 = vpop.f32.mrf.mxu0  ;;  %v1058_v42 = vpop.f32.mrf.mxu1 }
 0x143   :  { %v170_v43 = vpop.f32.mrf.mxu0  ;;  %v320_v44 = vpop.f32.mrf.mxu1 }
 0x144   :  { %v176_v52 = vadd.f32 %v170_v43, %v122_v49  ;;  %v703_v43 = vld [vmem:[%s1396_s3 + $0x10] sm:$0xf]  ;;  %v903_v49 = vld [vmem:[%s1396_s3 + $0x20] sm:$0xf] }
 0x145   :  { %v1051_v45 = vpop.f32.mrf.mxu0  ;;  %v1069_v46 = vpop.f32.mrf.mxu1 }
 0x146   :  { %v226_v57 = vadd.f32 %v220_v36, %v176_v52  ;;  %v853_v45 = vld [vmem:[%s1396_s3 + $0x1c] sm:$0xf] }
 0x147   :  { %v173_v47 = vpop.f32.mrf.mxu0  ;;  %v323_v48 = vpop.f32.mrf.mxu1 }
 0x148   :  { %v803_v47 = vld [vmem:[%s1396_s3 + $0x18] sm:$0xf] }
 0x149   :  { %v1052_v50 = vpop.f32.mrf.mxu0  ;;  %v1070_v51 = vpop.f32.mrf.mxu1 }
 0x14b   :  { %v270_v53 = vpop.f32.mrf.mxu0  ;;  %v420_v54 = vpop.f32.mrf.mxu1 }
 0x14c   :  { %v276_v60 = vadd.f32 %v270_v53, %v226_v57 }
 0x14d   :  { %v1063_v55 = vpop.f32.mrf.mxu0  ;;  %v1081_v56 = vpop.f32.mrf.mxu1 }
 0x14e   :  { %v326_v0 = vadd.f32 %v320_v44, %v276_v60 }
 0x14f   :  { %v273_v58 = vpop.f32.mrf.mxu0  ;;  %v423_v59 = vpop.f32.mrf.mxu1 }
 0x151   :  { %v1064_v61 = vpop.f32.mrf.mxu0  ;;  %v1082_v62 = vpop.f32.mrf.mxu1 }
 0x153   :  { %v370_v63 = vpop.f32.mrf.mxu0 }
 0x154   :  { %v376_v3 = vadd.f32 %v370_v63, %v326_v0 }
 0x155   :  { %v1075_v2 = vpop.f32.mrf.mxu0 }
 0x156   :  { %v426_v6 = vadd.f32 %v420_v54, %v376_v3 }
 0x157   :  { %v373_v4 = vpop.f32.mrf.mxu0 }
 0x159   :  { %v1076_v5 = vpop.f32.mrf.mxu0 }
 0x15b   :  { %v470_v7 = vpop.f32.mrf.mxu0 }
 0x15c   :  { %v476_v9 = vadd.f32 %v470_v7, %v426_v6 }
 0x15d   :  { %v1087_v10 = vpop.f32.mrf.mxu0 }
 0x15e   :  { %v483_v11 = vadd.f32 %v481_v8, %v476_v9 }
 0x15f   :  { %v473_v13 = vpop.f32.mrf.mxu0 }
 0x160   :  { %v484_v14 = vmax.f32 %v483_v11, 0.0 }
 0x161   :  { %v1088_v15 = vpop.f32.mrf.mxu0 }
 0x162   :  { %v491_v16 = vmul.f32 %v1304_v12, %v484_v14 }
 0x164   :  { %v998_v17 = vpack.c.bf16 %v491_v16, %v491_v16 }
 0x166   :  { %498 = vrot.lane.b32.xlu1 %v998_v17, %s1170_s11 }
 0x1d8   :  { %v499_v18 = vpop.permute.xlu1 %498 }
 0x1d9   :  { %502 = vst.msk [vmem:[#allocation2] sm:$0xf] %vm501_vm4, %v499_v18 }
 0x1e0   :  { %v504_v19 = vld [vmem:[#allocation2] sm:$0xf] }
 0x1e1   :  { %v988_v20 = vcombine.low %v504_v19, %v504_v19  ;;  %v561_v21 = vsel %vm37_vm0, %v504_v19, 0 }
 0x1e2   :  { %1096 = vmatpush3.bf16.msra.mxu0 %v561_v21 }
 0x1e3   :  { %604 = vrot.lane.b32.xlu0 %v988_v20, %s1163_s27  ;;  %509 = vrot.lane.b32.xlu1 %v988_v20, %s1161_s25 }
 0x1e4   :  { %1107 = vmatprep.subr.bf16.mxu0 %v1159_v1 }
 0x1e5   :  { %1098 = vmatmul.mubr.msk.bf16.vlgmr.msra.gmra.mxu0 %vm33_vm2, %v503_v22 }
 0x1e6   :  { %1109 = vmatprep.mubr.msk.bf16.mxu0 %vm1160_vm1, %v1159_v1 }
 0x1e7   :  { %704 = vrot.lane.b32.xlu0 %v988_v20, %s1164_s28  ;;  %654 = vrot.lane.b32.xlu1 %v988_v20, %s1162_s26 }
 0x1eb   :  { %804 = vrot.lane.b32.xlu0 %v988_v20, %s1166_s30  ;;  %754 = vrot.lane.b32.xlu1 %v988_v20, %s1165_s29 }
 0x1ef   :  { %904 = vrot.lane.b32.xlu0 %v988_v20, %s1168_s8  ;;  %854 = vrot.lane.b32.xlu1 %v988_v20, %s1167_s7 }
 0x1f3   :  { %956 = vperm.xlu1 %1156, %v953_v24   ;;  %963 = vrot.lane.b32.xlu0 %v961_v25, %s1164_s28 }
 0x255   :  { %v510_v26 = vpop.permute.xlu1 %509  ;;  %v605_v28 = vpop.permute.xlu0 %604 }
 0x256   :  { %v515_v27 = vsel %vm37_vm0, %v510_v26, 0  ;;  %v610_v31 = vsel %vm37_vm0, %v605_v28, 0 }
 0x257   :  { %1090 = vmatpush3.bf16.msra.mxu1 %v515_v27 }
 0x258   :  { %1101 = vmatprep.subr.bf16.mxu1 %v1159_v1 }
 0x259   :  { %v655_v30 = vpop.permute.xlu1 %654  ;;  %v705_v36 = vpop.permute.xlu0 %704 }
 0x25a   :  { %v660_v32 = vsel %vm37_vm0, %v655_v30, 0  ;;  %1092 = vmatmul.mubr.msk.bf16.vlgmr.msra.gmra.mxu1 %vm33_vm2, %v505_v29  ;;  %v710_v38 = vsel %vm37_vm0, %v705_v36, 0 }
 0x25b   :  { %1102 = vmatpush3.bf16.msra.mxu1 %v610_v31  ;;  %1108 = vmatpush3.bf16.msra.mxu0 %v660_v32 }
 0x25c   :  { %1119 = vmatprep.subr.bf16.mxu0 %v1159_v1  ;;  %1103 = vmatprep.mubr.msk.bf16.mxu1 %vm1160_vm1, %v1159_v1 }
 0x25d   :  { %v755_v34 = vpop.permute.xlu1 %754  ;;  %1113 = vmatprep.subr.bf16.mxu1 %v1159_v1  ;;  %v805_v42 = vpop.permute.xlu0 %804 }
 0x25e   :  { %v760_v35 = vsel %vm37_vm0, %v755_v34, 0  ;;  %1110 = vmatmul.mubr.msk.bf16.vlgmr.msra.gmra.mxu0 %vm33_vm2, %v653_v33  ;;  %v810_v44 = vsel %vm37_vm0, %v805_v42, 0 }
 0x25f   :  { %1120 = vmatpush3.bf16.msra.mxu0 %v760_v35  ;;  %1121 = vmatprep.mubr.msk.bf16.mxu0 %vm1160_vm1, %v1159_v1 }
 0x260   :  { %1131 = vmatprep.subr.bf16.mxu0 %v1159_v1 }
 0x261   :  { %v855_v39 = vpop.permute.xlu1 %854  ;;  %v905_v46 = vpop.permute.xlu0 %904 }
 0x262   :  { %1104 = vmatmul.mubr.msk.bf16.vlgmr.msra.gmra.mxu1 %vm33_vm2, %v603_v37  ;;  %v860_v41 = vsel %vm37_vm0, %v855_v39, 0  ;;  %v910_v48 = vsel %vm37_vm0, %v905_v46, 0 }
 0x263   :  { %1114 = vmatpush3.bf16.msra.mxu1 %v710_v38  ;;  %1115 = vmatprep.mubr.msk.bf16.mxu1 %vm1160_vm1, %v1159_v1 }
 0x264   :  { %1125 = vmatprep.subr.bf16.mxu1 %v1159_v1 }
 0x265   :  { %v964_v30 = vpop.permute.xlu0 %963 }
 0x266   :  { %1122 = vmatmul.mubr.msk.bf16.vlgmr.msra.gmra.mxu0 %vm33_vm2, %v753_v40 }
 0x267   :  { %1132 = vmatpush3.bf16.msra.mxu0 %v860_v41  ;;  %1133 = vmatprep.mubr.msk.bf16.mxu0 %vm1160_vm1, %v1159_v1 }
 0x26a   :  { %1116 = vmatmul.mubr.msk.bf16.vlgmr.msra.gmra.mxu1 %vm33_vm2, %v703_v43 }
 0x26b   :  { %1126 = vmatpush3.bf16.msra.mxu1 %v810_v44  ;;  %1127 = vmatprep.mubr.msk.bf16.mxu1 %vm1160_vm1, %v1159_v1 }
 0x26c   :  { %1137 = vmatprep.subr.bf16.mxu1 %v1159_v1 }
 0x26e   :  { %1134 = vmatmul.mubr.msk.bf16.vlgmr.msra.gmra.mxu0 %vm33_vm2, %v853_v45  ;;  %v957_v27 = vpop.permute.xlu1 %956 }
 0x272   :  { %1128 = vmatmul.mubr.msk.bf16.vlgmr.msra.gmra.mxu1 %vm33_vm2, %v803_v47 }
 0x273   :  { %1138 = vmatpush3.bf16.msra.mxu1 %v910_v48  ;;  %1139 = vmatprep.mubr.msk.bf16.mxu1 %vm1160_vm1, %v1159_v1 }
 0x27a   :  { %1140 = vmatmul.mubr.msk.bf16.vlgmr.msra.gmra.mxu1 %vm33_vm2, %v903_v49 }
 0x2a5   :  { %v597_v50 = vpop.f32.mrf.mxu0 }
 0x2a7   :  { %v1099_v51 = vpop.f32.mrf.mxu0 }
 0x2a9   :  { %v600_v52 = vpop.f32.mrf.mxu0 }
 0x2ab   :  { %v1100_v53 = vpop.f32.mrf.mxu0 }
 0x31a   :  { %v551_v54 = vpop.f32.mrf.mxu1 }
 0x31b   :  { %v598_v2 = vadd.f32 %v597_v50, %v551_v54 }
 0x31c   :  { %v1093_v55 = vpop.f32.mrf.mxu1 }
 0x31e   :  { %v554_v56 = vpop.f32.mrf.mxu1  ;;  %v696_v57 = vpop.f32.mrf.mxu0 }
 0x320   :  { %v1094_v58 = vpop.f32.mrf.mxu1  ;;  %v1111_v59 = vpop.f32.mrf.mxu0 }
 0x322   :  { %v646_v60 = vpop.f32.mrf.mxu1  ;;  %v699_v61 = vpop.f32.mrf.mxu0 }
 0x323   :  { %v652_v5 = vadd.f32 %v646_v60, %v598_v2 }
 0x324   :  { %v1105_v62 = vpop.f32.mrf.mxu1  ;;  %v1112_v1 = vpop.f32.mrf.mxu0 }
 0x325   :  { %v702_v10 = vadd.f32 %v696_v57, %v652_v5 }
 0x326   :  { %v649_v63 = vpop.f32.mrf.mxu1  ;;  %v796_v0 = vpop.f32.mrf.mxu0 }
 0x328   :  { %v1106_v3 = vpop.f32.mrf.mxu1  ;;  %v1123_v4 = vpop.f32.mrf.mxu0 }
 0x32a   :  { %v746_v6 = vpop.f32.mrf.mxu1  ;;  %v799_v7 = vpop.f32.mrf.mxu0 }
 0x32b   :  { %v752_v14 = vadd.f32 %v746_v6, %v702_v10 }
 0x32c   :  { %v1117_v8 = vpop.f32.mrf.mxu1  ;;  %v1124_v9 = vpop.f32.mrf.mxu0 }
 0x32d   :  { %v802_v19 = vadd.f32 %v796_v0, %v752_v14 }
 0x32e   :  { %v749_v11 = vpop.f32.mrf.mxu1  ;;  %v896_v13 = vpop.f32.mrf.mxu0 }
 0x330   :  { %v1118_v15 = vpop.f32.mrf.mxu1  ;;  %v1135_v16 = vpop.f32.mrf.mxu0 }
 0x332   :  { %v846_v17 = vpop.f32.mrf.mxu1  ;;  %v899_v18 = vpop.f32.mrf.mxu0 }
 0x333   :  { %v852_v22 = vadd.f32 %v846_v17, %v802_v19 }
 0x334   :  { %v1129_v20 = vpop.f32.mrf.mxu1  ;;  %v1136_v21 = vpop.f32.mrf.mxu0 }
 0x335   :  { %v902_v25 = vadd.f32 %v896_v13, %v852_v22 }
 0x336   :  { %v849_v23 = vpop.f32.mrf.mxu1 }
 0x338   :  { %v1130_v24 = vpop.f32.mrf.mxu1 }
 0x33a   :  { %v946_v26 = vpop.f32.mrf.mxu1 }
 0x33b   :  { %v952_v28 = vadd.f32 %v946_v26, %v902_v25 }
 0x33c   :  { %v1141_v29 = vpop.f32.mrf.mxu1 }
 0x33d   :  { %v959_v31 = vadd.f32 %v957_v27, %v952_v28 }
 0x33e   :  { %v949_v32 = vpop.f32.mrf.mxu1 }
 0x33f   :  { %v966_v33 = vadd.f32 %v964_v30, %v959_v31 }
 0x340   :  { %v1142_v34 = vpop.f32.mrf.mxu1 }
 0x341   :  { %v967_v35 = vmax.f32 %v966_v33, 0.0 }
 0x343   :  { %v968_v36 = vmul.f32 %v1304_v12, %v967_v35 }
 0x345   :  { %v969_v37 = vpack.c.bf16 %v968_v36, %v968_v36 }
 0x347   :  { %971 = vst.msk [vmem:[%s1398_s6] sm:$0xf] %vm970_vm5, %v969_v37 }

// kernel: decoder_forward.7
= control target key start
LH: loop header
LB: loop body
LE: loop exit
PB: predicated region body
PF: predicated region fallthrough
CT: control target
= control target key end

     0   :  { %vm61_vm0 = vcmask 1043456   ;;  %vm54_vm1 = vcmask 64512   ;;  %v170_v1 = vmov 0   ;;  %vm134_vm2 = vcmask 257024   ;;  %s230_s1 = inlined_call_operand.vmem [shape: bf16[8,32], index: 1, kind: input, shape index: {}]   ;;  %s231_s0 = inlined_call_operand.vmem [shape: bf16[32,8], index: 0, kind: input, shape index: {}]   ;;  %s232_s2 = inlined_call_operand.vmem [shape: f32[32,1], index: 2, kind: input, shape index: {}]   ;;  %s233_s3 = inlined_call_operand.vmem [shape: bf16[32,32], index: 3, kind: output, shape index: {}]  }
   0x1   :  { %v19_v0 = vld [vmem:[%s230_s1] sm:$0xf]  ;;  %167 = vset.pattern.permute.xlu1 %v170_v1  ;;  %166 = vset.pattern.permute.xlu0 %v170_v1  ;;  %v169_v4 = vld [vmem:[%s231_s0 + $0x8] sm:$0xff]   ;;  %v22_v5 = vld [vmem:[%s232_s2 + $0x10] sm:$0xff] }
   0x2   :  { %164 = vmatprep.subr.msk.bf16.mxu0 %vm61_vm0, %v19_v0  ;;  %v63_v2 = vsel %vm61_vm0, %v19_v0, 0  ;;  %v168_v3 = vld [vmem:[%s231_s0] sm:$0xff]   ;;  %36 = vperm.xlu1 %167, %v22_v5   ;;  %v23_v7 = vld [vmem:[%s232_s2 + $0x18] sm:$0xff]  ;;  %v21_v8 = vld [vmem:[%s232_s2 + $0x8] sm:$0xff] }
   0x3   :  { %159 = vmatpush3.bf16.msra.mxu0 %v63_v2  ;;  %v20_v6 = vld [vmem:[%s232_s2] sm:$0xff]  ;;  %160 = vmatprep.mubr.msk.bf16.mxu0 %vm54_vm1, %v168_v3 }
   0x4   :  { %26 = vperm.xlu0 %166, %v20_v6  }
   0x6   :  { %161 = vmatmul.mubr.msk.bf16.vlgmr.msra.gmra.mxu0 %vm54_vm1, %v169_v4  ;;  %41 = vperm.xlu1 %167, %v23_v7  }
   0x8   :  { %31 = vperm.xlu0 %166, %v21_v8  }
  0x7d   :  { %v37_v9 = vpop.permute.xlu1 %36 }
  0x7f   :  { %v27_v10 = vpop.permute.xlu0 %26 }
  0x81   :  { %v42_v16 = vpop.permute.xlu1 %41 }
  0x83   :  { %v32_v21 = vpop.permute.xlu0 %31 }
  0xc6   :  { %v162_v11 = vpop.f32.mrf.mxu0 }
  0xc7   :  { %v108_v12 = vadd.f32 %v162_v11, %v37_v9 }
  0xc8   :  { %v99_v13 = vpop.f32.mrf.mxu0 }
  0xc9   :  { %v116_v14 = vmax.f32 %v108_v12, 0.0  ;;  %v100_v15 = vadd.f32 %v99_v13, %v27_v10 }
  0xca   :  { %v163_v17 = vpop.f32.mrf.mxu0 }
  0xcb   :  { %v153_v18 = vpack.c.bf16 %v116_v14, %v116_v14  ;;  %v114_v19 = vmax.f32 %v100_v15, 0.0  ;;  %v111_v20 = vadd.f32 %v163_v17, %v42_v16 }
  0xcc   :  { %v102_v22 = vpop.f32.mrf.mxu0 }
  0xcd   :  { %137 = vst.msk [vmem:[%s233_s3 + $0x8] sm:$0xf] %vm134_vm2, %v153_v18  ;;  %v151_v23 = vpack.c.bf16 %v114_v19, %v114_v19  ;;  %v117_v24 = vmax.f32 %v111_v20, 0.0  ;;  %v103_v25 = vadd.f32 %v102_v22, %v32_v21 }
  0xcf   :  { %135 = vst.msk [vmem:[%s233_s3] sm:$0xf] %vm134_vm2, %v151_v23  ;;  %v154_v26 = vpack.c.bf16 %v117_v24, %v117_v24  ;;  %v115_v27 = vmax.f32 %v103_v25, 0.0 }
  0xd1   :  { %138 = vst.msk [vmem:[%s233_s3 + $0xc] sm:$0xf] %vm134_vm2, %v154_v26  ;;  %v152_v28 = vpack.c.bf16 %v115_v27, %v115_v27 }
  0xd3   :  { %136 = vst.msk [vmem:[%s233_s3 + $0x4] sm:$0xf] %vm134_vm2, %v152_v28 }

// kernel: decoder_forward.8
= control target key start
LH: loop header
LB: loop body
LE: loop exit
PB: predicated region body
PF: predicated region fallthrough
CT: control target
= control target key end

     0   :  { %vm43_vm0 = vcmask 1043456   ;;  %v1223_v1 = vmov 0   ;;  %s1224_s23 = smov 127   ;;  %vm39_vm1 = vcmask 64512   ;;  %s1226_s26 = smov 118   ;;  %vm37_vm2 = vcmask 1039360   ;;  %s1480_s0 = inlined_call_operand.vmem [shape: bf16[8,222], index: 0, kind: input, shape index: {}]   ;;  %s1481_s1 = inlined_call_operand.vmem [shape: bf16[72,8], index: 1, kind: input, shape index: {}]   ;;  %s1482_s2 = inlined_call_operand.vmem [shape: f32[8,1], index: 2, kind: input, shape index: {}]   ;;  %s1483_s5 = inlined_call_operand.vmem [shape: f32[1,200], index: 5, kind: input, shape index: {}]   ;;  %s1484_s3 = inlined_call_operand.vmem [shape: bf16[72,8], index: 3, kind: input, shape index: {}]   ;;  %s1485_s4 = inlined_call_operand.vmem [shape: f32[8,1], index: 4, kind: input, shape index: {}]   ;;  %s1486_s6 = inlined_call_operand.vmem [shape: bf16[8,200], index: 6, kind: output, shape index: {}]  }
   0x1   :  { %v1271_v0 = vld [vmem:[%s1480_s0] sm:$0xff]  ;;  %82 = vmatprep.mubr.bf16.mxu0 %v1223_v1  ;;  %132 = vmatprep.mubr.bf16.mxu1 %v1223_v1  ;;  %s1225_s0 = smov 126   ;;  %s1227_s27 = smov 117   ;;  %vm146_vm3 = vcmask 1031168   ;;  %vm205_vm4 = vcmask 965632   ;;  %vm264_vm5 = vcmask 957440  }
   0x2   :  { %v1158_v2 = vcombine.low %v1271_v0, %v1271_v0  ;;  %1212 = vset.pattern.permute.xlu0 %v1223_v1  ;;  %1213 = vset.pattern.permute.xlu1 %v1223_v1  ;;  %v1159_v3 = vcombine.high %v1271_v0, %v1271_v0  ;;  %v25_v5 = vld [vmem:[%s1481_s1] sm:$0xf]  ;;  %s1228_s28 = smov 116   ;;  %s1229_s29 = smov 108   ;;  %v27_v14 = vld [vmem:[%s1481_s1 + $0x4] sm:$0xf] }
   0x3   :  { %s1230_s30 = smov 107   ;;  %s1231_s7 = smov 106   ;;  %v554_v6 = vld [vmem:[%s1482_s2] sm:$0xff]  ;;  %v200_v20 = vld [vmem:[%s1481_s1 + $0xc] sm:$0xf]  ;;  %vm323_vm6 = vcmask 949248  }
   0x4   :  { %33 = vrot.lane.b32.xlu0 %v1158_v2, %s1224_s23  ;;  %142 = vrot.lane.b32.xlu1 %v1158_v2, %s1225_s0  ;;  %v95_v4 = vsel %vm43_vm0, %v1158_v2, 0  ;;  %v141_v24 = vld [vmem:[%s1481_s1 + $0x8] sm:$0xf]  ;;  %vm382_vm7 = vcmask 883712   ;;  %v318_v30 = vld [vmem:[%s1481_s1 + $0x14] sm:$0xf] }
   0x5   :  { %1162 = vmatprep.subr.msk.bf16.mxu1 %vm43_vm0, %v1159_v3  ;;  %vm441_vm8 = vcmask 875520   ;;  %v259_v34 = vld [vmem:[%s1481_s1 + $0x10] sm:$0xf]  ;;  %vm500_vm9 = vcmask 867328   ;;  %v436_v40 = vld [vmem:[%s1481_s1 + $0x1c] sm:$0xf] }
   0x6   :  { %115 = vmatpush1.bf16.msra.mxu1 %v95_v4  ;;  %v377_v44 = vld [vmem:[%s1481_s1 + $0x18] sm:$0xf]  ;;  %v495_v46 = vld [vmem:[%s1481_s1 + $0x20] sm:$0xf]  ;;  %vm577_vm10 = vcmask 769028   ;;  %s1232_s9 = smov 11  }
   0x7   :  { %vm578_vm11 = vmor %vm577_vm10, %vm43_vm0  ;;  %vm593_vm12 = vcmask 1043544   ;;  %vm594_vm13 = vcmask 678916   ;;  %vm590_vm14 = vcmask 89088  }
   0x8   :  { %35 = vrot.lane.b32.xlu0 %v1159_v3, %s1224_s23  ;;  %144 = vrot.lane.b32.xlu1 %v1159_v3, %s1225_s0  ;;  %579 = vst.msk [vmem:[#allocation2] sm:$0xff] %vm578_vm11, %v1223_v1  ;;  %vm595_vm15 = vmor %vm594_vm13, %vm593_vm12 }
   0x9   :  { %1163 = vmatmul.mubr.msk.bf16.vlgmr.msra.gmra.mxu1 %vm39_vm1, %v25_v5 }
   0xa   :  { %248 = vmatprep.mubr.bf16.mxu1 %v1223_v1 }
   0xc   :  { %203 = vrot.lane.b32.xlu1 %v1159_v3, %s1226_s26  ;;  %201 = vrot.lane.b32.xlu0 %v1158_v2, %s1226_s26 }
  0x10   :  { %262 = vrot.lane.b32.xlu1 %v1159_v3, %s1227_s27  ;;  %260 = vrot.lane.b32.xlu0 %v1158_v2, %s1227_s27 }
  0x14   :  { %321 = vrot.lane.b32.xlu1 %v1159_v3, %s1228_s28  ;;  %319 = vrot.lane.b32.xlu0 %v1158_v2, %s1228_s28 }
  0x18   :  { %380 = vrot.lane.b32.xlu1 %v1159_v3, %s1229_s29  ;;  %378 = vrot.lane.b32.xlu0 %v1158_v2, %s1229_s29 }
  0x1c   :  { %439 = vrot.lane.b32.xlu1 %v1159_v3, %s1230_s30  ;;  %437 = vrot.lane.b32.xlu0 %v1158_v2, %s1230_s30 }
  0x20   :  { %498 = vrot.lane.b32.xlu1 %v1159_v3, %s1231_s7  ;;  %496 = vrot.lane.b32.xlu0 %v1158_v2, %s1231_s7 }
  0x24   :  { %557 = vperm.xlu0 %1212, %v554_v6  }
  0x76   :  { %v34_v7 = vpop.permute.xlu0 %33  ;;  %v143_v8 = vpop.permute.xlu1 %142 }
  0x7a   :  { %v36_v9 = vpop.permute.xlu0 %35  ;;  %v145_v10 = vpop.permute.xlu1 %144 }
  0x7b   :  { %1160 = vmatprep.subr.msk.bf16.mxu0 %vm43_vm0, %v36_v9  ;;  %v38_v11 = vsel %vm37_vm2, %v34_v7, %v36_v9  ;;  %v147_v12 = vsel %vm146_vm3, %v143_v8, %v145_v10 }
  0x7c   :  { %v45_v13 = vsel %vm43_vm0, %v38_v11, 0  ;;  %v152_v15 = vsel %vm43_vm0, %v147_v12, 0 }
  0x7d   :  { %65 = vmatpush1.bf16.msra.mxu0 %v45_v13 }
  0x7e   :  { %1164 = vmatprep.subr.msk.bf16.mxu0 %vm43_vm0, %v145_v10  ;;  %v204_v16 = vpop.permute.xlu1 %203  ;;  %v202_v17 = vpop.permute.xlu0 %201 }
  0x7f   :  { %v206_v18 = vsel %vm205_vm4, %v202_v17, %v204_v16  ;;  %1166 = vmatprep.subr.msk.bf16.mxu1 %vm43_vm0, %v204_v16 }
  0x80   :  { %1161 = vmatmul.mubr.msk.bf16.vlgmr.msra.gmra.mxu0 %vm39_vm1, %v27_v14  ;;  %v211_v19 = vsel %vm43_vm0, %v206_v18, 0 }
  0x81   :  { %172 = vmatpush1.bf16.msra.mxu0 %v152_v15  ;;  %231 = vmatpush1.bf16.msra.mxu1 %v211_v19 }
  0x82   :  { %v263_v21 = vpop.permute.xlu1 %262  ;;  %v261_v22 = vpop.permute.xlu0 %260  ;;  %189 = vmatprep.mubr.bf16.mxu0 %v1223_v1 }
  0x83   :  { %v265_v23 = vsel %vm264_vm5, %v261_v22, %v263_v21  ;;  %1168 = vmatprep.subr.msk.bf16.mxu0 %vm43_vm0, %v263_v21  ;;  %v565_v22 = vlaneseq }
  0x84   :  { %1167 = vmatmul.mubr.msk.bf16.vlgmr.msra.gmra.mxu1 %vm39_vm1, %v200_v20  ;;  %v270_v25 = vsel %vm43_vm0, %v265_v23, 0 }
  0x85   :  { %366 = vmatprep.mubr.bf16.mxu1 %v1223_v1 }
  0x86   :  { %v322_v26 = vpop.permute.xlu1 %321  ;;  %v320_v27 = vpop.permute.xlu0 %319 }
  0x87   :  { %v324_v28 = vsel %vm323_vm6, %v320_v27, %v322_v26  ;;  %1170 = vmatprep.subr.msk.bf16.mxu1 %vm43_vm0, %v322_v26 }
  0x88   :  { %1165 = vmatmul.mubr.msk.bf16.vlgmr.msra.gmra.mxu0 %vm39_vm1, %v141_v24  ;;  %v329_v29 = vsel %vm43_vm0, %v324_v28, 0 }
  0x89   :  { %290 = vmatpush1.bf16.msra.mxu0 %v270_v25  ;;  %349 = vmatpush1.bf16.msra.mxu1 %v329_v29  ;;  %v566_v29 = vshrl.u32 %v565_v22, 7 }
  0x8a   :  { %v381_v31 = vpop.permute.xlu1 %380  ;;  %v379_v32 = vpop.permute.xlu0 %378  ;;  %307 = vmatprep.mubr.bf16.mxu0 %v1223_v1 }
  0x8b   :  { %v383_v33 = vsel %vm382_vm7, %v379_v32, %v381_v31  ;;  %1172 = vmatprep.subr.msk.bf16.mxu0 %vm43_vm0, %v381_v31 }
  0x8c   :  { %1171 = vmatmul.mubr.msk.bf16.vlgmr.msra.gmra.mxu1 %vm39_vm1, %v318_v30  ;;  %v388_v35 = vsel %vm43_vm0, %v383_v33, 0 }
  0x8d   :  { %484 = vmatprep.mubr.bf16.mxu1 %v1223_v1 }
  0x8e   :  { %v440_v36 = vpop.permute.xlu1 %439  ;;  %v438_v37 = vpop.permute.xlu0 %437 }
  0x8f   :  { %v442_v38 = vsel %vm441_vm8, %v438_v37, %v440_v36  ;;  %1174 = vmatprep.subr.msk.bf16.mxu1 %vm43_vm0, %v440_v36  ;;  %v567_v36 = vsub.s32 0, %v566_v29  ;;  %v571_v37 = vsub.s32 1, %v566_v29 }
  0x90   :  { %1169 = vmatmul.mubr.msk.bf16.vlgmr.msra.gmra.mxu0 %vm39_vm1, %v259_v34  ;;  %v447_v39 = vsel %vm43_vm0, %v442_v38, 0 }
  0x91   :  { %408 = vmatpush1.bf16.msra.mxu0 %v388_v35  ;;  %467 = vmatpush1.bf16.msra.mxu1 %v447_v39  ;;  %v24_v39 = vld [vmem:[%s1483_s5] sm:$0x3] }
  0x92   :  { %425 = vmatprep.mubr.bf16.mxu0 %v1223_v1  ;;  %v499_v41 = vpop.permute.xlu1 %498  ;;  %v497_v42 = vpop.permute.xlu0 %496 }
  0x93   :  { %v501_v43 = vsel %vm500_vm9, %v497_v42, %v499_v41  ;;  %1176 = vmatprep.subr.msk.bf16.mxu0 %vm43_vm0, %v499_v41 }
  0x94   :  { %1175 = vmatmul.mubr.msk.bf16.vlgmr.msra.gmra.mxu1 %vm39_vm1, %v436_v40  ;;  %v506_v45 = vsel %vm43_vm0, %v501_v43, 0  ;;  %v1376_v43 = vrot.slane %v24_v39, %v567_v36  ;;  %v1000_v36 = vld [vmem:[%s1484_s3 + $0x1c] sm:$0xf] }
  0x95   :  { %651 = vmatprep.mubr.bf16.mxu1 %v1223_v1 }
  0x98   :  { %1173 = vmatmul.mubr.msk.bf16.vlgmr.msra.gmra.mxu0 %vm39_vm1, %v377_v44  ;;  %v1378_v44 = vrot.slane %v24_v39, %v571_v37 }
  0x99   :  { %526 = vmatpush1.bf16.msra.mxu0 %v506_v45  ;;  %543 = vmatprep.mubr.bf16.mxu0 %v1223_v1 }
  0x9f   :  { %v558_v33 = vpop.permute.xlu0 %557 }
  0xa0   :  { %1177 = vmatmul.mubr.msk.bf16.vlgmr.msra.gmra.mxu0 %vm39_vm1, %v495_v46 }
  0xa1   :  { %701 = vmatprep.mubr.bf16.mxu0 %v1223_v1 }
  0xc9   :  { %v134_v47 = vpop.f32.mrf.mxu1 }
  0xcb   :  { %v136_v48 = vpop.f32.mrf.mxu1 }
  0xcd   :  { %v138_v49 = vpop.f32.mrf.mxu1 }
  0xcf   :  { %v139_v50 = vpop.f32.mrf.mxu1 }
 0x140   :  { %v84_v51 = vpop.f32.mrf.mxu0 }
 0x141   :  { %v135_v63 = vadd.f32 %v134_v47, %v84_v51 }
 0x142   :  { %v86_v52 = vpop.f32.mrf.mxu0 }
 0x143   :  { %v137_v4 = vadd.f32 %v136_v48, %v86_v52 }
 0x144   :  { %v88_v53 = vpop.f32.mrf.mxu0  ;;  %v250_v54 = vpop.f32.mrf.mxu1 }
 0x146   :  { %v89_v55 = vpop.f32.mrf.mxu0  ;;  %v252_v56 = vpop.f32.mrf.mxu1 }
 0x148   :  { %v191_v57 = vpop.f32.mrf.mxu0  ;;  %v254_v58 = vpop.f32.mrf.mxu1 }
 0x149   :  { %v198_v5 = vadd.f32 %v191_v57, %v135_v63  ;;  %v1116_v63 = vld [vmem:[%s1485_s4] sm:$0xff] }
 0x14a   :  { %v193_v59 = vpop.f32.mrf.mxu0  ;;  %v255_v60 = vpop.f32.mrf.mxu1 }
 0x14b   :  { %v199_v8 = vadd.f32 %v193_v59, %v137_v4  ;;  %v257_v11 = vadd.f32 %v250_v54, %v198_v5  ;;  %v597_v59 = vld [vmem:[%s1484_s3] sm:$0xf]  ;;  %v1125_v60 = vunpack.c.l.bf16 %v1271_v0 }
 0x14c   :  { %v195_v61 = vpop.f32.mrf.mxu0  ;;  %v368_v62 = vpop.f32.mrf.mxu1 }
 0x14d   :  { %v258_v14 = vadd.f32 %v252_v56, %v199_v8  ;;  %v1126_v61 = vunpack.c.h.bf16 %v1271_v0 }
 0x14e   :  { %v196_v2 = vpop.f32.mrf.mxu0  ;;  %v370_v3 = vpop.f32.mrf.mxu1 }
 0x150   :  { %v309_v6 = vpop.f32.mrf.mxu0  ;;  %v372_v7 = vpop.f32.mrf.mxu1 }
 0x151   :  { %v316_v15 = vadd.f32 %v309_v6, %v257_v11  ;;  %v599_v6 = vld [vmem:[%s1484_s3 + $0x4] sm:$0xf] }
 0x152   :  { %v311_v9 = vpop.f32.mrf.mxu0  ;;  %v373_v10 = vpop.f32.mrf.mxu1 }
 0x153   :  { %v317_v18 = vadd.f32 %v311_v9, %v258_v14  ;;  %v375_v21 = vadd.f32 %v368_v62, %v316_v15  ;;  %v1214_v62 = vpack.i.bf16 %v1126_v61, %v1125_v60  ;;  %v710_v15 = vld [vmem:[%s1484_s3 + $0x8] sm:$0xf] }
 0x154   :  { %v313_v12 = vpop.f32.mrf.mxu0  ;;  %v486_v13 = vpop.f32.mrf.mxu1 }
 0x155   :  { %v376_v25 = vadd.f32 %v370_v3, %v317_v18 }
 0x156   :  { %v314_v16 = vpop.f32.mrf.mxu0  ;;  %v488_v17 = vpop.f32.mrf.mxu1 }
 0x157   :  { %v768_v16 = vld [vmem:[%s1484_s3 + $0xc] sm:$0xf] }
 0x158   :  { %v427_v19 = vpop.f32.mrf.mxu0  ;;  %v490_v20 = vpop.f32.mrf.mxu1 }
 0x159   :  { %v434_v26 = vadd.f32 %v427_v19, %v375_v21 }
 0x15a   :  { %v429_v23 = vpop.f32.mrf.mxu0  ;;  %v491_v24 = vpop.f32.mrf.mxu1 }
 0x15b   :  { %v435_v28 = vadd.f32 %v429_v23, %v376_v25  ;;  %v493_v31 = vadd.f32 %v486_v13, %v434_v26  ;;  %v826_v25 = vld [vmem:[%s1484_s3 + $0x10] sm:$0xf]  ;;  %v884_v26 = vld [vmem:[%s1484_s3 + $0x14] sm:$0xf] }
 0x15c   :  { %v431_v27 = vpop.f32.mrf.mxu0 }
 0x15d   :  { %v494_v34 = vadd.f32 %v488_v17, %v435_v28 }
 0x15e   :  { %v432_v30 = vpop.f32.mrf.mxu0 }
 0x160   :  { %v545_v32 = vpop.f32.mrf.mxu0 }
 0x161   :  { %v552_v35 = vadd.f32 %v545_v32, %v493_v31 }
 0x162   :  { %v547_v38 = vpop.f32.mrf.mxu0 }
 0x163   :  { %v553_v40 = vadd.f32 %v547_v38, %v494_v34  ;;  %v560_v41 = vadd.f32 %v558_v33, %v552_v35  ;;  %v942_v35 = vld [vmem:[%s1484_s3 + $0x18] sm:$0xf] }
 0x164   :  { %v549_v42 = vpop.f32.mrf.mxu0 }
 0x165   :  { %v561_v45 = vadd.f32 %v558_v33, %v553_v40  ;;  %v562_v46 = vmax.f32 %v560_v41, 0.0  ;;  %v1058_v40 = vld [vmem:[%s1484_s3 + $0x20] sm:$0xf] }
 0x166   :  { %v550_v47 = vpop.f32.mrf.mxu0 }
 0x167   :  { %v563_v48 = vmax.f32 %v561_v45, 0.0  ;;  %v575_v49 = vmul.f32 %v1376_v43, %v562_v46 }
 0x169   :  { %v576_v50 = vmul.f32 %v1378_v44, %v563_v48 }
 0x16b   :  { %v1200_v51 = vpack.c.bf16 %v576_v50, %v575_v49 }
 0x16d   :  { %587 = vrot.lane.b32.xlu1 %v1200_v51, %s1232_s9 }
 0x1df   :  { %v588_v52 = vpop.permute.xlu1 %587 }
 0x1e0   :  { %v589_v53 = vrot.slane %v588_v52, 4 }
 0x1e2   :  { %v591_v54 = vsel %vm590_vm14, %v589_v53, %v588_v52 }
 0x1e3   :  { %596 = vst.msk [vmem:[#allocation2] sm:$0xff] %vm595_vm15, %v591_v54 }
 0x1ea   :  { %v598_v55 = vld [vmem:[#allocation2] sm:$0xff] }
 0x1eb   :  { %v1179_v56 = vcombine.low %v598_v55, %v598_v55  ;;  %v1180_v57 = vcombine.high %v598_v55, %v598_v55 }
 0x1ed   :  { %607 = vrot.lane.b32.xlu0 %v1180_v57, %s1224_s23  ;;  %1183 = vmatprep.subr.msk.bf16.mxu0 %vm43_vm0, %v1180_v57  ;;  %v664_v58 = vsel %vm43_vm0, %v1179_v56, 0 }
 0x1ee   :  { %605 = vrot.lane.b32.xlu1 %v1179_v56, %s1224_s23  ;;  %684 = vmatpush1.bf16.msra.mxu0 %v664_v58 }
 0x1f1   :  { %713 = vrot.lane.b32.xlu0 %v1180_v57, %s1225_s0  ;;  %1184 = vmatmul.mubr.msk.bf16.vlgmr.msra.gmra.mxu0 %vm39_vm1, %v597_v59 }
 0x1f2   :  { %711 = vrot.lane.b32.xlu1 %v1179_v56, %s1225_s0  ;;  %815 = vmatprep.mubr.bf16.mxu0 %v1223_v1 }
 0x1f5   :  { %771 = vrot.lane.b32.xlu0 %v1180_v57, %s1226_s26 }
 0x1f6   :  { %769 = vrot.lane.b32.xlu1 %v1179_v56, %s1226_s26 }
 0x1f9   :  { %829 = vrot.lane.b32.xlu0 %v1180_v57, %s1227_s27 }
 0x1fa   :  { %827 = vrot.lane.b32.xlu1 %v1179_v56, %s1227_s27 }
 0x1fd   :  { %887 = vrot.lane.b32.xlu0 %v1180_v57, %s1228_s28 }
 0x1fe   :  { %885 = vrot.lane.b32.xlu1 %v1179_v56, %s1228_s28 }
 0x201   :  { %945 = vrot.lane.b32.xlu0 %v1180_v57, %s1229_s29 }
 0x202   :  { %943 = vrot.lane.b32.xlu1 %v1179_v56, %s1229_s29 }
 0x205   :  { %1003 = vrot.lane.b32.xlu0 %v1180_v57, %s1230_s30 }
 0x206   :  { %1001 = vrot.lane.b32.xlu1 %v1179_v56, %s1230_s30 }
 0x209   :  { %1061 = vrot.lane.b32.xlu0 %v1180_v57, %s1231_s7 }
 0x20a   :  { %1059 = vrot.lane.b32.xlu1 %v1179_v56, %s1231_s7 }
 0x20d   :  { %1215 = vrot.lane.b32.xlu0 %v1214_v62, %s1227_s27 }
 0x20e   :  { %1119 = vperm.xlu1 %1213, %v1116_v63  }
 0x25f   :  { %v608_v2 = vpop.permute.xlu0 %607 }
 0x260   :  { %v606_v3 = vpop.permute.xlu1 %605  ;;  %1181 = vmatprep.subr.msk.bf16.mxu1 %vm43_vm0, %v608_v2 }
 0x261   :  { %v609_v4 = vsel %vm37_vm2, %v606_v3, %v608_v2 }
 0x262   :  { %v614_v0 = vsel %vm43_vm0, %v609_v4, 0 }
 0x263   :  { %634 = vmatpush1.bf16.msra.mxu1 %v614_v0  ;;  %v714_v5 = vpop.permute.xlu0 %713 }
 0x264   :  { %v712_v7 = vpop.permute.xlu1 %711  ;;  %1185 = vmatprep.subr.msk.bf16.mxu1 %vm43_vm0, %v714_v5 }
 0x265   :  { %v715_v8 = vsel %vm146_vm3, %v712_v7, %v714_v5 }
 0x266   :  { %v720_v9 = vsel %vm43_vm0, %v715_v8, 0  ;;  %1182 = vmatmul.mubr.msk.bf16.vlgmr.msra.gmra.mxu1 %vm39_vm1, %v599_v6 }
 0x267   :  { %740 = vmatpush1.bf16.msra.mxu1 %v720_v9  ;;  %v772_v10 = vpop.permute.xlu0 %771  ;;  %757 = vmatprep.mubr.bf16.mxu1 %v1223_v1 }
 0x268   :  { %v770_v11 = vpop.permute.xlu1 %769  ;;  %1187 = vmatprep.subr.msk.bf16.mxu0 %vm43_vm0, %v772_v10 }
 0x269   :  { %v773_v12 = vsel %vm205_vm4, %v770_v11, %v772_v10 }
 0x26a   :  { %v778_v13 = vsel %vm43_vm0, %v773_v12, 0 }
 0x26b   :  { %798 = vmatpush1.bf16.msra.mxu0 %v778_v13  ;;  %v830_v14 = vpop.permute.xlu0 %829 }
 0x26c   :  { %v828_v17 = vpop.permute.xlu1 %827  ;;  %1189 = vmatprep.subr.msk.bf16.mxu1 %vm43_vm0, %v830_v14 }
 0x26d   :  { %v831_v18 = vsel %vm264_vm5, %v828_v17, %v830_v14 }
 0x26e   :  { %v836_v19 = vsel %vm43_vm0, %v831_v18, 0  ;;  %1186 = vmatmul.mubr.msk.bf16.vlgmr.msra.gmra.mxu1 %vm39_vm1, %v710_v15  ;;  %1188 = vmatmul.mubr.msk.bf16.vlgmr.msra.gmra.mxu0 %vm39_vm1, %v768_v16 }
 0x26f   :  { %856 = vmatpush1.bf16.msra.mxu1 %v836_v19  ;;  %v888_v20 = vpop.permute.xlu0 %887  ;;  %873 = vmatprep.mubr.bf16.mxu1 %v1223_v1 }
 0x270   :  { %v886_v21 = vpop.permute.xlu1 %885  ;;  %1191 = vmatprep.subr.msk.bf16.mxu0 %vm43_vm0, %v888_v20  ;;  %931 = vmatprep.mubr.bf16.mxu0 %v1223_v1 }
 0x271   :  { %v889_v22 = vsel %vm323_vm6, %v886_v21, %v888_v20 }
 0x272   :  { %v894_v23 = vsel %vm43_vm0, %v889_v22, 0 }
 0x273   :  { %914 = vmatpush1.bf16.msra.mxu0 %v894_v23  ;;  %v946_v24 = vpop.permute.xlu0 %945 }
 0x274   :  { %v944_v27 = vpop.permute.xlu1 %943  ;;  %1193 = vmatprep.subr.msk.bf16.mxu1 %vm43_vm0, %v946_v24 }
 0x275   :  { %v947_v28 = vsel %vm382_vm7, %v944_v27, %v946_v24 }
 0x276   :  { %v952_v29 = vsel %vm43_vm0, %v947_v28, 0  ;;  %1190 = vmatmul.mubr.msk.bf16.vlgmr.msra.gmra.mxu1 %vm39_vm1, %v826_v25  ;;  %1192 = vmatmul.mubr.msk.bf16.vlgmr.msra.gmra.mxu0 %vm39_vm1, %v884_v26 }
 0x277   :  { %972 = vmatpush1.bf16.msra.mxu1 %v952_v29  ;;  %v1004_v30 = vpop.permute.xlu0 %1003  ;;  %989 = vmatprep.mubr.bf16.mxu1 %v1223_v1 }
 0x278   :  { %v1002_v31 = vpop.permute.xlu1 %1001  ;;  %1195 = vmatprep.subr.msk.bf16.mxu0 %vm43_vm0, %v1004_v30  ;;  %1047 = vmatprep.mubr.bf16.mxu0 %v1223_v1 }
 0x279   :  { %v1005_v32 = vsel %vm441_vm8, %v1002_v31, %v1004_v30 }
 0x27a   :  { %v1010_v33 = vsel %vm43_vm0, %v1005_v32, 0 }
 0x27b   :  { %1030 = vmatpush1.bf16.msra.mxu0 %v1010_v33  ;;  %v1062_v34 = vpop.permute.xlu0 %1061 }
 0x27c   :  { %v1060_v37 = vpop.permute.xlu1 %1059  ;;  %1197 = vmatprep.subr.msk.bf16.mxu1 %vm43_vm0, %v1062_v34 }
 0x27d   :  { %v1063_v38 = vsel %vm500_vm9, %v1060_v37, %v1062_v34 }
 0x27e   :  { %v1068_v39 = vsel %vm43_vm0, %v1063_v38, 0  ;;  %1194 = vmatmul.mubr.msk.bf16.vlgmr.msra.gmra.mxu1 %vm39_vm1, %v942_v35  ;;  %1196 = vmatmul.mubr.msk.bf16.vlgmr.msra.gmra.mxu0 %vm39_vm1, %v1000_v36 }
 0x27f   :  { %1088 = vmatpush1.bf16.msra.mxu1 %v1068_v39  ;;  %1105 = vmatprep.mubr.bf16.mxu1 %v1223_v1  ;;  %v1216_v18 = vpop.permute.xlu0 %1215 }
 0x280   :  { %v1218_v23 = vunpack.i.h.bf16 %v1216_v18  ;;  %v1217_v24 = vunpack.i.l.bf16 %v1216_v18 }
 0x282   :  { %v1134_v32 = vsel %vm264_vm5, %v1217_v24, %v1218_v23 }
 0x286   :  { %1198 = vmatmul.mubr.msk.bf16.vlgmr.msra.gmra.mxu1 %vm39_vm1, %v1058_v40  ;;  %vm1151_vm1 = vcmask 588804  }
 0x287   :  { %vm1152_vm2 = vmor %vm1151_vm1, %vm43_vm0 }
 0x289   :  { %v1120_v28 = vpop.permute.xlu1 %1119 }
 0x2b1   :  { %v703_v41 = vpop.f32.mrf.mxu0 }
 0x2b3   :  { %v705_v42 = vpop.f32.mrf.mxu0 }
 0x2b5   :  { %v707_v45 = vpop.f32.mrf.mxu0 }
 0x2b7   :  { %v708_v46 = vpop.f32.mrf.mxu0 }
 0x326   :  { %v653_v47 = vpop.f32.mrf.mxu1 }
 0x327   :  { %v704_v56 = vadd.f32 %v703_v41, %v653_v47 }
 0x328   :  { %v655_v48 = vpop.f32.mrf.mxu1 }
 0x329   :  { %v706_v59 = vadd.f32 %v705_v42, %v655_v48 }
 0x32a   :  { %v657_v49 = vpop.f32.mrf.mxu1 }
 0x32c   :  { %v658_v50 = vpop.f32.mrf.mxu1 }
 0x32e   :  { %v759_v51 = vpop.f32.mrf.mxu1  ;;  %v817_v52 = vpop.f32.mrf.mxu0 }
 0x32f   :  { %v766_v60 = vadd.f32 %v759_v51, %v704_v56 }
 0x330   :  { %v761_v53 = vpop.f32.mrf.mxu1  ;;  %v819_v54 = vpop.f32.mrf.mxu0 }
 0x331   :  { %v767_v63 = vadd.f32 %v761_v53, %v706_v59  ;;  %v824_v4 = vadd.f32 %v817_v52, %v766_v60 }
 0x332   :  { %v763_v55 = vpop.f32.mrf.mxu1  ;;  %v821_v1 = vpop.f32.mrf.mxu0 }
 0x333   :  { %v825_v6 = vadd.f32 %v819_v54, %v767_v63 }
 0x334   :  { %v764_v57 = vpop.f32.mrf.mxu1  ;;  %v822_v58 = vpop.f32.mrf.mxu0 }
 0x336   :  { %v875_v61 = vpop.f32.mrf.mxu1  ;;  %v933_v62 = vpop.f32.mrf.mxu0 }
 0x337   :  { %v882_v7 = vadd.f32 %v875_v61, %v824_v4 }
 0x338   :  { %v877_v2 = vpop.f32.mrf.mxu1  ;;  %v935_v3 = vpop.f32.mrf.mxu0 }
 0x339   :  { %v883_v10 = vadd.f32 %v877_v2, %v825_v6  ;;  %v940_v13 = vadd.f32 %v933_v62, %v882_v7 }
 0x33a   :  { %v879_v0 = vpop.f32.mrf.mxu1  ;;  %v937_v5 = vpop.f32.mrf.mxu0 }
 0x33b   :  { %v941_v16 = vadd.f32 %v935_v3, %v883_v10 }
 0x33c   :  { %v880_v8 = vpop.f32.mrf.mxu1  ;;  %v938_v9 = vpop.f32.mrf.mxu0 }
 0x33e   :  { %v991_v11 = vpop.f32.mrf.mxu1  ;;  %v1049_v12 = vpop.f32.mrf.mxu0 }
 0x33f   :  { %v998_v17 = vadd.f32 %v991_v11, %v940_v13 }
 0x340   :  { %v993_v14 = vpop.f32.mrf.mxu1  ;;  %v1051_v15 = vpop.f32.mrf.mxu0 }
 0x341   :  { %v999_v21 = vadd.f32 %v993_v14, %v941_v16  ;;  %v1056_v26 = vadd.f32 %v1049_v12, %v998_v17 }
 0x342   :  { %v995_v19 = vpop.f32.mrf.mxu1  ;;  %v1053_v20 = vpop.f32.mrf.mxu0 }
 0x343   :  { %v1057_v29 = vadd.f32 %v1051_v15, %v999_v21 }
 0x344   :  { %v996_v22 = vpop.f32.mrf.mxu1  ;;  %v1054_v25 = vpop.f32.mrf.mxu0 }
 0x346   :  { %v1107_v27 = vpop.f32.mrf.mxu1 }
 0x347   :  { %v1114_v30 = vadd.f32 %v1107_v27, %v1056_v26 }
 0x348   :  { %v1109_v31 = vpop.f32.mrf.mxu1 }
 0x349   :  { %v1115_v33 = vadd.f32 %v1109_v31, %v1057_v29  ;;  %v1122_v34 = vadd.f32 %v1120_v28, %v1114_v30 }
 0x34a   :  { %v1111_v35 = vpop.f32.mrf.mxu1 }
 0x34b   :  { %v1123_v36 = vadd.f32 %v1120_v28, %v1115_v33  ;;  %v1137_v37 = vadd.f32 %v1134_v32, %v1122_v34 }
 0x34c   :  { %v1112_v38 = vpop.f32.mrf.mxu1 }
 0x34d   :  { %v1138_v39 = vadd.f32 %v1218_v23, %v1123_v36  ;;  %v1139_v40 = vmax.f32 %v1137_v37, 0.0 }
 0x34f   :  { %v1140_v41 = vmax.f32 %v1138_v39, 0.0  ;;  %v1141_v42 = vmul.f32 %v1139_v40, %v1376_v43 }
 0x351   :  { %v1142_v45 = vmul.f32 %v1140_v41, %v1378_v44 }
 0x353   :  { %v1201_v46 = vpack.c.bf16 %v1142_v45, %v1141_v42 }
 0x355   :  { %1153 = vst.msk [vmem:[%s1486_s6] sm:$0xff] %vm1152_vm2, %v1201_v46 }

// kernel: decoder_forward.9
= control target key start
LH: loop header
LB: loop body
LE: loop exit
PB: predicated region body
PF: predicated region fallthrough
CT: control target
= control target key end

     0   :  { %v1966_v2 = vmov 0.0   ;;  %vm1967_vm0 = vmmov 0   ;;  %s1968_s16 = smov 113   ;;  %v1969_v5 = vmov 0   ;;  %s1970_s17 = smov 114   ;;  %vm40_vm1 = vcmask 1043456   ;;  %s2285_s0 = inlined_call_operand.vmem [shape: bf16[8,394], index: 0, kind: input, shape index: {}]   ;;  %s2286_s1 = inlined_call_operand.vmem [shape: bf16[128,8], index: 1, kind: input, shape index: {}]   ;;  %s2287_s2 = inlined_call_operand.vmem [shape: f32[8,1], index: 2, kind: input, shape index: {}]   ;;  %s2288_s3 = inlined_call_operand.vmem [shape: f32[8,338], index: 3, kind: output, shape index: {}]  }
   0x1   :  { %v1961_v0 = vld [vmem:[%s2285_s0 + $0x8] ss:$0 sps:$4 sm:$0xff]   ;;  %v16_v1 = vld [vmem:[%s2285_s0] sm:$0xff]  ;;  %1845 = vmatprep.subr.bf16.mxu1 %v1966_v2  ;;  %1847 = vmatprep.mubr.msk.bf16.mxu1 %vm1967_vm0, %v1966_v2  ;;  %s1971_s18 = smov 112   ;;  %s1972_s19 = smov 111   ;;  %vm36_vm2 = vcmask 64512  }
   0x2   :  { %v2014_v3 = vcombine.low %v16_v1, %v16_v1  ;;  %31 = vrot.lane.b32.xlu1 %v1961_v0, %s1968_s16  ;;  %v2017_v4 = vcombine.high %v16_v1, %v16_v1  ;;  %82 = vmatprep.mubr.bf16.mxu0 %v1969_v5  ;;  %s1973_s20 = smov 101   ;;  %s1974_s21 = smov 100   ;;  %v1295_v6 = vld [vmem:[%s2285_s0 + $0x8] sm:$0xff]  ;;  %v18_v12 = vld [vmem:[%s2286_s1 + $0x4] sm:$0xf]  ;;  %vm33_vm3 = vcmask 924672  }
   0x3   :  { %1960 = vset.pattern.permute.xlu0 %v1969_v5  ;;  %s1975_s22 = smov 99   ;;  %s1976_s23 = smov 98   ;;  %v1800_v7 = vcombine.high %v1295_v6, %v1295_v6  ;;  %v1799_v8 = vcombine.low %v1295_v6, %v1295_v6  ;;  %v1741_v14 = vld [vmem:[%s2287_s2] sm:$0xff]  ;;  %vm137_vm4 = vcmask 932864   ;;  %vm240_vm5 = vcmask 916480  }
   0x4   :  { %27 = vrot.lane.b32.xlu0 %v2014_v3, %s1968_s16  ;;  %s1977_s24 = smov 88   ;;  %s1978_s25 = smov 87   ;;  %v15_v24 = vld [vmem:[%s2286_s1] sm:$0xf]  ;;  %vm346_vm6 = vcmask 908288   ;;  %vm452_vm7 = vcmask 826368  }
   0x5   :  { %s1979_s26 = smov 86   ;;  %s1980_s27 = smov 85   ;;  %v233_v34 = vld [vmem:[%s2286_s1 + $0x8] sm:$0xf]  ;;  %v339_v43 = vld [vmem:[%s2286_s1 + $0xc] sm:$0xf] }
   0x6   :  { %131 = vrot.lane.b32.xlu1 %v2014_v3, %s1970_s17  ;;  %s1981_s30 = smov 75   ;;  %s1982_s4 = smov 74   ;;  %vm558_vm8 = vcmask 818176   ;;  %v445_v53 = vld [vmem:[%s2286_s1 + $0x10] sm:$0xf]  ;;  %vm664_vm9 = vcmask 809984  }
   0x7   :  { %s1983_s5 = smov 73   ;;  %s1984_s0 = smov 72   ;;  %v551_v62 = vld [vmem:[%s2286_s1 + $0x14] sm:$0xf]  ;;  %vm770_vm10 = vcmask 801792   ;;  %vm876_vm11 = vcmask 719872  }
   0x8   :  { %29 = vrot.lane.b32.xlu0 %v2017_v4, %s1968_s16  ;;  %vm982_vm12 = vcmask 711680   ;;  %vm1088_vm13 = vcmask 703488   ;;  %vm1194_vm14 = vcmask 695296   ;;  %vm1314_vm15 = vcmask 613376  }
   0xa   :  { %135 = vrot.lane.b32.xlu1 %v1961_v0, %s1970_s17 }
   0xc   :  { %133 = vrot.lane.b32.xlu0 %v2017_v4, %s1970_s17 }
   0xe   :  { %236 = vrot.lane.b32.xlu1 %v2017_v4, %s1971_s18 }
  0x10   :  { %234 = vrot.lane.b32.xlu0 %v2014_v3, %s1971_s18 }
  0x12   :  { %340 = vrot.lane.b32.xlu1 %v2014_v3, %s1972_s19 }
  0x14   :  { %238 = vrot.lane.b32.xlu0 %v1961_v0, %s1971_s18 }
  0x16   :  { %344 = vrot.lane.b32.xlu1 %v1961_v0, %s1972_s19 }
  0x18   :  { %342 = vrot.lane.b32.xlu0 %v2017_v4, %s1972_s19 }
  0x1a   :  { %448 = vrot.lane.b32.xlu1 %v2017_v4, %s1973_s20 }
  0x1c   :  { %446 = vrot.lane.b32.xlu0 %v2014_v3, %s1973_s20 }
  0x1e   :  { %552 = vrot.lane.b32.xlu1 %v2014_v3, %s1974_s21 }
  0x20   :  { %450 = vrot.lane.b32.xlu0 %v1961_v0, %s1973_s20 }
  0x22   :  { %556 = vrot.lane.b32.xlu1 %v1961_v0, %s1974_s21 }
  0x24   :  { %554 = vrot.lane.b32.xlu0 %v2017_v4, %s1974_s21 }
  0x26   :  { %660 = vrot.lane.b32.xlu1 %v2017_v4, %s1975_s22 }
  0x28   :  { %658 = vrot.lane.b32.xlu0 %v2014_v3, %s1975_s22 }
  0x2a   :  { %764 = vrot.lane.b32.xlu1 %v2014_v3, %s1976_s23 }
  0x2c   :  { %662 = vrot.lane.b32.xlu0 %v1961_v0, %s1975_s22 }
  0x2e   :  { %768 = vrot.lane.b32.xlu1 %v1961_v0, %s1976_s23 }
  0x30   :  { %766 = vrot.lane.b32.xlu0 %v2017_v4, %s1976_s23 }
  0x32   :  { %872 = vrot.lane.b32.xlu1 %v2017_v4, %s1977_s24 }
  0x34   :  { %870 = vrot.lane.b32.xlu0 %v2014_v3, %s1977_s24 }
  0x36   :  { %976 = vrot.lane.b32.xlu1 %v2014_v3, %s1978_s25 }
  0x38   :  { %874 = vrot.lane.b32.xlu0 %v1961_v0, %s1977_s24 }
  0x3a   :  { %980 = vrot.lane.b32.xlu1 %v1961_v0, %s1978_s25 }
  0x3c   :  { %978 = vrot.lane.b32.xlu0 %v2017_v4, %s1978_s25 }
  0x3e   :  { %1084 = vrot.lane.b32.xlu1 %v2017_v4, %s1979_s26 }
  0x40   :  { %1082 = vrot.lane.b32.xlu0 %v2014_v3, %s1979_s26 }
  0x42   :  { %1188 = vrot.lane.b32.xlu1 %v2014_v3, %s1980_s27 }
  0x44   :  { %1086 = vrot.lane.b32.xlu0 %v1961_v0, %s1979_s26 }
  0x46   :  { %1192 = vrot.lane.b32.xlu1 %v1961_v0, %s1980_s27 }
  0x48   :  { %1190 = vrot.lane.b32.xlu0 %v2017_v4, %s1980_s27 }
  0x4a   :  { %1308 = vrot.lane.b32.xlu1 %v2017_v4, %s1981_s30 }
  0x4c   :  { %1306 = vrot.lane.b32.xlu0 %v2014_v3, %s1981_s30 }
  0x4e   :  { %1312 = vrot.lane.b32.xlu1 %v1800_v7, %s1981_s30 }
  0x50   :  { %1310 = vrot.lane.b32.xlu0 %v1799_v8, %s1981_s30 }
  0x52   :  { %1417 = vrot.lane.b32.xlu1 %v2017_v4, %s1982_s4 }
  0x54   :  { %1415 = vrot.lane.b32.xlu0 %v2014_v3, %s1982_s4 }
  0x56   :  { %1421 = vrot.lane.b32.xlu1 %v1800_v7, %s1982_s4 }
  0x58   :  { %1419 = vrot.lane.b32.xlu0 %v1799_v8, %s1982_s4 }
  0x5a   :  { %1526 = vrot.lane.b32.xlu1 %v2017_v4, %s1983_s5 }
  0x5c   :  { %1524 = vrot.lane.b32.xlu0 %v2014_v3, %s1983_s5 }
  0x5e   :  { %1530 = vrot.lane.b32.xlu1 %v1800_v7, %s1983_s5 }
  0x60   :  { %1528 = vrot.lane.b32.xlu0 %v1799_v8, %s1983_s5 }
  0x62   :  { %1635 = vrot.lane.b32.xlu1 %v2017_v4, %s1984_s0 }
  0x64   :  { %1633 = vrot.lane.b32.xlu0 %v2014_v3, %s1984_s0 }
  0x66   :  { %1639 = vrot.lane.b32.xlu1 %v1800_v7, %s1984_s0 }
  0x68   :  { %1637 = vrot.lane.b32.xlu0 %v1799_v8, %s1984_s0 }
  0x6c   :  { %1744 = vperm.xlu0 %1960, %v1741_v14  }
  0x74   :  { %v32_v9 = vpop.permute.xlu1 %31 }
  0x75   :  { %v48_v11 = vsel %vm40_vm1, %v32_v9, 0 }
  0x76   :  { %v28_v10 = vpop.permute.xlu0 %27  ;;  %1846 = vmatpush3.bf16.msra.mxu1 %v48_v11 }
  0x77   :  { %1851 = vmatprep.subr.bf16.mxu1 %v1966_v2 }
  0x78   :  { %v132_v13 = vpop.permute.xlu1 %131 }
  0x79   :  { %1848 = vmatmul.mubr.msk.bf16.vlgmr.msra.gmra.mxu1 %vm36_vm2, %v18_v12 }
  0x7a   :  { %v30_v15 = vpop.permute.xlu0 %29  ;;  %1853 = vmatprep.mubr.msk.bf16.mxu1 %vm1967_vm0, %v1966_v2 }
  0x7b   :  { %v35_v16 = vsel %vm33_vm3, %v30_v15, %v32_v9  ;;  %v34_v17 = vsel %vm33_vm3, %v28_v10, %v30_v15  ;;  %v657_v9 = vld [vmem:[%s2286_s1 + $0x18] sm:$0xf]  ;;  %vm1423_vm3 = vcmask 605184  }
  0x7c   :  { %1761 = vmatprep.subr.msk.bf16.mxu0 %vm40_vm1, %v35_v16  ;;  %v42_v18 = vsel %vm40_vm1, %v34_v17, 0  ;;  %v136_v19 = vpop.permute.xlu1 %135 }
  0x7d   :  { %65 = vmatpush1.bf16.msra.mxu0 %v42_v18  ;;  %v150_v20 = vsel %vm40_vm1, %v136_v19, 0  ;;  %v763_v18 = vld [vmem:[%s2286_s1 + $0x1c] sm:$0xf] }
  0x7e   :  { %v134_v21 = vpop.permute.xlu0 %133  ;;  %1852 = vmatpush3.bf16.msra.mxu1 %v150_v20 }
  0x7f   :  { %v138_v22 = vsel %vm137_vm4, %v132_v13, %v134_v21  ;;  %v139_v23 = vsel %vm137_vm4, %v134_v21, %v136_v19  ;;  %1857 = vmatprep.subr.bf16.mxu1 %v1966_v2  ;;  %vm1532_vm4 = vcmask 596992  }
  0x80   :  { %v144_v25 = vsel %vm40_vm1, %v138_v22, 0  ;;  %1762 = vmatmul.mubr.msk.bf16.vlgmr.msra.gmra.mxu0 %vm36_vm2, %v18_v12  ;;  %1764 = vmatprep.subr.msk.bf16.mxu0 %vm40_vm1, %v139_v23  ;;  %v237_v26 = vpop.permute.xlu1 %236 }
  0x81   :  { %167 = vmatpush1.bf16.msra.mxu0 %v144_v25  ;;  %184 = vmatprep.mubr.bf16.mxu0 %v1969_v5 }
  0x82   :  { %v235_v27 = vpop.permute.xlu0 %234  ;;  %1854 = vmatmul.mubr.msk.bf16.vlgmr.msra.gmra.mxu1 %vm36_vm2, %v15_v24 }
  0x83   :  { %v241_v28 = vsel %vm240_vm5, %v235_v27, %v237_v26  ;;  %1859 = vmatprep.mubr.msk.bf16.mxu1 %vm1967_vm0, %v1966_v2  ;;  %v869_v27 = vld [vmem:[%s2286_s1 + $0x20] sm:$0xf] }
  0x84   :  { %v341_v29 = vpop.permute.xlu1 %340  ;;  %v247_v30 = vsel %vm40_vm1, %v241_v28, 0 }
  0x86   :  { %v239_v31 = vpop.permute.xlu0 %238 }
  0x87   :  { %v242_v32 = vsel %vm240_vm5, %v237_v26, %v239_v31  ;;  %v253_v33 = vsel %vm40_vm1, %v239_v31, 0  ;;  %vm1641_vm5 = vcmask 588800  }
  0x88   :  { %1765 = vmatmul.mubr.msk.bf16.vlgmr.msra.gmra.mxu0 %vm36_vm2, %v15_v24  ;;  %1767 = vmatprep.subr.msk.bf16.mxu0 %vm40_vm1, %v242_v32  ;;  %v345_v35 = vpop.permute.xlu1 %344 }
  0x89   :  { %1858 = vmatpush3.bf16.msra.mxu1 %v253_v33  ;;  %270 = vmatpush1.bf16.msra.mxu0 %v247_v30  ;;  %v359_v37 = vsel %vm40_vm1, %v345_v35, 0 }
  0x8a   :  { %v343_v36 = vpop.permute.xlu0 %342  ;;  %287 = vmatprep.mubr.bf16.mxu0 %v1969_v5  ;;  %1863 = vmatprep.subr.bf16.mxu1 %v1966_v2 }
  0x8b   :  { %v347_v38 = vsel %vm346_vm6, %v341_v29, %v343_v36  ;;  %v348_v39 = vsel %vm346_vm6, %v343_v36, %v345_v35  ;;  %v975_v36 = vld [vmem:[%s2286_s1 + $0x24] sm:$0xf] }
  0x8c   :  { %1860 = vmatmul.mubr.msk.bf16.vlgmr.msra.gmra.mxu1 %vm36_vm2, %v233_v34  ;;  %1770 = vmatprep.subr.msk.bf16.mxu0 %vm40_vm1, %v348_v39  ;;  %v449_v40 = vpop.permute.xlu1 %448  ;;  %v353_v41 = vsel %vm40_vm1, %v347_v38, 0 }
  0x8d   :  { %1864 = vmatpush3.bf16.msra.mxu1 %v359_v37  ;;  %1865 = vmatprep.mubr.msk.bf16.mxu1 %vm1967_vm0, %v1966_v2 }
  0x8e   :  { %v447_v42 = vpop.permute.xlu0 %446  ;;  %1869 = vmatprep.subr.bf16.mxu1 %v1966_v2 }
  0x8f   :  { %v453_v46 = vsel %vm452_vm7, %v447_v42, %v449_v40 }
  0x90   :  { %1768 = vmatmul.mubr.msk.bf16.vlgmr.msra.gmra.mxu0 %vm36_vm2, %v233_v34  ;;  %v553_v44 = vpop.permute.xlu1 %552  ;;  %v459_v50 = vsel %vm40_vm1, %v453_v46, 0 }
  0x91   :  { %376 = vmatpush1.bf16.msra.mxu0 %v353_v41  ;;  %393 = vmatprep.mubr.bf16.mxu0 %v1969_v5 }
  0x92   :  { %v451_v45 = vpop.permute.xlu0 %450 }
  0x93   :  { %v454_v47 = vsel %vm452_vm7, %v449_v40, %v451_v45  ;;  %v465_v48 = vsel %vm40_vm1, %v451_v45, 0  ;;  %v1081_v45 = vld [vmem:[%s2286_s1 + $0x28] sm:$0xf] }
  0x94   :  { %1866 = vmatmul.mubr.msk.bf16.vlgmr.msra.gmra.mxu1 %vm36_vm2, %v339_v43  ;;  %1773 = vmatprep.subr.msk.bf16.mxu0 %vm40_vm1, %v454_v47  ;;  %v557_v49 = vpop.permute.xlu1 %556 }
  0x95   :  { %1870 = vmatpush3.bf16.msra.mxu1 %v465_v48  ;;  %1871 = vmatprep.mubr.msk.bf16.mxu1 %vm1967_vm0, %v1966_v2  ;;  %v571_v55 = vsel %vm40_vm1, %v557_v49, 0 }
  0x96   :  { %v555_v51 = vpop.permute.xlu0 %554  ;;  %1875 = vmatprep.subr.bf16.mxu1 %v1966_v2 }
  0x97   :  { %v560_v52 = vsel %vm558_vm8, %v555_v51, %v557_v49  ;;  %v559_v57 = vsel %vm558_vm8, %v553_v44, %v555_v51 }
  0x98   :  { %1771 = vmatmul.mubr.msk.bf16.vlgmr.msra.gmra.mxu0 %vm36_vm2, %v339_v43  ;;  %v661_v54 = vpop.permute.xlu1 %660  ;;  %v565_v59 = vsel %vm40_vm1, %v559_v57, 0 }
  0x99   :  { %482 = vmatpush1.bf16.msra.mxu0 %v459_v50  ;;  %499 = vmatprep.mubr.bf16.mxu0 %v1969_v5 }
  0x9a   :  { %1776 = vmatprep.subr.msk.bf16.mxu0 %vm40_vm1, %v560_v52  ;;  %v659_v56 = vpop.permute.xlu0 %658 }
  0x9b   :  { %v665_v3 = vsel %vm664_vm9, %v659_v56, %v661_v54 }
  0x9c   :  { %1872 = vmatmul.mubr.msk.bf16.vlgmr.msra.gmra.mxu1 %vm36_vm2, %v445_v53  ;;  %v765_v58 = vpop.permute.xlu1 %764  ;;  %v671_v6 = vsel %vm40_vm1, %v665_v3, 0 }
  0x9d   :  { %1876 = vmatpush3.bf16.msra.mxu1 %v571_v55  ;;  %1877 = vmatprep.mubr.msk.bf16.mxu1 %vm1967_vm0, %v1966_v2 }
  0x9e   :  { %v663_v60 = vpop.permute.xlu0 %662  ;;  %1881 = vmatprep.subr.bf16.mxu1 %v1966_v2 }
  0x9f   :  { %v666_v61 = vsel %vm664_vm9, %v661_v54, %v663_v60  ;;  %v677_v0 = vsel %vm40_vm1, %v663_v60, 0 }
  0xa0   :  { %1774 = vmatmul.mubr.msk.bf16.vlgmr.msra.gmra.mxu0 %vm36_vm2, %v445_v53  ;;  %v769_v63 = vpop.permute.xlu1 %768  ;;  %v1187_v53 = vld [vmem:[%s2286_s1 + $0x2c] sm:$0xf] }
  0xa1   :  { %588 = vmatpush1.bf16.msra.mxu0 %v565_v59  ;;  %605 = vmatprep.mubr.bf16.mxu0 %v1969_v5  ;;  %v783_v11 = vsel %vm40_vm1, %v769_v63, 0 }
  0xa2   :  { %1779 = vmatprep.subr.msk.bf16.mxu0 %vm40_vm1, %v666_v61  ;;  %v767_v1 = vpop.permute.xlu0 %766 }
  0xa3   :  { %v772_v8 = vsel %vm770_vm10, %v767_v1, %v769_v63  ;;  %v771_v13 = vsel %vm770_vm10, %v765_v58, %v767_v1  ;;  %v1293_v63 = vld [vmem:[%s2286_s1 + $0x30] sm:$0xf] }
  0xa4   :  { %1878 = vmatmul.mubr.msk.bf16.vlgmr.msra.gmra.mxu1 %vm36_vm2, %v551_v62  ;;  %v873_v4 = vpop.permute.xlu1 %872  ;;  %v777_v15 = vsel %vm40_vm1, %v771_v13, 0 }
  0xa5   :  { %1882 = vmatpush3.bf16.msra.mxu1 %v677_v0  ;;  %1883 = vmatprep.mubr.msk.bf16.mxu1 %vm1967_vm0, %v1966_v2 }
  0xa6   :  { %1887 = vmatprep.subr.bf16.mxu1 %v1966_v2  ;;  %v871_v7 = vpop.permute.xlu0 %870 }
  0xa7   :  { %v877_v22 = vsel %vm876_vm11, %v871_v7, %v873_v4 }
  0xa8   :  { %1777 = vmatmul.mubr.msk.bf16.vlgmr.msra.gmra.mxu0 %vm36_vm2, %v551_v62  ;;  %v977_v10 = vpop.permute.xlu1 %976  ;;  %v883_v24 = vsel %vm40_vm1, %v877_v22, 0 }
  0xa9   :  { %694 = vmatpush1.bf16.msra.mxu0 %v671_v6  ;;  %711 = vmatprep.mubr.bf16.mxu0 %v1969_v5 }
  0xaa   :  { %1782 = vmatprep.subr.msk.bf16.mxu0 %vm40_vm1, %v772_v8  ;;  %v875_v12 = vpop.permute.xlu0 %874 }
  0xab   :  { %v878_v17 = vsel %vm876_vm11, %v873_v4, %v875_v12  ;;  %v889_v20 = vsel %vm40_vm1, %v875_v12, 0 }
  0xac   :  { %1884 = vmatmul.mubr.msk.bf16.vlgmr.msra.gmra.mxu1 %vm36_vm2, %v657_v9  ;;  %v981_v14 = vpop.permute.xlu1 %980 }
  0xad   :  { %1888 = vmatpush3.bf16.msra.mxu1 %v783_v11  ;;  %1889 = vmatprep.mubr.msk.bf16.mxu1 %vm1967_vm0, %v1966_v2  ;;  %v995_v29 = vsel %vm40_vm1, %v981_v14, 0 }
  0xae   :  { %1893 = vmatprep.subr.bf16.mxu1 %v1966_v2  ;;  %v979_v16 = vpop.permute.xlu0 %978 }
  0xaf   :  { %v984_v26 = vsel %vm982_vm12, %v979_v16, %v981_v14  ;;  %v983_v31 = vsel %vm982_vm12, %v977_v10, %v979_v16 }
  0xb0   :  { %1780 = vmatmul.mubr.msk.bf16.vlgmr.msra.gmra.mxu0 %vm36_vm2, %v657_v9  ;;  %v1085_v19 = vpop.permute.xlu1 %1084  ;;  %v989_v33 = vsel %vm40_vm1, %v983_v31, 0  ;;  %v1414_v9 = vld [vmem:[%s2286_s1 + $0x34] sm:$0xf] }
  0xb1   :  { %800 = vmatpush1.bf16.msra.mxu0 %v777_v15  ;;  %817 = vmatprep.mubr.bf16.mxu0 %v1969_v5 }
  0xb2   :  { %1785 = vmatprep.subr.msk.bf16.mxu0 %vm40_vm1, %v878_v17  ;;  %v1083_v21 = vpop.permute.xlu0 %1082  ;;  %v1523_v17 = vld [vmem:[%s2286_s1 + $0x38] sm:$0xf] }
  0xb3   :  { %v1089_v40 = vsel %vm1088_vm13, %v1083_v21, %v1085_v19  ;;  %v1632_v21 = vld [vmem:[%s2286_s1 + $0x3c] sm:$0xf] }
  0xb4   :  { %1890 = vmatmul.mubr.msk.bf16.vlgmr.msra.gmra.mxu1 %vm36_vm2, %v763_v18  ;;  %v1189_v23 = vpop.permute.xlu1 %1188  ;;  %v1095_v41 = vsel %vm40_vm1, %v1089_v40, 0 }
  0xb5   :  { %1894 = vmatpush3.bf16.msra.mxu1 %v889_v20  ;;  %1895 = vmatprep.mubr.msk.bf16.mxu1 %vm1967_vm0, %v1966_v2 }
  0xb6   :  { %1899 = vmatprep.subr.bf16.mxu1 %v1966_v2  ;;  %v1087_v25 = vpop.permute.xlu0 %1086 }
  0xb7   :  { %v1090_v35 = vsel %vm1088_vm13, %v1085_v19, %v1087_v25  ;;  %v1101_v38 = vsel %vm40_vm1, %v1087_v25, 0 }
  0xb8   :  { %1783 = vmatmul.mubr.msk.bf16.vlgmr.msra.gmra.mxu0 %vm36_vm2, %v763_v18  ;;  %v1193_v28 = vpop.permute.xlu1 %1192 }
  0xb9   :  { %906 = vmatpush1.bf16.msra.mxu0 %v883_v24  ;;  %923 = vmatprep.mubr.bf16.mxu0 %v1969_v5  ;;  %v1207_v46 = vsel %vm40_vm1, %v1193_v28, 0 }
  0xba   :  { %1788 = vmatprep.subr.msk.bf16.mxu0 %vm40_vm1, %v984_v26  ;;  %v1191_v30 = vpop.permute.xlu0 %1190 }
  0xbb   :  { %v1196_v44 = vsel %vm1194_vm14, %v1191_v30, %v1193_v28  ;;  %v1195_v47 = vsel %vm1194_vm14, %v1189_v23, %v1191_v30 }
  0xbc   :  { %1896 = vmatmul.mubr.msk.bf16.vlgmr.msra.gmra.mxu1 %vm36_vm2, %v869_v27  ;;  %v1309_v32 = vpop.permute.xlu1 %1308  ;;  %v1201_v50 = vsel %vm40_vm1, %v1195_v47, 0 }
  0xbd   :  { %1900 = vmatpush3.bf16.msra.mxu1 %v995_v29  ;;  %1901 = vmatprep.mubr.msk.bf16.mxu1 %vm1967_vm0, %v1966_v2 }
  0xbe   :  { %1905 = vmatprep.subr.bf16.mxu1 %v1966_v2  ;;  %v1307_v34 = vpop.permute.xlu0 %1306 }
  0xbf   :  { %v1315_v57 = vsel %vm1314_vm15, %v1307_v34, %v1309_v32 }
  0xc0   :  { %1786 = vmatmul.mubr.msk.bf16.vlgmr.msra.gmra.mxu0 %vm36_vm2, %v869_v27  ;;  %v1313_v37 = vpop.permute.xlu1 %1312  ;;  %v1322_v58 = vsel %vm40_vm1, %v1315_v57, 0 }
  0xc1   :  { %1012 = vmatpush1.bf16.msra.mxu0 %v989_v33  ;;  %1029 = vmatprep.mubr.bf16.mxu0 %v1969_v5 }
  0xc2   :  { %1791 = vmatprep.subr.msk.bf16.mxu0 %vm40_vm1, %v1090_v35  ;;  %v1311_v39 = vpop.permute.xlu0 %1310 }
  0xc3   :  { %v1316_v51 = vsel %vm1314_vm15, %v1309_v32, %v1311_v39  ;;  %v1317_v52 = vsel %vm1314_vm15, %v1311_v39, %v1313_v37 }
  0xc4   :  { %1902 = vmatmul.mubr.msk.bf16.vlgmr.msra.gmra.mxu1 %vm36_vm2, %v975_v36  ;;  %v1418_v43 = vpop.permute.xlu1 %1417  ;;  %v1328_v54 = vsel %vm40_vm1, %v1317_v52, 0 }
  0xc5   :  { %1906 = vmatpush3.bf16.msra.mxu1 %v1101_v38  ;;  %1907 = vmatprep.mubr.msk.bf16.mxu1 %vm1967_vm0, %v1966_v2 }
  0xc6   :  { %1911 = vmatprep.subr.bf16.mxu1 %v1966_v2  ;;  %v1416_v42 = vpop.permute.xlu0 %1415 }
  0xc7   :  { %v1424_v1 = vsel %vm1423_vm3, %v1416_v42, %v1418_v43 }
  0xc8   :  { %1789 = vmatmul.mubr.msk.bf16.vlgmr.msra.gmra.mxu0 %vm36_vm2, %v975_v36  ;;  %v1422_v49 = vpop.permute.xlu1 %1421  ;;  %v1431_v3 = vsel %vm40_vm1, %v1424_v1, 0 }
  0xc9   :  { %1118 = vmatpush1.bf16.msra.mxu0 %v1095_v41  ;;  %1135 = vmatprep.mubr.bf16.mxu0 %v1969_v5 }
  0xca   :  { %1794 = vmatprep.subr.msk.bf16.mxu0 %vm40_vm1, %v1196_v44  ;;  %v1420_v48 = vpop.permute.xlu0 %1419 }
  0xcb   :  { %v1425_v59 = vsel %vm1423_vm3, %v1418_v43, %v1420_v48  ;;  %v1426_v60 = vsel %vm1423_vm3, %v1420_v48, %v1422_v49 }
  0xcc   :  { %1908 = vmatmul.mubr.msk.bf16.vlgmr.msra.gmra.mxu1 %vm36_vm2, %v1081_v45  ;;  %v1527_v56 = vpop.permute.xlu1 %1526  ;;  %v1437_v0 = vsel %vm40_vm1, %v1426_v60, 0 }
  0xcd   :  { %1912 = vmatpush3.bf16.msra.mxu1 %v1207_v46  ;;  %1913 = vmatprep.mubr.msk.bf16.mxu1 %vm1967_vm0, %v1966_v2 }
  0xce   :  { %1917 = vmatprep.subr.bf16.mxu1 %v1966_v2  ;;  %v1525_v55 = vpop.permute.xlu0 %1524 }
  0xcf   :  { %v1533_v11 = vsel %vm1532_vm4, %v1525_v55, %v1527_v56 }
  0xd0   :  { %1792 = vmatmul.mubr.msk.bf16.vlgmr.msra.gmra.mxu0 %vm36_vm2, %v1081_v45  ;;  %v1531_v62 = vpop.permute.xlu1 %1530  ;;  %v1540_v14 = vsel %vm40_vm1, %v1533_v11, 0 }
  0xd1   :  { %1224 = vmatpush1.bf16.msra.mxu0 %v1201_v50  ;;  %1241 = vmatprep.mubr.bf16.mxu0 %v1969_v5 }
  0xd2   :  { %1801 = vmatprep.subr.msk.bf16.mxu0 %vm40_vm1, %v1316_v51  ;;  %v1529_v61 = vpop.permute.xlu0 %1528 }
  0xd3   :  { %v1534_v7 = vsel %vm1532_vm4, %v1527_v56, %v1529_v61  ;;  %v1535_v8 = vsel %vm1532_vm4, %v1529_v61, %v1531_v62 }
  0xd4   :  { %1914 = vmatmul.mubr.msk.bf16.vlgmr.msra.gmra.mxu1 %vm36_vm2, %v1187_v53  ;;  %v1636_v6 = vpop.permute.xlu1 %1635  ;;  %v1546_v10 = vsel %vm40_vm1, %v1535_v8, 0 }
  0xd5   :  { %1918 = vmatpush3.bf16.msra.mxu1 %v1328_v54  ;;  %1919 = vmatprep.mubr.msk.bf16.mxu1 %vm1967_vm0, %v1966_v2 }
  0xd6   :  { %1923 = vmatprep.subr.bf16.mxu1 %v1966_v2  ;;  %v1634_v4 = vpop.permute.xlu0 %1633 }
  0xd7   :  { %v1642_v19 = vsel %vm1641_vm5, %v1634_v4, %v1636_v6 }
  0xd8   :  { %1795 = vmatmul.mubr.msk.bf16.vlgmr.msra.gmra.mxu0 %vm36_vm2, %v1187_v53  ;;  %v1640_v13 = vpop.permute.xlu1 %1639  ;;  %v1649_v20 = vsel %vm40_vm1, %v1642_v19, 0 }
  0xd9   :  { %1345 = vmatpush1.bf16.msra.mxu0 %v1322_v58  ;;  %1362 = vmatprep.mubr.bf16.mxu0 %v1969_v5 }
  0xda   :  { %1804 = vmatprep.subr.msk.bf16.mxu0 %vm40_vm1, %v1425_v59  ;;  %v1638_v12 = vpop.permute.xlu0 %1637 }
  0xdb   :  { %v1643_v15 = vsel %vm1641_vm5, %v1636_v6, %v1638_v12  ;;  %v1644_v16 = vsel %vm1641_vm5, %v1638_v12, %v1640_v13 }
  0xdc   :  { %1920 = vmatmul.mubr.msk.bf16.vlgmr.msra.gmra.mxu1 %vm36_vm2, %v1293_v63  ;;  %v1655_v18 = vsel %vm40_vm1, %v1644_v16, 0 }
  0xdd   :  { %1924 = vmatpush3.bf16.msra.mxu1 %v1437_v0  ;;  %1925 = vmatprep.mubr.msk.bf16.mxu1 %vm1967_vm0, %v1966_v2 }
  0xde   :  { %1929 = vmatprep.subr.bf16.mxu1 %v1966_v2 }
  0xe0   :  { %1802 = vmatmul.mubr.msk.bf16.vlgmr.msra.gmra.mxu0 %vm36_vm2, %v1293_v63 }
  0xe1   :  { %1454 = vmatpush1.bf16.msra.mxu0 %v1431_v3  ;;  %1471 = vmatprep.mubr.bf16.mxu0 %v1969_v5 }
  0xe2   :  { %1807 = vmatprep.subr.msk.bf16.mxu0 %vm40_vm1, %v1534_v7 }
  0xe4   :  { %1926 = vmatmul.mubr.msk.bf16.vlgmr.msra.gmra.mxu1 %vm36_vm2, %v1414_v9 }
  0xe5   :  { %1930 = vmatpush3.bf16.msra.mxu1 %v1546_v10  ;;  %1931 = vmatprep.mubr.msk.bf16.mxu1 %vm1967_vm0, %v1966_v2 }
  0xe6   :  { %1935 = vmatprep.subr.bf16.mxu1 %v1966_v2 }
  0xe8   :  { %1805 = vmatmul.mubr.msk.bf16.vlgmr.msra.gmra.mxu0 %vm36_vm2, %v1414_v9 }
  0xe9   :  { %1563 = vmatpush1.bf16.msra.mxu0 %v1540_v14  ;;  %1580 = vmatprep.mubr.bf16.mxu0 %v1969_v5 }
  0xea   :  { %1810 = vmatprep.subr.msk.bf16.mxu0 %vm40_vm1, %v1643_v15 }
  0xec   :  { %1932 = vmatmul.mubr.msk.bf16.vlgmr.msra.gmra.mxu1 %vm36_vm2, %v1523_v17 }
  0xed   :  { %1936 = vmatpush3.bf16.msra.mxu1 %v1655_v18  ;;  %1937 = vmatprep.mubr.msk.bf16.mxu1 %vm1967_vm0, %v1966_v2  ;;  %vm1752_vm0 = vcmask 670720  }
  0xf0   :  { %1808 = vmatmul.mubr.msk.bf16.vlgmr.msra.gmra.mxu0 %vm36_vm2, %v1523_v17 }
  0xf1   :  { %1672 = vmatpush1.bf16.msra.mxu0 %v1649_v20  ;;  %1689 = vmatprep.mubr.bf16.mxu0 %v1969_v5 }
  0xf4   :  { %1938 = vmatmul.mubr.msk.bf16.vlgmr.msra.gmra.mxu1 %vm36_vm2, %v1632_v21 }
  0xf8   :  { %1811 = vmatmul.mubr.msk.bf16.vlgmr.msra.gmra.mxu0 %vm36_vm2, %v1632_v21 }
 0x139   :  { %v125_v22 = vpop.f32.mrf.mxu1 }
 0x13b   :  { %v1849_v23 = vpop.f32.mrf.mxu1 }
 0x13d   :  { %v128_v24 = vpop.f32.mrf.mxu1 }
 0x13f   :  { %v1850_v2 = vpop.f32.mrf.mxu1 }
 0x140   :  { %v84_v25 = vpop.f32.mrf.mxu0 }
 0x142   :  { %v86_v26 = vpop.f32.mrf.mxu0  ;;  %v227_v27 = vpop.f32.mrf.mxu1 }
 0x143   :  { %v228_v28 = vadd.f32 %v227_v27, %v125_v22 }
 0x144   :  { %v88_v29 = vpop.f32.mrf.mxu0  ;;  %v1855_v30 = vpop.f32.mrf.mxu1 }
 0x146   :  { %v89_v31 = vpop.f32.mrf.mxu0  ;;  %v230_v32 = vpop.f32.mrf.mxu1 }
 0x148   :  { %v186_v33 = vpop.f32.mrf.mxu0  ;;  %v1856_v34 = vpop.f32.mrf.mxu1 }
 0x149   :  { %v187_v35 = vadd.f32 %v186_v33, %v84_v25 }
 0x14a   :  { %v188_v5 = vpop.f32.mrf.mxu0 }
 0x14b   :  { %v189_v36 = vadd.f32 %v188_v5, %v86_v26 }
 0x14c   :  { %v330_v37 = vpop.f32.mrf.mxu1  ;;  %v190_v38 = vpop.f32.mrf.mxu0 }
 0x14d   :  { %v338_v39 = vadd.f32 %v330_v37, %v228_v28 }
 0x14e   :  { %v1861_v40 = vpop.f32.mrf.mxu1  ;;  %v191_v41 = vpop.f32.mrf.mxu0 }
 0x150   :  { %v333_v42 = vpop.f32.mrf.mxu1  ;;  %v289_v43 = vpop.f32.mrf.mxu0 }
 0x151   :  { %v336_v44 = vadd.f32 %v289_v43, %v187_v35 }
 0x152   :  { %v1862_v45 = vpop.f32.mrf.mxu1  ;;  %v291_v46 = vpop.f32.mrf.mxu0 }
 0x153   :  { %v337_v47 = vadd.f32 %v291_v46, %v189_v36 }
 0x154   :  { %v436_v48 = vpop.f32.mrf.mxu1  ;;  %v293_v49 = vpop.f32.mrf.mxu0 }
 0x155   :  { %v444_v50 = vadd.f32 %v436_v48, %v338_v39 }
 0x156   :  { %v1867_v51 = vpop.f32.mrf.mxu1  ;;  %v294_v52 = vpop.f32.mrf.mxu0 }
 0x158   :  { %v439_v53 = vpop.f32.mrf.mxu1  ;;  %v395_v54 = vpop.f32.mrf.mxu0 }
 0x159   :  { %v442_v55 = vadd.f32 %v395_v54, %v336_v44 }
 0x15a   :  { %v1868_v56 = vpop.f32.mrf.mxu1  ;;  %v397_v57 = vpop.f32.mrf.mxu0 }
 0x15b   :  { %v443_v58 = vadd.f32 %v397_v57, %v337_v47 }
 0x15c   :  { %v542_v59 = vpop.f32.mrf.mxu1  ;;  %v399_v60 = vpop.f32.mrf.mxu0 }
 0x15d   :  { %v2261_v61 = vadd.f32 %v542_v59, %v444_v50 }
 0x15e   :  { %v1873_v62 = vpop.f32.mrf.mxu1  ;;  %v400_v63 = vpop.f32.mrf.mxu0 }
 0x160   :  { %v545_v0 = vpop.f32.mrf.mxu1  ;;  %v501_v1 = vpop.f32.mrf.mxu0 }
 0x161   :  { %v2263_v3 = vadd.f32 %v501_v1, %v442_v55 }
 0x162   :  { %v1874_v4 = vpop.f32.mrf.mxu1  ;;  %v503_v6 = vpop.f32.mrf.mxu0 }
 0x163   :  { %v2265_v7 = vadd.f32 %v503_v6, %v443_v58 }
 0x164   :  { %v648_v8 = vpop.f32.mrf.mxu1  ;;  %v505_v9 = vpop.f32.mrf.mxu0 }
 0x166   :  { %v1879_v10 = vpop.f32.mrf.mxu1  ;;  %v506_v11 = vpop.f32.mrf.mxu0 }
 0x167   :  { %v656_v10 = vadd.f32 %v648_v8, %v2261_v61 }
 0x168   :  { %v651_v12 = vpop.f32.mrf.mxu1  ;;  %v2267_v13 = vpop.f32.mrf.mxu0 }
 0x16a   :  { %v1880_v14 = vpop.f32.mrf.mxu1  ;;  %v2269_v15 = vpop.f32.mrf.mxu0 }
 0x16c   :  { %v754_v16 = vpop.f32.mrf.mxu1  ;;  %v611_v17 = vpop.f32.mrf.mxu0 }
 0x16d   :  { %v762_v14 = vadd.f32 %v754_v16, %v656_v10 }
 0x16e   :  { %v1885_v18 = vpop.f32.mrf.mxu1  ;;  %v612_v19 = vpop.f32.mrf.mxu0 }
 0x16f   :  { %v654_v19 = vadd.f32 %v2267_v13, %v2263_v3 }
 0x170   :  { %v757_v20 = vpop.f32.mrf.mxu1  ;;  %v713_v21 = vpop.f32.mrf.mxu0 }
 0x172   :  { %v1886_v22 = vpop.f32.mrf.mxu1  ;;  %v715_v23 = vpop.f32.mrf.mxu0 }
 0x174   :  { %v860_v24 = vpop.f32.mrf.mxu1  ;;  %v717_v25 = vpop.f32.mrf.mxu0 }
 0x175   :  { %v868_v20 = vadd.f32 %v860_v24, %v762_v14 }
 0x176   :  { %v1891_v2 = vpop.f32.mrf.mxu1  ;;  %v718_v26 = vpop.f32.mrf.mxu0 }
 0x177   :  { %v655_v2 = vadd.f32 %v2269_v15, %v2265_v7  ;;  %v760_v26 = vadd.f32 %v713_v21, %v654_v19 }
 0x178   :  { %v863_v27 = vpop.f32.mrf.mxu1  ;;  %v819_v28 = vpop.f32.mrf.mxu0 }
 0x179   :  { %v866_v61 = vadd.f32 %v819_v28, %v760_v26 }
 0x17a   :  { %v1892_v29 = vpop.f32.mrf.mxu1  ;;  %v821_v30 = vpop.f32.mrf.mxu0 }
 0x17c   :  { %v966_v31 = vpop.f32.mrf.mxu1  ;;  %v823_v32 = vpop.f32.mrf.mxu0 }
 0x17d   :  { %v974_v27 = vadd.f32 %v966_v31, %v868_v20 }
 0x17e   :  { %v1897_v33 = vpop.f32.mrf.mxu1  ;;  %v824_v34 = vpop.f32.mrf.mxu0 }
 0x17f   :  { %v761_v33 = vadd.f32 %v715_v23, %v655_v2 }
 0x180   :  { %v969_v35 = vpop.f32.mrf.mxu1  ;;  %v925_v5 = vpop.f32.mrf.mxu0 }
 0x181   :  { %v867_v35 = vadd.f32 %v821_v30, %v761_v33 }
 0x182   :  { %v1898_v36 = vpop.f32.mrf.mxu1  ;;  %v927_v37 = vpop.f32.mrf.mxu0 }
 0x183   :  { %v972_v36 = vadd.f32 %v925_v5, %v866_v61  ;;  %v973_v13 = vadd.f32 %v927_v37, %v867_v35 }
 0x184   :  { %v1072_v38 = vpop.f32.mrf.mxu1  ;;  %v929_v39 = vpop.f32.mrf.mxu0 }
 0x185   :  { %v1080_v8 = vadd.f32 %v1072_v38, %v974_v27 }
 0x186   :  { %v1903_v40 = vpop.f32.mrf.mxu1  ;;  %v930_v41 = vpop.f32.mrf.mxu0 }
 0x188   :  { %v1075_v42 = vpop.f32.mrf.mxu1  ;;  %v1031_v43 = vpop.f32.mrf.mxu0 }
 0x189   :  { %v1078_v24 = vadd.f32 %v1031_v43, %v972_v36 }
 0x18a   :  { %v1904_v44 = vpop.f32.mrf.mxu1  ;;  %v1033_v45 = vpop.f32.mrf.mxu0 }
 0x18b   :  { %v1079_v7 = vadd.f32 %v1033_v45, %v973_v13 }
 0x18c   :  { %v1178_v46 = vpop.f32.mrf.mxu1  ;;  %v1035_v47 = vpop.f32.mrf.mxu0 }
 0x18d   :  { %v1186_v39 = vadd.f32 %v1178_v46, %v1080_v8 }
 0x18e   :  { %v1909_v48 = vpop.f32.mrf.mxu1  ;;  %v1036_v49 = vpop.f32.mrf.mxu0 }
 0x190   :  { %v1181_v50 = vpop.f32.mrf.mxu1  ;;  %v1137_v51 = vpop.f32.mrf.mxu0 }
 0x191   :  { %v1184_v15 = vadd.f32 %v1137_v51, %v1078_v24  ;;  %v1745_v50 = vpop.permute.xlu0 %1744 }
 0x192   :  { %v1910_v52 = vpop.f32.mrf.mxu1  ;;  %v1139_v53 = vpop.f32.mrf.mxu0 }
 0x193   :  { %v1185_v23 = vadd.f32 %v1139_v53, %v1079_v7 }
 0x194   :  { %v1284_v54 = vpop.f32.mrf.mxu1  ;;  %v1141_v55 = vpop.f32.mrf.mxu0 }
 0x195   :  { %v1292_v41 = vadd.f32 %v1284_v54, %v1186_v39 }
 0x196   :  { %v1915_v56 = vpop.f32.mrf.mxu1  ;;  %v1142_v57 = vpop.f32.mrf.mxu0 }
 0x198   :  { %v1287_v58 = vpop.f32.mrf.mxu1  ;;  %v1243_v59 = vpop.f32.mrf.mxu0 }
 0x199   :  { %v1290_v28 = vadd.f32 %v1243_v59, %v1184_v15 }
 0x19a   :  { %v1916_v60 = vpop.f32.mrf.mxu1  ;;  %v1245_v62 = vpop.f32.mrf.mxu0 }
 0x19b   :  { %v1291_v30 = vadd.f32 %v1245_v62, %v1185_v23 }
 0x19c   :  { %v1405_v63 = vpop.f32.mrf.mxu1  ;;  %v1247_v0 = vpop.f32.mrf.mxu0 }
 0x19d   :  { %v1413_v21 = vadd.f32 %v1405_v63, %v1292_v41 }
 0x19e   :  { %v1921_v1 = vpop.f32.mrf.mxu1  ;;  %v1248_v4 = vpop.f32.mrf.mxu0 }
 0x1a0   :  { %v1408_v6 = vpop.f32.mrf.mxu1  ;;  %v1364_v9 = vpop.f32.mrf.mxu0 }
 0x1a1   :  { %v1411_v5 = vadd.f32 %v1364_v9, %v1290_v28 }
 0x1a2   :  { %v1922_v11 = vpop.f32.mrf.mxu1  ;;  %v1366_v12 = vpop.f32.mrf.mxu0 }
 0x1a3   :  { %v1412_v43 = vadd.f32 %v1366_v12, %v1291_v30 }
 0x1a4   :  { %v1514_v17 = vpop.f32.mrf.mxu1  ;;  %v1368_v18 = vpop.f32.mrf.mxu0 }
 0x1a5   :  { %v1522_v38 = vadd.f32 %v1514_v17, %v1413_v21 }
 0x1a6   :  { %v1927_v22 = vpop.f32.mrf.mxu1  ;;  %v1369_v25 = vpop.f32.mrf.mxu0 }
 0x1a8   :  { %v1517_v29 = vpop.f32.mrf.mxu1  ;;  %v1473_v32 = vpop.f32.mrf.mxu0 }
 0x1a9   :  { %v1520_v54 = vadd.f32 %v1473_v32, %v1411_v5 }
 0x1aa   :  { %v1928_v34 = vpop.f32.mrf.mxu1  ;;  %v1475_v16 = vpop.f32.mrf.mxu0 }
 0x1ab   :  { %v1521_v56 = vadd.f32 %v1475_v16, %v1412_v43 }
 0x1ac   :  { %v1623_v40 = vpop.f32.mrf.mxu1  ;;  %v1477_v3 = vpop.f32.mrf.mxu0 }
 0x1ad   :  { %v1631_v46 = vadd.f32 %v1623_v40, %v1522_v38 }
 0x1ae   :  { %v1933_v42 = vpop.f32.mrf.mxu1  ;;  %v1478_v44 = vpop.f32.mrf.mxu0 }
 0x1b0   :  { %v1626_v31 = vpop.f32.mrf.mxu1  ;;  %v1582_v47 = vpop.f32.mrf.mxu0 }
 0x1b1   :  { %v1629_v57 = vadd.f32 %v1582_v47, %v1520_v54 }
 0x1b2   :  { %v1934_v48 = vpop.f32.mrf.mxu1  ;;  %v1584_v49 = vpop.f32.mrf.mxu0 }
 0x1b3   :  { %v1630_v60 = vadd.f32 %v1584_v49, %v1521_v56 }
 0x1b4   :  { %v1732_v52 = vpop.f32.mrf.mxu1  ;;  %v1586_v37 = vpop.f32.mrf.mxu0 }
 0x1b5   :  { %v1740_v55 = vadd.f32 %v1732_v52, %v1631_v46 }
 0x1b6   :  { %v1587_v45 = vpop.f32.mrf.mxu0  ;;  %v1939_v51 = vpop.f32.mrf.mxu1 }
 0x1b7   :  { %v1749_v58 = vadd.f32 %v1745_v50, %v1740_v55 }
 0x1b8   :  { %v1691_v53 = vpop.f32.mrf.mxu0  ;;  %v1735_v59 = vpop.f32.mrf.mxu1 }
 0x1b9   :  { %1753 = vst.msk [vmem:[%s2288_s3 + $0x10] sm:$0xff] %vm1752_vm0, %v1749_v58  ;;  %v1738_v62 = vadd.f32 %v1691_v53, %v1629_v57 }
 0x1ba   :  { %v1693_v63 = vpop.f32.mrf.mxu0  ;;  %v1940_v0 = vpop.f32.mrf.mxu1 }
 0x1bb   :  { %v1747_v1 = vadd.f32 %v1745_v50, %v1738_v62  ;;  %v1739_v4 = vadd.f32 %v1693_v63, %v1630_v60 }
 0x1bc   :  { %v1695_v6 = vpop.f32.mrf.mxu0 }
 0x1bd   :  { %1750 = vst [vmem:[%s2288_s3] sm:$0xff] %v1747_v1  ;;  %v1748_v9 = vadd.f32 %v1745_v50, %v1739_v4 }
 0x1be   :  { %v1696_v10 = vpop.f32.mrf.mxu0 }
 0x1bf   :  { %1751 = vst [vmem:[%s2288_s3 + $0x8] sm:$0xff] %v1748_v9 }

</bundles_post_ra>
